<compile_context>
chip_gen: v5e
topology: v5e:2x2
jax: 0.10.0
libtpu: 0.0.40
codegen_flags: <defaults>
</compile_context>

<pallas_src>
import functools

import jax
import jax.numpy as jnp
from jax.experimental import pallas as pl
from jax.experimental.pallas import tpu as pltpu


OUT_PAD = 128          # pad the 2-class logit dim to a full lane width
TILE_M = 256           # rows per grid step (multiple of 8; fills MXU M dim)


def _classifier_kernel(emb_ref, w1_ref, b1_ref, w2_ref, b2_ref, out_ref):
    # Linear(768 -> 384): bf16 x bf16 -> f32 accumulate on the MXU.
    h = jnp.dot(emb_ref[...], w1_ref[...],
                preferred_element_type=jnp.float32) + b1_ref[...]
    # LeakyReLU(negative_slope=0.1) on the f32 accumulator (VPU).
    h = jnp.where(h > 0, h, 0.1 * h)
    # Linear(384 -> 2), W2 zero-padded to 128 lanes: lane-dense, fused store.
    out_ref[...] = (jnp.dot(h.astype(w2_ref.dtype), w2_ref[...],
                            preferred_element_type=jnp.float32)
                    + b2_ref[...]).astype(out_ref.dtype)


def prepare_classifier_params(w1, b1, w2, b2, compute_dtype=jnp.bfloat16):
    """One-time weight preparation (hoisted out of the per-call hot path)."""
    h_in, h_mid = w1.shape
    n_out = w2.shape[1]
    w1c = w1.astype(compute_dtype)                                   # [768, 384]
    w2p = (jnp.zeros((h_mid, OUT_PAD), compute_dtype)
           .at[:, :n_out].set(w2.astype(compute_dtype)))             # [384, 128]
    b1p = b1.reshape(1, h_mid).astype(jnp.float32)                   # [1, 384]
    b2p = (jnp.zeros((1, OUT_PAD), jnp.float32)
           .at[:, :n_out].set(b2.reshape(1, -1).astype(jnp.float32)))  # [1, 128]
    return w1c, b1p, w2p, b2p


@functools.partial(jax.jit, static_argnames=("tile_m", "out_features"))
def bertsum_classifier(embeddings, w1c, b1p, w2p, b2p,
                       *, tile_m=TILE_M, out_features=2):
    """embeddings: [N, 768]; returns binary-class logits [N, out_features] f32."""
    n, h_in = embeddings.shape
    h_mid = w1c.shape[1]
    out_pad = w2p.shape[1]
    compute_dtype = w1c.dtype

    # Pad the row dim to a multiple of the tile so every grid step is full.
    n_tiles = pl.cdiv(n, tile_m)
    n_padded = n_tiles * tile_m
    x = embeddings.astype(compute_dtype)
    if n_padded != n:
        x = jnp.pad(x, ((0, n_padded - n), (0, 0)))

    out_padded = pl.pallas_call(
        _classifier_kernel,
        out_shape=jax.ShapeDtypeStruct((n_padded, out_pad), jnp.float32),
        grid=(n_tiles,),
        in_specs=[
            # Activations stream one row-tile per grid step.
            pl.BlockSpec((tile_m, h_in), lambda i: (i, 0)),
            # Weights / biases: constant index_map -> fetched once, VMEM-resident.
            pl.BlockSpec((h_in, h_mid), lambda i: (0, 0)),
            pl.BlockSpec((1, h_mid), lambda i: (0, 0)),
            pl.BlockSpec((h_mid, out_pad), lambda i: (0, 0)),
            pl.BlockSpec((1, out_pad), lambda i: (0, 0)),
        ],
        out_specs=pl.BlockSpec((tile_m, out_pad), lambda i: (i, 0)),
        compiler_params=pltpu.CompilerParams(
            dimension_semantics=("parallel",),
            vmem_limit_bytes=64 * 1024 * 1024,
        ),
    )(x, w1c, b1p, w2p, b2p)

    return out_padded[:n, :out_features]


def _init_linear(key, fan_in, fan_out, dtype=jnp.float32):
    """Deterministic init mimicking torch.nn.Linear (uniform +/- 1/sqrt(fan_in))."""
    kw, kb = jax.random.split(key)
    bound = 1.0 / jnp.sqrt(jnp.asarray(fan_in, dtype))
    w = jax.random.uniform(kw, (fan_in, fan_out), dtype, -bound, bound)
    b = jax.random.uniform(kb, (fan_out,), dtype, -bound, bound)
    return w, b


if __name__ == "__main__":
    key = jax.random.PRNGKey(0)
    k_emb, k_l1, k_l2 = jax.random.split(key, 3)

    N_SENTENCES = 8          # sentences in the "article" (small demo batch)
    BERT_SIZE = 768          # last_dim of the module
    HIDDEN = 384             # classifier hidden width
    N_CLASSES = 2

    # Stand-in for BERT CLS embeddings of each sentence head.
    embeddings = jax.random.normal(k_emb, (N_SENTENCES, BERT_SIZE), jnp.float32)

    # classifier = Linear(768, 384) -> LeakyReLU(0.1) -> Linear(384, 2)
    w1, b1 = _init_linear(k_l1, BERT_SIZE, HIDDEN)
    w2, b2 = _init_linear(k_l2, HIDDEN, N_CLASSES)

    # One-time weight preparation (bf16 cast + lane padding), outside hot path.
    w1c, b1p, w2p, b2p = prepare_classifier_params(w1, b1, w2, b2)

    logits = bertsum_classifier(embeddings, w1c, b1p, w2p, b2p)
    logits = jax.block_until_ready(logits)
    assert logits.shape == (N_SENTENCES, N_CLASSES)

    # Reference 1: bf16-matched numerics (same casts as the kernel).
    x_bf = embeddings.astype(jnp.bfloat16)
    h_bf = jnp.dot(x_bf, w1.astype(jnp.bfloat16),
                   preferred_element_type=jnp.float32) + b1
    h_bf = jnp.where(h_bf > 0, h_bf, 0.1 * h_bf)
    ref_bf = jnp.dot(h_bf.astype(jnp.bfloat16), w2.astype(jnp.bfloat16),
                     preferred_element_type=jnp.float32) + b2
    assert jnp.allclose(logits, ref_bf, atol=1e-2, rtol=1e-2)

    # Reference 2: full-f32 PyTorch-equivalent semantics (loose, bf16 inputs).
    h_ref = embeddings @ w1 + b1
    h_ref = jnp.where(h_ref > 0, h_ref, 0.1 * h_ref)
    ref = h_ref @ w2 + b2
    assert jnp.allclose(logits, ref, atol=5e-2, rtol=5e-2)

    print("KERNEL_OK")
</pallas_src>

<mosaic_0001>
module attributes {stable_mosaic.version = 11 : i64} {
  func.func @_classifier_kernel(%arg0: i32, %arg1: memref<256x768xbf16, #tpu.memory_space<vmem>>, %arg2: memref<768x384xbf16, #tpu.memory_space<vmem>>, %arg3: memref<1x384xf32, #tpu.memory_space<vmem>>, %arg4: memref<384x128xbf16, #tpu.memory_space<vmem>>, %arg5: memref<1x128xf32, #tpu.memory_space<vmem>>, %arg6: memref<256x128xf32, #tpu.memory_space<vmem>>) attributes {dimension_semantics = [#tpu.dimension_semantics<parallel>], iteration_bounds = array<i64: 1>, scalar_prefetch = 0 : i64, scratch_operands = 0 : i64, tpu.core_type = #tpu.core_type<tc>, window_params = [{transform_indices = @transform_0, window_bounds = array<i64: 256, 768>}, {pipeline_mode = #tpu.pipeline_mode<synchronous>, transform_indices = @transform_1, window_bounds = array<i64: 768, 384>}, {pipeline_mode = #tpu.pipeline_mode<synchronous>, transform_indices = @transform_2, window_bounds = array<i64: 1, 384>}, {pipeline_mode = #tpu.pipeline_mode<synchronous>, transform_indices = @transform_3, window_bounds = array<i64: 384, 128>}, {pipeline_mode = #tpu.pipeline_mode<synchronous>, transform_indices = @transform_4, window_bounds = array<i64: 1, 128>}, {transform_indices = @transform_5, window_bounds = array<i64: 256, 128>}]} {
    %c0 = arith.constant 0 : index
    %c0_0 = arith.constant 0 : index
    %0 = vector.load %arg1[%c0, %c0_0] : memref<256x768xbf16, #tpu.memory_space<vmem>>, vector<256x768xbf16>
    %c0_1 = arith.constant 0 : index
    %c0_2 = arith.constant 0 : index
    %1 = vector.load %arg2[%c0_1, %c0_2] : memref<768x384xbf16, #tpu.memory_space<vmem>>, vector<768x384xbf16>
    %cst = arith.constant dense<0.000000e+00> : vector<256x384xf32>
    %2 = tpu.matmul %0, %1, %cst {dimension_numbers = #tpu.dot_dimension_numbers<[1], [0], [0], [1], [0, 0, 1, 1], [], []>} : vector<256x768xbf16>, vector<768x384xbf16>, vector<256x384xf32> -> vector<256x384xf32>
    %c0_3 = arith.constant 0 : index
    %c0_4 = arith.constant 0 : index
    %3 = vector.load %arg3[%c0_3, %c0_4] : memref<1x384xf32, #tpu.memory_space<vmem>>, vector<1x384xf32>
    %4 = vector.broadcast %3 : vector<1x384xf32> to vector<256x384xf32>
    %5 = arith.addf %2, %4 : vector<256x384xf32>
    %cst_5 = arith.constant 0.000000e+00 : f32
    %6 = vector.broadcast %cst_5 : f32 to vector<256x384xf32>
    %7 = arith.cmpf ogt, %5, %6 : vector<256x384xf32>
    %cst_6 = arith.constant 1.000000e-01 : f32
    %8 = vector.broadcast %cst_6 : f32 to vector<256x384xf32>
    %9 = arith.mulf %8, %5 : vector<256x384xf32>
    %10 = arith.select %7, %5, %9 : vector<256x384xi1>, vector<256x384xf32>
    %11 = arith.truncf %10 : vector<256x384xf32> to vector<256x384xbf16>
    %c0_7 = arith.constant 0 : index
    %c0_8 = arith.constant 0 : index
    %12 = vector.load %arg4[%c0_7, %c0_8] : memref<384x128xbf16, #tpu.memory_space<vmem>>, vector<384x128xbf16>
    %cst_9 = arith.constant dense<0.000000e+00> : vector<256x128xf32>
    %13 = tpu.matmul %11, %12, %cst_9 {dimension_numbers = #tpu.dot_dimension_numbers<[1], [0], [0], [1], [0, 0, 1, 1], [], []>} : vector<256x384xbf16>, vector<384x128xbf16>, vector<256x128xf32> -> vector<256x128xf32>
    %c0_10 = arith.constant 0 : index
    %c0_11 = arith.constant 0 : index
    %14 = vector.load %arg5[%c0_10, %c0_11] : memref<1x128xf32, #tpu.memory_space<vmem>>, vector<1x128xf32>
    %15 = vector.broadcast %14 : vector<1x128xf32> to vector<256x128xf32>
    %16 = arith.addf %13, %15 : vector<256x128xf32>
    %c0_12 = arith.constant 0 : index
    %c0_13 = arith.constant 0 : index
    %17 = vector.load %arg6[%c0_12, %c0_13] : memref<256x128xf32, #tpu.memory_space<vmem>>, vector<256x128xf32>
    tpu.vector_store %arg6[%c0_12, %c0_13], %16 {strides = array<i32>} : memref<256x128xf32, #tpu.memory_space<vmem>>, vector<256x128xf32>,
    return
  }
  func.func @transform_0(%arg0: i32) -> (i32, i32) {
    %c0_i32 = arith.constant 0 : i32
    %c0_i32_0 = arith.constant 0 : i32
    return %arg0, %c0_i32 : i32, i32
  }
  func.func @transform_1(%arg0: i32) -> (i32, i32) {
    %c0_i32 = arith.constant 0 : i32
    %c0_i32_0 = arith.constant 0 : i32
    %c0_i32_1 = arith.constant 0 : i32
    return %c0_i32, %c0_i32_0 : i32, i32
  }
  func.func @transform_2(%arg0: i32) -> (i32, i32) {
    %c0_i32 = arith.constant 0 : i32
    %c0_i32_0 = arith.constant 0 : i32
    %c0_i32_1 = arith.constant 0 : i32
    return %c0_i32, %c0_i32_0 : i32, i32
  }
  func.func @transform_3(%arg0: i32) -> (i32, i32) {
    %c0_i32 = arith.constant 0 : i32
    %c0_i32_0 = arith.constant 0 : i32
    %c0_i32_1 = arith.constant 0 : i32
    return %c0_i32, %c0_i32_0 : i32, i32
  }
  func.func @transform_4(%arg0: i32) -> (i32, i32) {
    %c0_i32 = arith.constant 0 : i32
    %c0_i32_0 = arith.constant 0 : i32
    %c0_i32_1 = arith.constant 0 : i32
    return %c0_i32, %c0_i32_0 : i32, i32
  }
  func.func @transform_5(%arg0: i32) -> (i32, i32) {
    %c0_i32 = arith.constant 0 : i32
    %c0_i32_0 = arith.constant 0 : i32
    return %arg0, %c0_i32 : i32, i32
  }
}

</mosaic_0001>

<bundles_post_ra>
// kernel: bertsum_classifier.1
= control target key start
LH: loop header
LB: loop body
LE: loop exit
PB: predicated region body
PF: predicated region fallthrough
CT: control target
= control target key end

     0   :  { %10 = vsyncpa [#allocation3], 0  ;;  %s5394_s21 = smov [#allocation2]   ;;  %s5395_s23 = smov 192   ;;  %s7662_s0 = inlined_call_operand.vmem [shape: bf16[256,768], index: 0, kind: input, shape index: {}]   ;;  %s7663_s1 = inlined_call_operand.hbm [shape: bf16[768,384], index: 1, kind: input, shape index: {}]   ;;  %s7664_s2 = inlined_call_operand.vmem [shape: f32[1,384], index: 2, kind: input, shape index: {}]   ;;  %s7665_s3 = inlined_call_operand.vmem [shape: bf16[384,128], index: 3, kind: input, shape index: {}]   ;;  %s7666_s4 = inlined_call_operand.vmem [shape: f32[1,128], index: 4, kind: input, shape index: {}]   ;;  %s7667_s5 = inlined_call_operand.vmem [shape: f32[256,128], index: 5, kind: output, shape index: {}]  }
   0x1   :  { %s17_s20 = sshll.u32 %s7663_s1, 4  ;;  %s19_s22 = sshll.u32 %s5394_s21, 4  ;;  %s18_s20 = int_to_ptr.hbm [resolvable:$true] %s17_s20  ;;  %s20_s22 = int_to_ptr.vmem [resolvable:$true] %s19_s22 }
   0x2   :  { %s5396_s24 = smov 12  }
   0x3   :  { %25 = dma.hbm_to_vmem [thread:$0]  %s18_s20, 18432, %s20_s22, [#allocation3], %s5395_s23, %s5395_s23, %s5396_s24  }
   0x4   :  { %5392 = dma.done.wait [#allocation3], 18432  }
   0x5   :  { %5393 = vsyncadd [#allocation3], 4294948864  ;;  %v4488_v0 = vld [vmem:[#allocation2 + $0xa8] sm:$0xf]  ;;  %v5192_v1 = vld [vmem:[#allocation2 + $0xb0] sm:$0xf0] }
   0x6   :  { %v4476_v2 = vld [vmem:[#allocation2 + $0x90] sm:$0xf]  ;;  %v4489_v3 = vor.u32 %v5192_v1, %v4488_v0  ;;  %v5189_v4 = vld [vmem:[#allocation2 + $0x98] sm:$0xf0]  ;;  %v4464_v6 = vld [vmem:[#allocation2 + $0x78] sm:$0xf] }
   0x7   :  { %v4477_v5 = vor.u32 %v5189_v4, %v4476_v2  ;;  %v5186_v7 = vld [vmem:[#allocation2 + $0x80] sm:$0xf0]  ;;  %v4452_v9 = vld [vmem:[#allocation2 + $0x60] sm:$0xf]  ;;  %v5183_v10 = vld [vmem:[#allocation2 + $0x68] sm:$0xf0] }
   0x8   :  { %5338 = vmatpush.bf16.msra.mxu1 %v4489_v3  ;;  %5339 = vmatpush.bf16.msra.mxu2 %v4489_v3  ;;  %v4465_v8 = vor.u32 %v5186_v7, %v4464_v6  ;;  %v4453_v11 = vor.u32 %v5183_v10, %v4452_v9  ;;  %v4440_v12 = vld [vmem:[#allocation2 + $0x48] sm:$0xf]  ;;  %v5180_v13 = vld [vmem:[#allocation2 + $0x50] sm:$0xf0]  ;;  %v4428_v15 = vld [vmem:[#allocation2 + $0x30] sm:$0xf] }
   0x9   :  { %5340 = vmatpush.bf16.msra.mxu3 %v4489_v3  ;;  %1580 = vmatpush.bf16.msra.mxu0 %v4489_v3  ;;  %v4441_v14 = vor.u32 %v5180_v13, %v4440_v12  ;;  %v5177_v16 = vld [vmem:[#allocation2 + $0x38] sm:$0xf0]  ;;  %v4416_v18 = vld [vmem:[#allocation2 + $0x18] sm:$0xf]  ;;  %v5174_v19 = vld [vmem:[#allocation2 + $0x20] sm:$0xf0] }
   0xa   :  { %v4429_v17 = vor.u32 %v5177_v16, %v4428_v15  ;;  %v4417_v20 = vor.u32 %v5174_v19, %v4416_v18  ;;  %v4404_v21 = vld [vmem:[#allocation2] sm:$0xf]  ;;  %v5171_v22 = vld [vmem:[#allocation2 + $0x8] sm:$0xf0]  ;;  %v4584_v23 = vld [vmem:[#allocation2 + $0x168] sm:$0xf] }
   0xb   :  { %v5216_v24 = vld [vmem:[#allocation2 + $0x170] sm:$0xf0]  ;;  %v4116_v25 = vld [vmem:[%s7662_s0 + $0xc0] sm:$0xf]  ;;  %v4405_v26 = vor.u32 %v5171_v22, %v4404_v21  ;;  %v5101_v27 = vld [vmem:[%s7662_s0 + $0xd4] sm:$0xf0] }
   0xc   :  { %5341 = vmatpush.bf16.msra.mxu1 %v4477_v5  ;;  %5342 = vmatpush.bf16.msra.mxu2 %v4477_v5  ;;  %v4212_v28 = vld [vmem:[%s7662_s0 + $0x180] sm:$0xf]  ;;  %v5125_v29 = vld [vmem:[%s7662_s0 + $0x194] sm:$0xf0]  ;;  %v4585_v32 = vor.u32 %v5216_v24, %v4584_v23  ;;  %v4572_v33 = vld [vmem:[#allocation2 + $0x150] sm:$0xf]  ;;  %v5454_v37 = vor.u32 %v5101_v27, %v4116_v25 }
   0xd   :  { %5343 = vmatpush.bf16.msra.mxu3 %v4477_v5  ;;  %1581 = vmatpush.bf16.msra.mxu0 %v4477_v5  ;;  %v4308_v30 = vld [vmem:[%s7662_s0 + $0x240] sm:$0xf]  ;;  %v5149_v31 = vld [vmem:[%s7662_s0 + $0x254] sm:$0xf0]  ;;  %v5213_v34 = vld [vmem:[#allocation2 + $0x158] sm:$0xf0]  ;;  %v5456_v38 = vor.u32 %v5125_v29, %v4212_v28 }
   0xe   :  { %v4020_v35 = vld [vmem:[%s7662_s0] sm:$0xf]  ;;  %v5077_v36 = vld [vmem:[%s7662_s0 + $0x14] sm:$0xf0]  ;;  %v5458_v39 = vor.u32 %v5149_v31, %v4308_v30  ;;  %v4573_v40 = vor.u32 %v5213_v34, %v4572_v33  ;;  %v5210_v43 = vld [vmem:[#allocation2 + $0x140] sm:$0xf0] }
   0xf   :  { %7877 = vst [vmem:[#allocation5_spill] sm:$0xff] %v5456_v38  ;;  %v5460_v41 = vor.u32 %v5077_v36, %v4020_v35  ;;  %v4560_v42 = vld [vmem:[#allocation2 + $0x138] sm:$0xf]  ;;  %v4680_v44 = vld [vmem:[#allocation2 + $0x228] sm:$0xf] }
  0x10   :  { %5344 = vmatpush.bf16.msra.mxu1 %v4465_v8  ;;  %5345 = vmatpush.bf16.msra.mxu2 %v4465_v8  ;;  %7878 = vst [vmem:[#allocation6_spill] sm:$0xff] %v5458_v39  ;;  %v5240_v45 = vld [vmem:[#allocation2 + $0x230] sm:$0xf0]  ;;  %v4776_v47 = vld [vmem:[#allocation2 + $0x2e8] sm:$0xf]  ;;  %v4561_v51 = vor.u32 %v5210_v43, %v4560_v42 }
  0x11   :  { %5346 = vmatpush.bf16.msra.mxu3 %v4465_v8  ;;  %1582 = vmatpush.bf16.msra.mxu0 %v4465_v8  ;;  %v4681_v46 = vor.u32 %v5240_v45, %v4680_v44  ;;  %v5264_v48 = vld [vmem:[#allocation2 + $0x2f0] sm:$0xf0]  ;;  %v4668_v50 = vld [vmem:[#allocation2 + $0x210] sm:$0xf]  ;;  %v5237_v52 = vld [vmem:[#allocation2 + $0x218] sm:$0xf0] }
  0x12   :  { %v4777_v49 = vor.u32 %v5264_v48, %v4776_v47  ;;  %v4764_v53 = vld [vmem:[#allocation2 + $0x2d0] sm:$0xf]  ;;  %v5261_v54 = vld [vmem:[#allocation2 + $0x2d8] sm:$0xf0]  ;;  %v4548_v55 = vld [vmem:[#allocation2 + $0x120] sm:$0xf]  ;;  %v4669_v57 = vor.u32 %v5237_v52, %v4668_v50 }
  0x13   :  { %v5207_v56 = vld [vmem:[#allocation2 + $0x128] sm:$0xf0]  ;;  %v4765_v58 = vor.u32 %v5261_v54, %v4764_v53  ;;  %v4656_v59 = vld [vmem:[#allocation2 + $0x1f8] sm:$0xf]  ;;  %v5234_v60 = vld [vmem:[#allocation2 + $0x200] sm:$0xf0] }
  0x14   :  { %5347 = vmatpush.bf16.msra.mxu1 %v4453_v11  ;;  %5348 = vmatpush.bf16.msra.mxu2 %v4453_v11  ;;  %v4752_v61 = vld [vmem:[#allocation2 + $0x2b8] sm:$0xf]  ;;  %v5258_v62 = vld [vmem:[#allocation2 + $0x2c0] sm:$0xf0]  ;;  %v4872_v63 = vld [vmem:[#allocation2 + $0x3a8] sm:$0xf]  ;;  %v4549_v0 = vor.u32 %v5207_v56, %v4548_v55  ;;  %v4657_v5 = vor.u32 %v5234_v60, %v4656_v59 }
  0x15   :  { %5349 = vmatpush.bf16.msra.mxu3 %v4453_v11  ;;  %1583 = vmatpush.bf16.msra.mxu0 %v4453_v11  ;;  %v4536_v1 = vld [vmem:[#allocation2 + $0x108] sm:$0xf]  ;;  %v5204_v2 = vld [vmem:[#allocation2 + $0x110] sm:$0xf0]  ;;  %v4140_v4 = vld [vmem:[%s7662_s0 + $0xf0] sm:$0xf]  ;;  %v4753_v6 = vor.u32 %v5258_v62, %v4752_v61 }
  0x16   :  { %v5288_v3 = vld [vmem:[#allocation2 + $0x3b0] sm:$0xf0]  ;;  %v4644_v8 = vld [vmem:[#allocation2 + $0x1e0] sm:$0xf]  ;;  %v5231_v9 = vld [vmem:[#allocation2 + $0x1e8] sm:$0xf0]  ;;  %v4537_v21 = vor.u32 %v5204_v2, %v4536_v1 }
  0x17   :  { %v4873_v7 = vor.u32 %v5288_v3, %v4872_v63  ;;  %v4860_v10 = vld [vmem:[#allocation2 + $0x390] sm:$0xf]  ;;  %v4740_v11 = vld [vmem:[#allocation2 + $0x2a0] sm:$0xf]  ;;  %v5255_v12 = vld [vmem:[#allocation2 + $0x2a8] sm:$0xf0]  ;;  %v4645_v25 = vor.u32 %v5231_v9, %v4644_v8 }
  0x18   :  { %5350 = vmatpush.bf16.msra.mxu1 %v4441_v14  ;;  %5351 = vmatpush.bf16.msra.mxu2 %v4441_v14  ;;  %v5285_v13 = vld [vmem:[#allocation2 + $0x398] sm:$0xf0]  ;;  %v4236_v15 = vld [vmem:[%s7662_s0 + $0x1b0] sm:$0xf]  ;;  %v5131_v16 = vld [vmem:[%s7662_s0 + $0x1c4] sm:$0xf0] }
  0x19   :  { %5352 = vmatpush.bf16.msra.mxu3 %v4441_v14  ;;  %1584 = vmatpush.bf16.msra.mxu0 %v4441_v14  ;;  %v5107_v14 = vld [vmem:[%s7662_s0 + $0x104] sm:$0xf0]  ;;  %v4332_v18 = vld [vmem:[%s7662_s0 + $0x270] sm:$0xf]  ;;  %v5201_v24 = vld [vmem:[#allocation2 + $0xf8] sm:$0xf0]  ;;  %v5492_v28 = vor.u32 %v5131_v16, %v4236_v15 }
  0x1a   :  { %v5155_v19 = vld [vmem:[%s7662_s0 + $0x284] sm:$0xf0]  ;;  %v4524_v23 = vld [vmem:[#allocation2 + $0xf0] sm:$0xf]  ;;  %v5490_v27 = vor.u32 %v5107_v14, %v4140_v4  ;;  %v5228_v33 = vld [vmem:[#allocation2 + $0x1d0] sm:$0xf0] }
  0x1b   :  { %v5083_v22 = vld [vmem:[%s7662_s0 + $0x44] sm:$0xf0]  ;;  %7880 = vst [vmem:[#allocation8_spill] sm:$0xff] %v5492_v28  ;;  %v5494_v29 = vor.u32 %v5155_v19, %v4332_v18  ;;  %v4525_v31 = vor.u32 %v5201_v24, %v4524_v23  ;;  %v5252_v36 = vld [vmem:[#allocation2 + $0x290] sm:$0xf0] }
  0x1c   :  { %5353 = vmatpush.bf16.msra.mxu1 %v4429_v17  ;;  %5354 = vmatpush.bf16.msra.mxu2 %v4429_v17  ;;  %7879 = vst [vmem:[#allocation7_spill] sm:$0xff] %v5490_v27  ;;  %v4728_v35 = vld [vmem:[#allocation2 + $0x288] sm:$0xf]  ;;  %v5198_v42 = vld [vmem:[#allocation2 + $0xe0] sm:$0xf0] }
  0x1d   :  { %5355 = vmatpush.bf16.msra.mxu3 %v4429_v17  ;;  %1585 = vmatpush.bf16.msra.mxu0 %v4429_v17  ;;  %v4861_v17 = vor.u32 %v5285_v13, %v4860_v10  ;;  %7881 = vst [vmem:[#allocation9_spill] sm:$0xff] %v5494_v29  ;;  %v4729_v43 = vor.u32 %v5252_v36, %v4728_v35  ;;  %v4848_v44 = vld [vmem:[#allocation2 + $0x378] sm:$0xf]  ;;  %v4620_v47 = vld [vmem:[#allocation2 + $0x1b0] sm:$0xf] }
  0x1e   :  { %v5225_v48 = vld [vmem:[#allocation2 + $0x1b8] sm:$0xf0]  ;;  %v4836_v53 = vld [vmem:[#allocation2 + $0x360] sm:$0xf]  ;;  %v5279_v55 = vld [vmem:[#allocation2 + $0x368] sm:$0xf0] }
  0x1f   :  { %v4621_v50 = vor.u32 %v5225_v48, %v4620_v47  ;;  %v5249_v52 = vld [vmem:[#allocation2 + $0x278] sm:$0xf0]  ;;  %v4500_v56 = vld [vmem:[#allocation2 + $0xc0] sm:$0xf]  ;;  %v4608_v59 = vld [vmem:[#allocation2 + $0x198] sm:$0xf] }
  0x20   :  { %5356 = vmatpush.bf16.msra.mxu1 %v4417_v20  ;;  %5357 = vmatpush.bf16.msra.mxu2 %v4417_v20  ;;  %v5222_v60 = vld [vmem:[#allocation2 + $0x1a0] sm:$0xf0]  ;;  %v4704_v61 = vld [vmem:[#allocation2 + $0x258] sm:$0xf]  ;;  %v4824_v4 = vld [vmem:[#allocation2 + $0x348] sm:$0xf] }
  0x21   :  { %5358 = vmatpush.bf16.msra.mxu3 %v4417_v20  ;;  %1586 = vmatpush.bf16.msra.mxu0 %v4417_v20  ;;  %v4044_v20 = vld [vmem:[%s7662_s0 + $0x30] sm:$0xf]  ;;  %v5246_v63 = vld [vmem:[#allocation2 + $0x260] sm:$0xf0]  ;;  %v5113_v1 = vld [vmem:[%s7662_s0 + $0x134] sm:$0xf0]  ;;  %v4609_v2 = vor.u32 %v5222_v60, %v4608_v59 }
  0x22   :  { %v5496_v30 = vor.u32 %v5083_v22, %v4044_v20  ;;  %v4705_v3 = vor.u32 %v5246_v63, %v4704_v61  ;;  %v4692_v8 = vld [vmem:[#allocation2 + $0x240] sm:$0xf]  ;;  %v5243_v9 = vld [vmem:[#allocation2 + $0x248] sm:$0xf0]  ;;  %v5161_v14 = vld [vmem:[%s7662_s0 + $0x2b4] sm:$0xf0] }
  0x23   :  { %v4260_v10 = vld [vmem:[%s7662_s0 + $0x1e0] sm:$0xf]  ;;  %v4812_v15 = vld [vmem:[#allocation2 + $0x330] sm:$0xf]  ;;  %v5273_v16 = vld [vmem:[#allocation2 + $0x338] sm:$0xf0]  ;;  %v4693_v20 = vor.u32 %v5243_v9, %v4692_v8 }
  0x24   :  { %5359 = vmatpush.bf16.msra.mxu1 %v4405_v26  ;;  %5360 = vmatpush.bf16.msra.mxu2 %v4405_v26  ;;  %v5089_v18 = vld [vmem:[%s7662_s0 + $0x74] sm:$0xf0]  ;;  %v4813_v24 = vor.u32 %v5273_v16, %v4812_v15  ;;  %v4788_v35 = vld [vmem:[#allocation2 + $0x300] sm:$0xf]  ;;  %v5267_v36 = vld [vmem:[#allocation2 + $0x308] sm:$0xf0] }
  0x25   :  { %5361 = vmatpush.bf16.msra.mxu3 %v4405_v26  ;;  %1587 = vmatpush.bf16.msra.mxu0 %v4405_v26  ;;  %v4741_v26 = vor.u32 %v5255_v12, %v4740_v11  ;;  %v5137_v11 = vld [vmem:[%s7662_s0 + $0x1f4] sm:$0xf0]  ;;  %v4356_v12 = vld [vmem:[%s7662_s0 + $0x2a0] sm:$0xf]  ;;  %v4380_v47 = vld [vmem:[%s7662_s0 + $0x2d0] sm:$0xf] }
  0x26   :  { %v5528_v22 = vor.u32 %v5137_v11, %v4260_v10  ;;  %v5530_v23 = vor.u32 %v5161_v14, %v4356_v12  ;;  %v5167_v48 = vld [vmem:[%s7662_s0 + $0x2e4] sm:$0xf0]  ;;  %v5075_v59 = vld [vmem:[%s7662_s0 + $0xc] sm:$0xf]  ;;  %v4030_v60 = vld [vmem:[%s7662_s0 + $0x20] sm:$0xf0] }
  0x27   :  { %1608 = vmatmul.bf16.vlgmr.msra.gmra.mxu1 %v5454_v37  ;;  %1628 = vmatmul.bf16.vlgmr.msra.gmra.mxu2 %v5456_v38  ;;  %v4036_v61 = vld [vmem:[%s7662_s0 + $0x10] sm:$0xf]  ;;  %v4052_v8 = vld [vmem:[%s7662_s0 + $0x38] sm:$0xf]  ;;  %v5081_v10 = vld [vmem:[%s7662_s0 + $0x3c] sm:$0xf] }
  0x28   :  { %1669 = vmatpush.bf16.msrb.mxu1 %v4585_v32  ;;  %1648 = vmatmul.bf16.vlgmr.msra.gmra.mxu3 %v5458_v39  ;;  %v4632_v32 = vld [vmem:[#allocation2 + $0x1c8] sm:$0xf]  ;;  %7883 = vst [vmem:[#allocation11_spill] sm:$0xff] %v5528_v22  ;;  %v5084_v9 = vld [vmem:[%s7662_s0 + $0x4c] sm:$0xf0] }
  0x29   :  { %1588 = vmatmul.bf16.vlgmr.msra.gmra.mxu0 %v5460_v41  ;;  %1758 = vmatpush.bf16.msrb.mxu2 %v4681_v46  ;;  %v4633_v34 = vor.u32 %v5228_v33, %v4632_v32  ;;  %v5282_v46 = vld [vmem:[#allocation2 + $0x380] sm:$0xf0]  ;;  %7884 = vst [vmem:[#allocation12_spill] sm:$0xff] %v5530_v23  ;;  %v4800_v32 = vld [vmem:[#allocation2 + $0x318] sm:$0xf]  ;;  %v5636_v15 = vor.u32 %v5084_v9, %v4052_v8 }
  0x2a   :  { %1847 = vmatpush.bf16.msrb.mxu3 %v4777_v49  ;;  %1936 = vmatpush.bf16.msrb.mxu0 %v4873_v7  ;;  %v4849_v49 = vor.u32 %v5282_v46, %v4848_v44  ;;  %v5219_v7 = vld [vmem:[#allocation2 + $0x188] sm:$0xf0]  ;;  %v5119_v44 = vld [vmem:[%s7662_s0 + $0x164] sm:$0xf0]  ;;  %v4054_v11 = vld [vmem:[%s7662_s0 + $0x50] sm:$0xf0] }
  0x2b   :  { %v5143_v46 = vld [vmem:[%s7662_s0 + $0x224] sm:$0xf0]  ;;  %v4060_v12 = vld [vmem:[%s7662_s0 + $0x40] sm:$0xf]  ;;  %7893 = vst [vmem:[#allocation21_spill] sm:$0xff] %v5636_v15  ;;  %v5638_v16 = vor.u32 %v5081_v10, %v4054_v11 }
  0x2c   :  { %1670 = vmatpush.bf16.msrb.mxu1 %v4573_v40  ;;  %v4512_v40 = vld [vmem:[#allocation2 + $0xd8] sm:$0xf]  ;;  %v4126_v8 = vld [vmem:[%s7662_s0 + $0xe0] sm:$0xf0]  ;;  %v4132_v9 = vld [vmem:[%s7662_s0 + $0xd0] sm:$0xf] }
  0x2d   :  { %1759 = vmatpush.bf16.msrb.mxu2 %v4669_v57  ;;  %v4513_v45 = vor.u32 %v5198_v42, %v4512_v40  ;;  %v5195_v57 = vld [vmem:[#allocation2 + $0xc8] sm:$0xf0]  ;;  %v4789_v42 = vor.u32 %v5267_v36, %v4788_v35  ;;  %7894 = vst [vmem:[#allocation22_spill] sm:$0xff] %v5638_v16  ;;  %v5103_v10 = vld [vmem:[%s7662_s0 + $0xe4] sm:$0xf0] }
  0x2e   :  { %1848 = vmatpush.bf16.msrb.mxu3 %v4765_v58  ;;  %1937 = vmatpush.bf16.msrb.mxu0 %v4861_v17  ;;  %v4837_v58 = vor.u32 %v5279_v55, %v4836_v53  ;;  %v4501_v62 = vor.u32 %v5195_v57, %v4500_v56  ;;  %v4068_v17 = vld [vmem:[%s7662_s0 + $0x60] sm:$0xf]  ;;  %v5566_v53 = vor.u32 %v5167_v48, %v4380_v47  ;;  %v5074_v55 = vld [vmem:[%s7662_s0 + $0x4] sm:$0xf]  ;;  %v4022_v56 = vld [vmem:[%s7662_s0 + $0x18] sm:$0xf0] }
  0x2f   :  { %v4028_v57 = vld [vmem:[%s7662_s0 + $0x8] sm:$0xf]  ;;  %v5598_v63 = vor.u32 %v5074_v55, %v4022_v56  ;;  %v4100_v47 = vld [vmem:[%s7662_s0 + $0x98] sm:$0xf]  ;;  %v5096_v48 = vld [vmem:[%s7662_s0 + $0xac] sm:$0xf0] }
  0x30   :  { %1671 = vmatpush.bf16.msrb.mxu1 %v4561_v51  ;;  %v4716_v51 = vld [vmem:[#allocation2 + $0x270] sm:$0xf]  ;;  %7887 = vst [vmem:[#allocation15_spill] sm:$0xff] %v5566_v53  ;;  %v4108_v55 = vld [vmem:[%s7662_s0 + $0xa0] sm:$0xf] }
  0x31   :  { %1760 = vmatpush.bf16.msrb.mxu2 %v4657_v5  ;;  %v4717_v54 = vor.u32 %v5249_v52, %v4716_v51  ;;  %v5276_v5 = vld [vmem:[#allocation2 + $0x350] sm:$0xf0]  ;;  %7888 = vst [vmem:[#allocation16_spill] sm:$0xff] %v5598_v63  ;;  %v5097_v56 = vld [vmem:[%s7662_s0 + $0xb4] sm:$0xf0] }
  0x32   :  { %1849 = vmatpush.bf16.msrb.mxu3 %v4753_v6  ;;  %1938 = vmatpush.bf16.msrb.mxu0 %v4849_v49  ;;  %v4596_v6 = vld [vmem:[#allocation2 + $0x180] sm:$0xf]  ;;  %v4825_v13 = vor.u32 %v5276_v5, %v4824_v4  ;;  %v4092_v49 = vld [vmem:[%s7662_s0 + $0x90] sm:$0xf]  ;;  %v5309_v4 = vld [vmem:[#allocation2 + $0x458] sm:$0xf0] }
  0x33   :  { %v4597_v19 = vor.u32 %v5219_v7, %v4596_v6  ;;  %v5080_v6 = vld [vmem:[%s7662_s0 + $0x34] sm:$0xf]  ;;  %v4046_v7 = vld [vmem:[%s7662_s0 + $0x48] sm:$0xf0] }
  0x34   :  { %1672 = vmatpush.bf16.msrb.mxu1 %v4549_v0  ;;  %v4164_v0 = vld [vmem:[%s7662_s0 + $0x120] sm:$0xf]  ;;  %v5634_v14 = vor.u32 %v5080_v6, %v4046_v7  ;;  %v5099_v7 = vld [vmem:[%s7662_s0 + $0xcc] sm:$0xf] }
  0x35   :  { %1761 = vmatpush.bf16.msrb.mxu2 %v4645_v25  ;;  %v5532_v25 = vor.u32 %v5089_v18, %v4068_v17  ;;  %v5086_v18 = vld [vmem:[%s7662_s0 + $0x64] sm:$0xf]  ;;  %v5239_v38 = vld [vmem:[#allocation2 + $0x22c] sm:$0xf] }
  0x36   :  { %1850 = vmatpush.bf16.msrb.mxu3 %v4741_v26  ;;  %1939 = vmatpush.bf16.msrb.mxu0 %v4837_v58  ;;  %v4968_v26 = vld [vmem:[#allocation2 + $0x468] sm:$0xf]  ;;  %v5078_v58 = vld [vmem:[%s7662_s0 + $0x1c] sm:$0xf0]  ;;  %7892 = vst [vmem:[#allocation20_spill] sm:$0xff] %v5634_v14 }
  0x37   :  { %1613 = vmatmul.bf16.gmra.mxu1 %v5490_v27  ;;  %1633 = vmatmul.bf16.gmra.mxu2 %v5492_v28 }
  0x38   :  { %1673 = vmatpush.bf16.msrb.mxu1 %v4537_v21  ;;  %1653 = vmatmul.bf16.gmra.mxu3 %v5494_v29  ;;  %v5526_v21 = vor.u32 %v5113_v1, %v4164_v0  ;;  %v5600_v0 = vor.u32 %v5078_v58, %v4028_v57  ;;  %v5602_v1 = vor.u32 %v5075_v59, %v4030_v60 }
  0x39   :  { %1593 = vmatmul.bf16.gmra.mxu0 %v5496_v30  ;;  %1762 = vmatpush.bf16.msrb.mxu2 %v4633_v34  ;;  %v5270_v34 = vld [vmem:[#allocation2 + $0x320] sm:$0xf0]  ;;  %v5708_v58 = vor.u32 %v5096_v48, %v4100_v47  ;;  %v5712_v60 = vor.u32 %v5097_v56, %v4108_v55  ;;  %v5104_v48 = vld [vmem:[%s7662_s0 + $0xf4] sm:$0xf]  ;;  %v5108_v55 = vld [vmem:[%s7662_s0 + $0x10c] sm:$0xf0] }
  0x3a   :  { %1851 = vmatpush.bf16.msrb.mxu3 %v4729_v43  ;;  %7882 = vst [vmem:[#allocation10_spill] sm:$0xff] %v5526_v21  ;;  %1940 = vmatpush.bf16.msrb.mxu0 %v4825_v13  ;;  %v4801_v40 = vor.u32 %v5270_v34, %v4800_v32  ;;  %v4188_v43 = vld [vmem:[%s7662_s0 + $0x150] sm:$0xf]  ;;  %v5085_v13 = vld [vmem:[%s7662_s0 + $0x54] sm:$0xf0] }
  0x3b   :  { %v5562_v51 = vor.u32 %v5119_v44, %v4188_v43  ;;  %7889 = vst [vmem:[#allocation17_spill] sm:$0xff] %v5600_v0  ;;  %v5640_v17 = vor.u32 %v5085_v13, %v4060_v12  ;;  %v4084_v32 = vld [vmem:[%s7662_s0 + $0x70] sm:$0xf]  ;;  %v5306_v43 = vld [vmem:[#allocation2 + $0x440] sm:$0xf0] }
  0x3c   :  { %1674 = vmatpush.bf16.msrb.mxu1 %v4525_v31  ;;  %v5312_v31 = vld [vmem:[#allocation2 + $0x470] sm:$0xf0]  ;;  %7890 = vst [vmem:[#allocation18_spill] sm:$0xff] %v5602_v1  ;;  %v5105_v56 = vld [vmem:[%s7662_s0 + $0xfc] sm:$0xf] }
  0x3d   :  { %1763 = vmatpush.bf16.msrb.mxu2 %v4621_v50  ;;  %v4969_v33 = vor.u32 %v5312_v31, %v4968_v26  ;;  %v5095_v50 = vld [vmem:[%s7662_s0 + $0xa4] sm:$0xf0]  ;;  %7885 = vst [vmem:[#allocation13_spill] sm:$0xff] %v5562_v51  ;;  %v5087_v26 = vld [vmem:[%s7662_s0 + $0x6c] sm:$0xf] }
  0x3e   :  { %1852 = vmatpush.bf16.msrb.mxu3 %v4717_v54  ;;  %1941 = vmatpush.bf16.msrb.mxu0 %v4813_v24  ;;  %v5568_v54 = vor.u32 %v5095_v50, %v4092_v49  ;;  %7895 = vst [vmem:[#allocation23_spill] sm:$0xff] %v5640_v17  ;;  %v5090_v24 = vld [vmem:[%s7662_s0 + $0x7c] sm:$0xf0]  ;;  %v4078_v31 = vld [vmem:[%s7662_s0 + $0x80] sm:$0xf0] }
  0x3f   :  { %v5674_v36 = vor.u32 %v5087_v26, %v4078_v31  ;;  %v5093_v49 = vld [vmem:[%s7662_s0 + $0x9c] sm:$0xf]  ;;  %v4102_v50 = vld [vmem:[%s7662_s0 + $0xb0] sm:$0xf0]  ;;  %7901 = vst [vmem:[#allocation29_spill] sm:$0xff] %v5708_v58 }
  0x40   :  { %1675 = vmatpush.bf16.msrb.mxu1 %v4513_v45  ;;  %v4284_v45 = vld [vmem:[%s7662_s0 + $0x210] sm:$0xf]  ;;  %v5710_v59 = vor.u32 %v5093_v49, %v4102_v50  ;;  %7903 = vst [vmem:[#allocation31_spill] sm:$0xff] %v5712_v60  ;;  %v4932_v26 = vld [vmem:[#allocation2 + $0x420] sm:$0xf] }
  0x41   :  { %1764 = vmatpush.bf16.msrb.mxu2 %v4609_v2  ;;  %v5564_v52 = vor.u32 %v5143_v46, %v4284_v45  ;;  %7898 = vst [vmem:[#allocation26_spill] sm:$0xff] %v5674_v36  ;;  %v5092_v45 = vld [vmem:[%s7662_s0 + $0x94] sm:$0xf]  ;;  %v4094_v46 = vld [vmem:[%s7662_s0 + $0xa8] sm:$0xf0] }
  0x42   :  { %1853 = vmatpush.bf16.msrb.mxu3 %v4705_v3  ;;  %1942 = vmatpush.bf16.msrb.mxu0 %v4801_v40  ;;  %v4956_v3 = vld [vmem:[#allocation2 + $0x450] sm:$0xf]  ;;  %v5706_v57 = vor.u32 %v5092_v45, %v4094_v46  ;;  %7902 = vst [vmem:[#allocation30_spill] sm:$0xff] %v5710_v59  ;;  %v5303_v31 = vld [vmem:[#allocation2 + $0x428] sm:$0xf0] }
  0x43   :  { %7886 = vst [vmem:[#allocation14_spill] sm:$0xff] %v5564_v52  ;;  %v4957_v5 = vor.u32 %v5309_v4, %v4956_v3  ;;  %v4118_v3 = vld [vmem:[%s7662_s0 + $0xd8] sm:$0xf0]  ;;  %v4124_v4 = vld [vmem:[%s7662_s0 + $0xc8] sm:$0xf] }
  0x44   :  { %1676 = vmatpush.bf16.msrb.mxu1 %v4501_v62  ;;  %v5079_v62 = vld [vmem:[%s7662_s0 + $0x24] sm:$0xf0]  ;;  %7900 = vst [vmem:[#allocation28_spill] sm:$0xff] %v5706_v57  ;;  %v4142_v49 = vld [vmem:[%s7662_s0 + $0x108] sm:$0xf0] }
  0x45   :  { %1765 = vmatpush.bf16.msrb.mxu2 %v4597_v19  ;;  %v5604_v2 = vor.u32 %v5079_v62, %v4036_v61  ;;  %v4070_v19 = vld [vmem:[%s7662_s0 + $0x78] sm:$0xf0]  ;;  %v324_v61 = vld [vmem:[%s7664_s2] sm:$0x7]  ;;  %v5098_v62 = vld [vmem:[%s7662_s0 + $0xc4] sm:$0xf] }
  0x46   :  { %1854 = vmatpush.bf16.msrb.mxu3 %v4693_v20  ;;  %1943 = vmatpush.bf16.msrb.mxu0 %v4789_v42  ;;  %v4076_v20 = vld [vmem:[%s7662_s0 + $0x68] sm:$0xf]  ;;  %v5670_v34 = vor.u32 %v5086_v18, %v4070_v19  ;;  %v4944_v42 = vld [vmem:[#allocation2 + $0x438] sm:$0xf]  ;;  %v5733_v6 = vperm.slane %v324_v61, 0  ;;  %v5747_v11 = vor.u32 %v5098_v62, %v4118_v3  ;;  %v5751_v18 = vor.u32 %v5099_v7, %v4126_v8 }
  0x47   :  { %1618 = vmatmul.bf16.gmra.mxu1 %v5526_v21  ;;  %1638 = vmatmul.bf16.gmra.mxu2 %v5528_v22  ;;  %7891 = vst [vmem:[#allocation19_spill] sm:$0xff] %v5604_v2  ;;  %v5672_v35 = vor.u32 %v5090_v24, %v4076_v20  ;;  %v4945_v44 = vor.u32 %v5306_v43, %v4944_v42  ;;  %v4148_v50 = vld [vmem:[%s7662_s0 + $0xf8] sm:$0xf]  ;;  %v4150_v61 = vld [vmem:[%s7662_s0 + $0x110] sm:$0xf0] }
  0x48   :  { %1658 = vmatmul.bf16.gmra.mxu3 %v5530_v23  ;;  %2025 = vmatpush.bf16.msra.mxu1 %v4969_v33  ;;  %v5091_v33 = vld [vmem:[%s7662_s0 + $0x84] sm:$0xf0]  ;;  %7896 = vst [vmem:[#allocation24_spill] sm:$0xff] %v5670_v34  ;;  %v5756_v20 = vor.u32 %v5103_v10, %v4132_v9  ;;  %v4156_v3 = vld [vmem:[%s7662_s0 + $0x100] sm:$0xf]  ;;  %v5802_v8 = vor.u32 %v5104_v48, %v4142_v49 }
  0x49   :  { %1598 = vmatmul.bf16.gmra.mxu0 %v5532_v25  ;;  %7897 = vst [vmem:[#allocation25_spill] sm:$0xff] %v5672_v35  ;;  %v5676_v40 = vor.u32 %v5091_v33, %v4084_v32  ;;  %v4933_v32 = vor.u32 %v5303_v31, %v4932_v26  ;;  %v5804_v9 = vor.u32 %v5108_v55, %v4148_v50 }
  0x4a   :  { %7904 = vst [vmem:[#allocation32_spill] sm:$0xff] %v5747_v11  ;;  %v5809_v26 = vor.u32 %v5105_v56, %v4150_v61  ;;  %v5110_v61 = vld [vmem:[%s7662_s0 + $0x124] sm:$0xf] }
  0x4b   :  { %7899 = vst [vmem:[#allocation27_spill] sm:$0xff] %v5676_v40 }
  0x4c   :  { %2026 = vmatpush.bf16.msra.mxu1 %v4957_v5  ;;  %v5102_v5 = vld [vmem:[%s7662_s0 + $0xdc] sm:$0xf0]  ;;  %7906 = vst [vmem:[#allocation34_spill] sm:$0xff] %v5751_v18 }
  0x4d   :  { %v5749_v12 = vor.u32 %v5102_v5, %v4124_v4  ;;  %7907 = vst [vmem:[#allocation35_spill] sm:$0xff] %v5756_v20  ;;  %v5109_v4 = vld [vmem:[%s7662_s0 + $0x114] sm:$0xf0] }
  0x4e   :  { %7908 = vst [vmem:[#allocation36_spill] sm:$0xff] %v5802_v8 }
  0x4f   :  { %7905 = vst [vmem:[#allocation33_spill] sm:$0xff] %v5749_v12 }
  0x50   :  { %2027 = vmatpush.bf16.msra.mxu1 %v4945_v44  ;;  %7909 = vst [vmem:[#allocation37_spill] sm:$0xff] %v5804_v9 }
  0x51   :  { %7911 = vst [vmem:[#allocation39_spill] sm:$0xff] %v5809_v26 }
  0x54   :  { %2028 = vmatpush.bf16.msra.mxu1 %v4933_v32  ;;  %v5814_v32 = vor.u32 %v5109_v4, %v4156_v3  ;;  %v4172_v3 = vld [vmem:[%s7662_s0 + $0x128] sm:$0xf]  ;;  %v5114_v4 = vld [vmem:[%s7662_s0 + $0x13c] sm:$0xf0] }
  0x56   :  { %7912 = vst [vmem:[#allocation40_spill] sm:$0xff] %v5814_v32 }
  0x57   :  { %1623 = vmatmul.bf16.gmra.mxu1 %v5562_v51  ;;  %1643 = vmatmul.bf16.gmra.mxu2 %v5564_v52  ;;  %v4682_v51 = vld [vmem:[#allocation2 + $0x234] sm:$0xf0] }
  0x58   :  { %1663 = vmatmul.bf16.gmra.mxu3 %v5566_v53 }
  0x59   :  { %1603 = vmatmul.bf16.gmra.mxu0 %v5568_v54 }
  0x67   :  { %1677 = vmatmul.bf16.vlgmr.msrb.gmra.mxu1 %v5598_v63  ;;  %1766 = vmatmul.bf16.vlgmr.msrb.gmra.mxu2 %v5600_v0 }
  0x68   :  { %1855 = vmatmul.bf16.vlgmr.msrb.gmra.mxu3 %v5602_v1  ;;  %v5121_v1 = vld [vmem:[%s7662_s0 + $0x174] sm:$0xf0] }
  0x69   :  { %1944 = vmatmul.bf16.vlgmr.msrb.gmra.mxu0 %v5604_v2 }
  0x77   :  { %1682 = vmatmul.bf16.gmra.mxu1 %v5634_v14  ;;  %1771 = vmatmul.bf16.gmra.mxu2 %v5636_v15 }
  0x78   :  { %1860 = vmatmul.bf16.gmra.mxu3 %v5638_v16 }
  0x79   :  { %1949 = vmatmul.bf16.gmra.mxu0 %v5640_v17 }
  0x87   :  { %1687 = vmatmul.bf16.gmra.mxu1 %v5670_v34  ;;  %1776 = vmatmul.bf16.gmra.mxu2 %v5672_v35 }
  0x88   :  { %1865 = vmatmul.bf16.gmra.mxu3 %v5674_v36 }
  0x89   :  { %1954 = vmatmul.bf16.gmra.mxu0 %v5676_v40 }
  0x97   :  { %1692 = vmatmul.bf16.gmra.mxu1 %v5706_v57  ;;  %1781 = vmatmul.bf16.gmra.mxu2 %v5708_v58 }
  0x98   :  { %1870 = vmatmul.bf16.gmra.mxu3 %v5710_v59 }
  0x99   :  { %1959 = vmatmul.bf16.gmra.mxu0 %v5712_v60 }
  0xa4   :  { %v1609_v13 = vpop.f32.mrf.mxu1 }
  0xa5   :  { %v5754_v19 = vadd.f32 %v1609_v13, %v5733_v6 }
  0xa6   :  { %v5758_v24 = vpop.f32.mrf.mxu0 }
  0xa7   :  { %1697 = vmatmul.bf16.gmra.mxu1 %v5747_v11  ;;  %1786 = vmatmul.bf16.gmra.mxu2 %v5749_v12 }
  0xa8   :  { %1875 = vmatmul.bf16.gmra.mxu3 %v5751_v18  ;;  %v5862_v18 = vor.u32 %v5114_v4, %v4172_v3 }
  0xa9   :  { %1964 = vmatmul.bf16.gmra.mxu0 %v5756_v20 }
  0xaa   :  { %v1629_v33 = vpop.f32.mrf.mxu2  ;;  %7915 = vst [vmem:[#allocation43_spill] sm:$0xff] %v5862_v18 }
  0xab   :  { %v5765_v42 = vadd.f32 %v1629_v33, %v5733_v6  ;;  %v1649_v43 = vpop.f32.mrf.mxu3 }
  0xac   :  { %v5768_v44 = vadd.f32 %v1649_v43, %v5733_v6  ;;  %v1611_v45 = vpop.f32.mrf.mxu1 }
  0xad   :  { %v5771_v46 = vadd.f32 %v1611_v45, %v5733_v6 }
  0xae   :  { %v5773_v47 = vpop.f32.mrf.mxu0 }
  0xb2   :  { %v1631_v62 = vpop.f32.mrf.mxu2 }
  0xb3   :  { %v5800_v5 = vadd.f32 %v1631_v62, %v5733_v6  ;;  %v1651_v7 = vpop.f32.mrf.mxu3  ;;  %v4166_v62 = vld [vmem:[%s7662_s0 + $0x138] sm:$0xf0] }
  0xb4   :  { %v5807_v10 = vadd.f32 %v1651_v7, %v5733_v6  ;;  %v1614_v13 = vpop.f32.mrf.mxu1  ;;  %v5111_v7 = vld [vmem:[%s7662_s0 + $0x12c] sm:$0xf]  ;;  %v5860_v20 = vor.u32 %v5110_v61, %v4166_v62  ;;  %v4920_v61 = vld [vmem:[#allocation2 + $0x408] sm:$0xf]  ;;  %v5300_v62 = vld [vmem:[#allocation2 + $0x410] sm:$0xf0] }
  0xb5   :  { %v5812_v31 = vadd.f32 %v1614_v13, %v5733_v6  ;;  %v4174_v13 = vld [vmem:[%s7662_s0 + $0x140] sm:$0xf0] }
  0xb6   :  { %7910 = vst [vmem:[#allocation38_spill] sm:$0xff] %v5807_v10  ;;  %v5816_v33 = vpop.f32.mrf.mxu0  ;;  %v5867_v40 = vor.u32 %v5111_v7, %v4174_v13 }
  0xb7   :  { %1702 = vmatmul.bf16.gmra.mxu1 %v5802_v8  ;;  %1791 = vmatmul.bf16.gmra.mxu2 %v5804_v9  ;;  %7914 = vst [vmem:[#allocation42_spill] sm:$0xff] %v5860_v20  ;;  %v4670_v8 = vld [vmem:[#allocation2 + $0x21c] sm:$0xf0] }
  0xb8   :  { %1880 = vmatmul.bf16.gmra.mxu3 %v5809_v26  ;;  %7917 = vst [vmem:[#allocation45_spill] sm:$0xff] %v5867_v40 }
  0xb9   :  { %1969 = vmatmul.bf16.gmra.mxu0 %v5814_v32 }
  0xba   :  { %v1634_v43 = vpop.f32.mrf.mxu2 }
  0xbb   :  { %v5823_v45 = vadd.f32 %v1634_v43, %v5733_v6  ;;  %v1654_v48 = vpop.f32.mrf.mxu3 }
  0xbc   :  { %v5826_v49 = vadd.f32 %v1654_v48, %v5733_v6  ;;  %v1616_v50 = vpop.f32.mrf.mxu1  ;;  %v4180_v48 = vld [vmem:[%s7662_s0 + $0x130] sm:$0xf] }
  0xbd   :  { %v5829_v55 = vadd.f32 %v1616_v50, %v5733_v6  ;;  %v5115_v50 = vld [vmem:[%s7662_s0 + $0x144] sm:$0xf0] }
  0xbe   :  { %7913 = vst [vmem:[#allocation41_spill] sm:$0xff] %v5826_v49  ;;  %v5831_v56 = vpop.f32.mrf.mxu0  ;;  %v5872_v17 = vor.u32 %v5115_v50, %v4180_v48  ;;  %v5191_v48 = vld [vmem:[#allocation2 + $0xac] sm:$0xf]  ;;  %v4490_v50 = vld [vmem:[#allocation2 + $0xb4] sm:$0xf0] }
  0xc0   :  { %7918 = vst [vmem:[#allocation46_spill] sm:$0xff] %v5872_v17 }
  0xc2   :  { %v1636_v43 = vpop.f32.mrf.mxu2 }
  0xc3   :  { %v5858_v32 = vadd.f32 %v1636_v43, %v5733_v6  ;;  %v1656_v26 = vpop.f32.mrf.mxu3 }
  0xc4   :  { %v5865_v60 = vadd.f32 %v1656_v26, %v5733_v6  ;;  %v1619_v59 = vpop.f32.mrf.mxu1  ;;  %v4921_v26 = vor.u32 %v5300_v62, %v4920_v61  ;;  %v4586_v61 = vld [vmem:[#allocation2 + $0x174] sm:$0xf0]  ;;  %v5116_v62 = vld [vmem:[%s7662_s0 + $0x154] sm:$0xf] }
  0xc5   :  { %v5870_v36 = vadd.f32 %v1619_v59, %v5733_v6 }
  0xc6   :  { %7916 = vst [vmem:[#allocation44_spill] sm:$0xff] %v5865_v60  ;;  %v5874_v16 = vpop.f32.mrf.mxu0  ;;  %2029 = vmatpush.bf16.msra.mxu1 %v4921_v26  ;;  %v4190_v26 = vld [vmem:[%s7662_s0 + $0x168] sm:$0xf0] }
  0xc7   :  { %1707 = vmatmul.bf16.gmra.mxu1 %v5860_v20  ;;  %1796 = vmatmul.bf16.gmra.mxu2 %v5862_v18  ;;  %v5918_v23 = vor.u32 %v5116_v62, %v4190_v26  ;;  %v4685_v18 = vor.u32 %v5239_v38, %v4682_v51 }
  0xc8   :  { %1885 = vmatmul.bf16.gmra.mxu3 %v5867_v40  ;;  %v5215_v40 = vld [vmem:[#allocation2 + $0x16c] sm:$0xf] }
  0xc9   :  { %1974 = vmatmul.bf16.gmra.mxu0 %v5872_v17  ;;  %v4493_v17 = vor.u32 %v5191_v48, %v4490_v50  ;;  %v5117_v48 = vld [vmem:[%s7662_s0 + $0x15c] sm:$0xf]  ;;  %7920 = vst [vmem:[#allocation48_spill] sm:$0xff] %v5918_v23 }
  0xca   :  { %v1639_v3 = vpop.f32.mrf.mxu2  ;;  %2292 = vmatpush.bf16.msra.mxu0 %v4685_v18  ;;  %v5122_v18 = vld [vmem:[%s7662_s0 + $0x184] sm:$0xf] }
  0xcb   :  { %v5881_v4 = vadd.f32 %v1639_v3, %v5733_v6  ;;  %v1659_v59 = vpop.f32.mrf.mxu3  ;;  %v4589_v3 = vor.u32 %v5215_v40, %v4586_v61  ;;  %2114 = vmatpush.bf16.msra.mxu2 %v4493_v17  ;;  %v4198_v40 = vld [vmem:[%s7662_s0 + $0x170] sm:$0xf0]  ;;  %v4204_v61 = vld [vmem:[%s7662_s0 + $0x160] sm:$0xf] }
  0xcc   :  { %v5884_v7 = vadd.f32 %v1659_v59, %v5733_v6  ;;  %v1621_v13 = vpop.f32.mrf.mxu1  ;;  %v4196_v59 = vld [vmem:[%s7662_s0 + $0x158] sm:$0xf]  ;;  %v5925_v52 = vor.u32 %v5117_v48, %v4198_v40  ;;  %v5930_v28 = vor.u32 %v5121_v1, %v4204_v61  ;;  %v4220_v48 = vld [vmem:[%s7662_s0 + $0x188] sm:$0xf]  ;;  %v5126_v40 = vld [vmem:[%s7662_s0 + $0x19c] sm:$0xf0]  ;;  %v1590_v61 = vadd.f32 %v5758_v24, %v5733_v6 }
  0xcd   :  { %v5887_v43 = vadd.f32 %v1621_v13, %v5733_v6  ;;  %v5120_v13 = vld [vmem:[%s7662_s0 + $0x16c] sm:$0xf0]  ;;  %2203 = vmatpush.bf16.msra.mxu3 %v4589_v3 }
  0xce   :  { %7919 = vst [vmem:[#allocation47_spill] sm:$0xff] %v5884_v7  ;;  %v5889_v2 = vpop.f32.mrf.mxu0  ;;  %v5920_v29 = vor.u32 %v5120_v13, %v4196_v59  ;;  %v4214_v13 = vld [vmem:[%s7662_s0 + $0x198] sm:$0xf0] }
  0xcf   :  { %7923 = vst [vmem:[#allocation51_spill] sm:$0xff] %v5925_v52 }
  0xd0   :  { %7921 = vst [vmem:[#allocation49_spill] sm:$0xff] %v5920_v29 }
  0xd1   :  { %7924 = vst [vmem:[#allocation52_spill] sm:$0xff] %v5930_v28 }
  0xd2   :  { %v1641_v50 = vpop.f32.mrf.mxu2 }
  0xd3   :  { %v5916_v17 = vadd.f32 %v1641_v50, %v5733_v6  ;;  %v1661_v53 = vpop.f32.mrf.mxu3 }
  0xd4   :  { %v5923_v39 = vadd.f32 %v1661_v53, %v5733_v6  ;;  %v1624_v3 = vpop.f32.mrf.mxu1 }
  0xd5   :  { %v5928_v22 = vadd.f32 %v1624_v3, %v5733_v6  ;;  %v5123_v3 = vld [vmem:[%s7662_s0 + $0x18c] sm:$0xf] }
  0xd6   :  { %7922 = vst [vmem:[#allocation50_spill] sm:$0xff] %v5923_v39  ;;  %v5932_v50 = vpop.f32.mrf.mxu0 }
  0xd7   :  { %1712 = vmatmul.bf16.gmra.mxu1 %v5918_v23  ;;  %1801 = vmatmul.bf16.gmra.mxu2 %v5920_v29  ;;  %v5978_v29 = vor.u32 %v5122_v18, %v4214_v13  ;;  %v5980_v23 = vor.u32 %v5126_v40, %v4220_v48  ;;  %v4908_v18 = vld [vmem:[#allocation2 + $0x3f0] sm:$0xf]  ;;  %v5297_v13 = vld [vmem:[#allocation2 + $0x3f8] sm:$0xf0]  ;;  %v1592_v48 = vadd.f32 %v5773_v47, %v5733_v6  ;;  %v5128_v47 = vld [vmem:[%s7662_s0 + $0x1b4] sm:$0xf] }
  0xd8   :  { %1890 = vmatmul.bf16.gmra.mxu3 %v5925_v52  ;;  %v4909_v40 = vor.u32 %v5297_v13, %v4908_v18  ;;  %v4244_v13 = vld [vmem:[%s7662_s0 + $0x1b8] sm:$0xf] }
  0xd9   :  { %1979 = vmatmul.bf16.gmra.mxu0 %v5930_v28  ;;  %v5127_v28 = vld [vmem:[%s7662_s0 + $0x1a4] sm:$0xf0]  ;;  %7926 = vst [vmem:[#allocation54_spill] sm:$0xff] %v5978_v29 }
  0xda   :  { %v1644_v53 = vpop.f32.mrf.mxu2  ;;  %7927 = vst [vmem:[#allocation55_spill] sm:$0xff] %v5980_v23  ;;  %2030 = vmatpush.bf16.msra.mxu1 %v4909_v40 }
  0xdb   :  { %v5939_v62 = vadd.f32 %v1644_v53, %v5733_v6  ;;  %v1664_v1 = vpop.f32.mrf.mxu3  ;;  %v4222_v53 = vld [vmem:[%s7662_s0 + $0x1a0] sm:$0xf0] }
  0xdc   :  { %v5942_v26 = vadd.f32 %v1664_v1, %v5733_v6  ;;  %v1626_v59 = vpop.f32.mrf.mxu1  ;;  %v5985_v20 = vor.u32 %v5123_v3, %v4222_v53 }
  0xdd   :  { %v5945_v38 = vadd.f32 %v1626_v59, %v5733_v6  ;;  %v4228_v59 = vld [vmem:[%s7662_s0 + $0x190] sm:$0xf] }
  0xde   :  { %7925 = vst [vmem:[#allocation53_spill] sm:$0xff] %v5942_v26  ;;  %v5947_v51 = vpop.f32.mrf.mxu0  ;;  %v5987_v7 = vor.u32 %v5127_v28, %v4228_v59  ;;  %v5188_v59 = vld [vmem:[#allocation2 + $0x94] sm:$0xf] }
  0xdf   :  { %7929 = vst [vmem:[#allocation57_spill] sm:$0xff] %v5985_v20 }
  0xe0   :  { %7930 = vst [vmem:[#allocation58_spill] sm:$0xff] %v5987_v7 }
  0xe2   :  { %v1646_v1 = vpop.f32.mrf.mxu2 }
  0xe3   :  { %v5976_v52 = vadd.f32 %v1646_v1, %v5733_v6  ;;  %v1666_v24 = vpop.f32.mrf.mxu3 }
  0xe4   :  { %v5983_v26 = vadd.f32 %v1666_v24, %v5733_v6  ;;  %v1678_v39 = vpop.f32.mrf.mxu1  ;;  %v4478_v24 = vld [vmem:[#allocation2 + $0x9c] sm:$0xf0] }
  0xe5   :  { %v1679_v21 = vadd.f32 %v1678_v39, %v1590_v61 }
  0xe6   :  { %7928 = vst [vmem:[#allocation56_spill] sm:$0xff] %v5983_v26  ;;  %v1945_v60 = vpop.f32.mrf.mxu0  ;;  %v4574_v26 = vld [vmem:[#allocation2 + $0x15c] sm:$0xf0] }
  0xe7   :  { %1717 = vmatmul.bf16.gmra.mxu1 %v5978_v29  ;;  %1806 = vmatmul.bf16.gmra.mxu2 %v5980_v23  ;;  %v5212_v23 = vld [vmem:[#allocation2 + $0x154] sm:$0xf] }
  0xe8   :  { %1895 = vmatmul.bf16.gmra.mxu3 %v5985_v20  ;;  %v4481_v20 = vor.u32 %v5188_v59, %v4478_v24  ;;  %v4577_v18 = vor.u32 %v5212_v23, %v4574_v26  ;;  %v5129_v23 = vld [vmem:[%s7662_s0 + $0x1bc] sm:$0xf]  ;;  %v4246_v26 = vld [vmem:[%s7662_s0 + $0x1d0] sm:$0xf0] }
  0xe9   :  { %1984 = vmatmul.bf16.gmra.mxu0 %v5987_v7  ;;  %v6027_v59 = vor.u32 %v5129_v23, %v4246_v26  ;;  %v5134_v23 = vld [vmem:[%s7662_s0 + $0x1e4] sm:$0xf]  ;;  %v5138_v26 = vld [vmem:[%s7662_s0 + $0x1fc] sm:$0xf0] }
  0xea   :  { %v1767_v3 = vpop.f32.mrf.mxu2  ;;  %2115 = vmatpush.bf16.msra.mxu2 %v4481_v20  ;;  %2204 = vmatpush.bf16.msra.mxu3 %v4577_v18  ;;  %v5133_v20 = vld [vmem:[%s7662_s0 + $0x1d4] sm:$0xf0] }
  0xeb   :  { %v1768_v53 = vadd.f32 %v1767_v3, %v1679_v21  ;;  %v1856_v39 = vpop.f32.mrf.mxu3  ;;  %v4238_v21 = vld [vmem:[%s7662_s0 + $0x1c8] sm:$0xf0]  ;;  %v4252_v3 = vld [vmem:[%s7662_s0 + $0x1c0] sm:$0xf]  ;;  %7934 = vst [vmem:[#allocation62_spill] sm:$0xff] %v6027_v59 }
  0xec   :  { %v1680_v28 = vpop.f32.mrf.mxu1  ;;  %v6029_v7 = vor.u32 %v5133_v20, %v4252_v3  ;;  %v4270_v3 = vld [vmem:[%s7662_s0 + $0x200] sm:$0xf0] }
  0xed   :  { %v1857_v61 = vadd.f32 %v1856_v39, %v1768_v53  ;;  %v1681_v1 = vadd.f32 %v1680_v28, %v1592_v48  ;;  %v5132_v48 = vld [vmem:[%s7662_s0 + $0x1cc] sm:$0xf0]  ;;  %v6023_v39 = vor.u32 %v5128_v47, %v4238_v21 }
  0xee   :  { %v1947_v29 = vpop.f32.mrf.mxu0  ;;  %v6025_v28 = vor.u32 %v5132_v48, %v4244_v13  ;;  %7935 = vst [vmem:[#allocation63_spill] sm:$0xff] %v6029_v7 }
  0xef   :  { %v5995_v9 = vadd.f32 %v1945_v60, %v1857_v61  ;;  %v1595_v60 = vadd.f32 %v5816_v33, %v5733_v6  ;;  %7932 = vst [vmem:[#allocation60_spill] sm:$0xff] %v6023_v39 }
  0xf0   :  { %7933 = vst [vmem:[#allocation61_spill] sm:$0xff] %v6025_v28 }
  0xf1   :  { %7931 = vst [vmem:[#allocation59_spill] sm:$0xff] %v5995_v9  ;;  %v5236_v9 = vld [vmem:[#allocation2 + $0x214] sm:$0xf] }
  0xf2   :  { %v1769_v40 = vpop.f32.mrf.mxu2  ;;  %v4673_v49 = vor.u32 %v5236_v9, %v4670_v8 }
  0xf3   :  { %v1770_v53 = vadd.f32 %v1769_v40, %v1681_v1  ;;  %v1858_v33 = vpop.f32.mrf.mxu3  ;;  %v1597_v1 = vadd.f32 %v5831_v56, %v5733_v6  ;;  %v4268_v56 = vld [vmem:[%s7662_s0 + $0x1e8] sm:$0xf]  ;;  %v5135_v40 = vld [vmem:[%s7662_s0 + $0x1ec] sm:$0xf] }
  0xf4   :  { %v1683_v61 = vpop.f32.mrf.mxu1  ;;  %2293 = vmatpush.bf16.msra.mxu0 %v4673_v49  ;;  %v4262_v49 = vld [vmem:[%s7662_s0 + $0x1f8] sm:$0xf0] }
  0xf5   :  { %v1859_v24 = vadd.f32 %v1858_v33, %v1770_v53  ;;  %v1684_v18 = vadd.f32 %v1683_v61, %v1595_v60  ;;  %v4276_v53 = vld [vmem:[%s7662_s0 + $0x1f0] sm:$0xf]  ;;  %v5139_v33 = vld [vmem:[%s7662_s0 + $0x204] sm:$0xf0] }
  0xf6   :  { %v1950_v27 = vpop.f32.mrf.mxu0 }
  0xf7   :  { %v6031_v10 = vadd.f32 %v1947_v29, %v1859_v24  ;;  %1722 = vmatmul.bf16.gmra.mxu1 %v6023_v39  ;;  %1811 = vmatmul.bf16.gmra.mxu2 %v6025_v28 }
  0xf8   :  { %1900 = vmatmul.bf16.gmra.mxu3 %v6027_v59  ;;  %v5233_v59 = vld [vmem:[#allocation2 + $0x1fc] sm:$0xf] }
  0xf9   :  { %1989 = vmatmul.bf16.gmra.mxu0 %v6029_v7 }
  0xfa   :  { %v1772_v47 = vpop.f32.mrf.mxu2 }
  0xfb   :  { %v1773_v21 = vadd.f32 %v1772_v47, %v1684_v18  ;;  %v1861_v13 = vpop.f32.mrf.mxu3  ;;  %v6069_v18 = vor.u32 %v5138_v26, %v4268_v56  ;;  %v6071_v47 = vor.u32 %v5135_v40, %v4270_v3 }
  0xfc   :  { %v1685_v48 = vpop.f32.mrf.mxu1 }
  0xfd   :  { %v1862_v60 = vadd.f32 %v1861_v13, %v1773_v21  ;;  %v1686_v8 = vadd.f32 %v1685_v48, %v1597_v1  ;;  %7937 = vst [vmem:[#allocation65_spill] sm:$0xff] %v6069_v18  ;;  %v6073_v48 = vor.u32 %v5139_v33, %v4276_v53  ;;  %v5185_v53 = vld [vmem:[#allocation2 + $0x7c] sm:$0xf]  ;;  %v4466_v33 = vld [vmem:[#allocation2 + $0x84] sm:$0xf0] }
  0xfe   :  { %v1952_v29 = vpop.f32.mrf.mxu0  ;;  %7938 = vst [vmem:[#allocation66_spill] sm:$0xff] %v6071_v47 }
  0xff   :  { %v6039_v9 = vadd.f32 %v1950_v27, %v1862_v60  ;;  %v1600_v27 = vadd.f32 %v5874_v16, %v5733_v6  ;;  %v6067_v16 = vor.u32 %v5134_v23, %v4262_v49  ;;  %7939 = vst [vmem:[#allocation67_spill] sm:$0xff] %v6073_v48  ;;  %v5294_v23 = vld [vmem:[#allocation2 + $0x3e0] sm:$0xf0]  ;;  %v1602_v49 = vadd.f32 %v5889_v2, %v5733_v6  ;;  %v5140_v2 = vld [vmem:[%s7662_s0 + $0x214] sm:$0xf] }
 0x101   :  { %7936 = vst [vmem:[#allocation64_spill] sm:$0xff] %v6067_v16 }
 0x102   :  { %v1774_v20 = vpop.f32.mrf.mxu2 }
 0x103   :  { %v1775_v61 = vadd.f32 %v1774_v20, %v1686_v8  ;;  %v1863_v24 = vpop.f32.mrf.mxu3  ;;  %v4896_v8 = vld [vmem:[#allocation2 + $0x3d8] sm:$0xf] }
 0x104   :  { %v1688_v1 = vpop.f32.mrf.mxu1  ;;  %v4897_v56 = vor.u32 %v5294_v23, %v4896_v8  ;;  %v4292_v23 = vld [vmem:[%s7662_s0 + $0x218] sm:$0xf] }
 0x105   :  { %v1864_v21 = vadd.f32 %v1863_v24, %v1775_v61  ;;  %v1689_v13 = vadd.f32 %v1688_v1, %v1600_v27  ;;  %v5209_v61 = vld [vmem:[#allocation2 + $0x13c] sm:$0xf]  ;;  %v4469_v1 = vor.u32 %v5185_v53, %v4466_v33 }
 0x106   :  { %v1955_v60 = vpop.f32.mrf.mxu0  ;;  %2031 = vmatpush.bf16.msra.mxu1 %v4897_v56  ;;  %v5141_v56 = vld [vmem:[%s7662_s0 + $0x21c] sm:$0xf] }
 0x107   :  { %v6075_v7 = vadd.f32 %v1952_v29, %v1864_v21  ;;  %1727 = vmatmul.bf16.gmra.mxu1 %v6067_v16  ;;  %1816 = vmatmul.bf16.gmra.mxu2 %v6069_v18  ;;  %v4562_v21 = vld [vmem:[#allocation2 + $0x144] sm:$0xf0] }
 0x108   :  { %1905 = vmatmul.bf16.gmra.mxu3 %v6071_v47  ;;  %v4565_v8 = vor.u32 %v5209_v61, %v4562_v21  ;;  %2116 = vmatpush.bf16.msra.mxu2 %v4469_v1  ;;  %v4658_v18 = vld [vmem:[#allocation2 + $0x204] sm:$0xf0] }
 0x109   :  { %7940 = vst [vmem:[#allocation68_spill] sm:$0xff] %v6075_v7  ;;  %1994 = vmatmul.bf16.gmra.mxu0 %v6073_v48 }
 0x10a   :  { %v1777_v26 = vpop.f32.mrf.mxu2  ;;  %2205 = vmatpush.bf16.msra.mxu3 %v4565_v8 }
 0x10b   :  { %v1778_v27 = vadd.f32 %v1777_v26, %v1689_v13  ;;  %v1866_v40 = vpop.f32.mrf.mxu3  ;;  %v4286_v13 = vld [vmem:[%s7662_s0 + $0x228] sm:$0xf0]  ;;  %v4294_v26 = vld [vmem:[%s7662_s0 + $0x230] sm:$0xf0] }
 0x10c   :  { %v1690_v29 = vpop.f32.mrf.mxu1  ;;  %v6111_v53 = vor.u32 %v5140_v2, %v4286_v13  ;;  %v6115_v1 = vor.u32 %v5141_v56, %v4294_v26  ;;  %v5146_v56 = vld [vmem:[%s7662_s0 + $0x244] sm:$0xf] }
 0x10d   :  { %v1867_v3 = vadd.f32 %v1866_v40, %v1778_v27  ;;  %v1691_v20 = vadd.f32 %v1690_v29, %v1602_v49  ;;  %v5144_v49 = vld [vmem:[%s7662_s0 + $0x22c] sm:$0xf0]  ;;  %v4300_v40 = vld [vmem:[%s7662_s0 + $0x220] sm:$0xf]  ;;  %v5145_v29 = vld [vmem:[%s7662_s0 + $0x234] sm:$0xf0] }
 0x10e   :  { %v1957_v24 = vpop.f32.mrf.mxu0  ;;  %7942 = vst [vmem:[#allocation70_spill] sm:$0xff] %v6111_v53  ;;  %v6113_v33 = vor.u32 %v5144_v49, %v4292_v23  ;;  %v6117_v48 = vor.u32 %v5145_v29, %v4300_v40  ;;  %v4318_v26 = vld [vmem:[%s7662_s0 + $0x260] sm:$0xf0]  ;;  %v4324_v40 = vld [vmem:[%s7662_s0 + $0x250] sm:$0xf] }
 0x10f   :  { %v6083_v47 = vadd.f32 %v1955_v60, %v1867_v3  ;;  %v1605_v60 = vadd.f32 %v5932_v50, %v5733_v6  ;;  %7944 = vst [vmem:[#allocation72_spill] sm:$0xff] %v6115_v1  ;;  %v5151_v29 = vld [vmem:[%s7662_s0 + $0x264] sm:$0xf0] }
 0x110   :  { %7943 = vst [vmem:[#allocation71_spill] sm:$0xff] %v6113_v33 }
 0x111   :  { %7941 = vst [vmem:[#allocation69_spill] sm:$0xff] %v6083_v47  ;;  %v4661_v47 = vor.u32 %v5233_v59, %v4658_v18 }
 0x112   :  { %v1779_v27 = vpop.f32.mrf.mxu2  ;;  %7945 = vst [vmem:[#allocation73_spill] sm:$0xff] %v6117_v48 }
 0x113   :  { %v1780_v3 = vadd.f32 %v1779_v27, %v1691_v20  ;;  %v1868_v50 = vpop.f32.mrf.mxu3  ;;  %2294 = vmatpush.bf16.msra.mxu0 %v4661_v47  ;;  %v1607_v20 = vadd.f32 %v5947_v51, %v5733_v6  ;;  %v4310_v47 = vld [vmem:[%s7662_s0 + $0x258] sm:$0xf0]  ;;  %v4316_v6 = vld [vmem:[%s7662_s0 + $0x248] sm:$0xf]  ;;  %v5150_v51 = vld [vmem:[%s7662_s0 + $0x25c] sm:$0xf0] }
 0x114   :  { %v1693_v61 = vpop.f32.mrf.mxu1 }
 0x115   :  { %v1869_v21 = vadd.f32 %v1868_v50, %v1780_v3  ;;  %v1694_v8 = vadd.f32 %v1693_v61, %v1605_v60  ;;  %v6153_v61 = vor.u32 %v5146_v56, %v4310_v47  ;;  %v5291_v56 = vld [vmem:[#allocation2 + $0x3c8] sm:$0xf0] }
 0x116   :  { %v1960_v16 = vpop.f32.mrf.mxu0 }
 0x117   :  { %v6119_v7 = vadd.f32 %v1957_v24, %v1869_v21  ;;  %1732 = vmatmul.bf16.gmra.mxu1 %v6111_v53  ;;  %1821 = vmatmul.bf16.gmra.mxu2 %v6113_v33  ;;  %7946 = vst [vmem:[#allocation74_spill] sm:$0xff] %v6153_v61  ;;  %v6155_v21 = vor.u32 %v5150_v51, %v4316_v6 }
 0x118   :  { %1910 = vmatmul.bf16.gmra.mxu3 %v6115_v1  ;;  %v4646_v1 = vld [vmem:[#allocation2 + $0x1ec] sm:$0xf0] }
 0x119   :  { %1999 = vmatmul.bf16.gmra.mxu0 %v6117_v48  ;;  %7947 = vst [vmem:[#allocation75_spill] sm:$0xff] %v6155_v21  ;;  %v5230_v48 = vld [vmem:[#allocation2 + $0x1e4] sm:$0xf] }
 0x11a   :  { %v1782_v2 = vpop.f32.mrf.mxu2 }
 0x11b   :  { %v1783_v13 = vadd.f32 %v1782_v2, %v1694_v8  ;;  %v1871_v23 = vpop.f32.mrf.mxu3 }
 0x11c   :  { %v1695_v49 = vpop.f32.mrf.mxu1 }
 0x11d   :  { %v1872_v60 = vadd.f32 %v1871_v23, %v1783_v13  ;;  %v1696_v59 = vadd.f32 %v1695_v49, %v1607_v20  ;;  %v6160_v23 = vor.u32 %v5151_v29, %v4324_v40  ;;  %v4454_v40 = vld [vmem:[#allocation2 + $0x6c] sm:$0xf0]  ;;  %v5206_v29 = vld [vmem:[#allocation2 + $0x124] sm:$0xf] }
 0x11e   :  { %v1962_v18 = vpop.f32.mrf.mxu0 }
 0x11f   :  { %v6127_v24 = vadd.f32 %v1960_v16, %v1872_v60  ;;  %v5147_v16 = vld [vmem:[%s7662_s0 + $0x24c] sm:$0xf]  ;;  %7949 = vst [vmem:[#allocation77_spill] sm:$0xff] %v6160_v23 }
 0x120   :  { %v6157_v20 = vor.u32 %v5147_v16, %v4318_v26 }
 0x122   :  { %v1784_v27 = vpop.f32.mrf.mxu2  ;;  %7948 = vst [vmem:[#allocation76_spill] sm:$0xff] %v6157_v20 }
 0x123   :  { %v1785_v3 = vadd.f32 %v1784_v27, %v1696_v59  ;;  %v1873_v50 = vpop.f32.mrf.mxu3  ;;  %v4884_v59 = vld [vmem:[#allocation2 + $0x3c0] sm:$0xf]  ;;  %v5182_v27 = vld [vmem:[#allocation2 + $0x64] sm:$0xf] }
 0x124   :  { %v1698_v8 = vpop.f32.mrf.mxu1  ;;  %v4885_v47 = vor.u32 %v5291_v56, %v4884_v59  ;;  %v5152_v59 = vld [vmem:[%s7662_s0 + $0x274] sm:$0xf] }
 0x125   :  { %v1874_v2 = vadd.f32 %v1873_v50, %v1785_v3  ;;  %v1699_v13 = vadd.f32 %v1698_v8, %v5754_v19  ;;  %v4457_v50 = vor.u32 %v5182_v27, %v4454_v40  ;;  %v4550_v8 = vld [vmem:[#allocation2 + $0x12c] sm:$0xf0] }
 0x126   :  { %v1965_v49 = vpop.f32.mrf.mxu0  ;;  %2032 = vmatpush.bf16.msra.mxu1 %v4885_v47  ;;  %v4553_v56 = vor.u32 %v5206_v29, %v4550_v8  ;;  %v5156_v47 = vld [vmem:[%s7662_s0 + $0x28c] sm:$0xf0] }
 0x127   :  { %v6162_v60 = vadd.f32 %v1962_v18, %v1874_v2  ;;  %1737 = vmatmul.bf16.gmra.mxu1 %v6153_v61  ;;  %1826 = vmatmul.bf16.gmra.mxu2 %v6155_v21  ;;  %v4649_v61 = vor.u32 %v5230_v48, %v4646_v1  ;;  %v4430_v48 = vld [vmem:[#allocation2 + $0x3c] sm:$0xf0]  ;;  %v5200_v1 = vld [vmem:[#allocation2 + $0xf4] sm:$0xf] }
 0x128   :  { %1915 = vmatmul.bf16.gmra.mxu3 %v6157_v20  ;;  %2117 = vmatpush.bf16.msra.mxu2 %v4457_v50 }
 0x129   :  { %7950 = vst [vmem:[#allocation78_spill] sm:$0xff] %v6162_v60  ;;  %2004 = vmatmul.bf16.gmra.mxu0 %v6160_v23  ;;  %2206 = vmatpush.bf16.msra.mxu3 %v4553_v56  ;;  %v5224_v60 = vld [vmem:[#allocation2 + $0x1b4] sm:$0xf] }
 0x12a   :  { %v1787_v6 = vpop.f32.mrf.mxu2  ;;  %2295 = vmatpush.bf16.msra.mxu0 %v4649_v61 }
 0x12b   :  { %v1788_v51 = vadd.f32 %v1787_v6, %v1699_v13  ;;  %v1876_v16 = vpop.f32.mrf.mxu3  ;;  %v4334_v13 = vld [vmem:[%s7662_s0 + $0x288] sm:$0xf0]  ;;  %v4342_v6 = vld [vmem:[%s7662_s0 + $0x290] sm:$0xf0] }
 0x12c   :  { %v1700_v19 = vpop.f32.mrf.mxu1  ;;  %v6195_v40 = vor.u32 %v5152_v59, %v4334_v13  ;;  %v4442_v59 = vld [vmem:[#allocation2 + $0x54] sm:$0xf0]  ;;  %v5203_v13 = vld [vmem:[#allocation2 + $0x10c] sm:$0xf] }
 0x12d   :  { %v1877_v26 = vadd.f32 %v1876_v16, %v1788_v51  ;;  %v1701_v18 = vadd.f32 %v1700_v19, %v5771_v46  ;;  %v4340_v46 = vld [vmem:[%s7662_s0 + $0x278] sm:$0xf]  ;;  %v4348_v16 = vld [vmem:[%s7662_s0 + $0x280] sm:$0xf] }
 0x12e   :  { %v1967_v3 = vpop.f32.mrf.mxu0  ;;  %v5157_v19 = vld [vmem:[%s7662_s0 + $0x294] sm:$0xf0]  ;;  %7952 = vst [vmem:[#allocation80_spill] sm:$0xff] %v6195_v40  ;;  %v6197_v29 = vor.u32 %v5156_v47, %v4340_v46 }
 0x12f   :  { %v6169_v2 = vadd.f32 %v1965_v49, %v1877_v26  ;;  %v5153_v49 = vld [vmem:[%s7662_s0 + $0x27c] sm:$0xf]  ;;  %v6202_v20 = vor.u32 %v5157_v19, %v4348_v16  ;;  %v4538_v46 = vld [vmem:[#allocation2 + $0x114] sm:$0xf0]  ;;  %v4526_v16 = vld [vmem:[#allocation2 + $0xfc] sm:$0xf0] }
 0x130   :  { %7953 = vst [vmem:[#allocation81_spill] sm:$0xff] %v6197_v29  ;;  %v6199_v8 = vor.u32 %v5153_v49, %v4342_v6  ;;  %v4541_v47 = vor.u32 %v5203_v13, %v4538_v46  ;;  %v5176_v6 = vld [vmem:[#allocation2 + $0x34] sm:$0xf]  ;;  %v4418_v13 = vld [vmem:[#allocation2 + $0x24] sm:$0xf0] }
 0x131   :  { %7951 = vst [vmem:[#allocation79_spill] sm:$0xff] %v6169_v2  ;;  %v5197_v46 = vld [vmem:[#allocation2 + $0xdc] sm:$0xf] }
 0x132   :  { %v1789_v51 = vpop.f32.mrf.mxu2  ;;  %7954 = vst [vmem:[#allocation82_spill] sm:$0xff] %v6199_v8  ;;  %2207 = vmatpush.bf16.msra.mxu3 %v4541_v47  ;;  %v4364_v47 = vld [vmem:[%s7662_s0 + $0x2a8] sm:$0xf] }
 0x133   :  { %v1790_v26 = vadd.f32 %v1789_v51, %v1701_v18  ;;  %v1878_v27 = vpop.f32.mrf.mxu3  ;;  %7955 = vst [vmem:[#allocation83_spill] sm:$0xff] %v6202_v20  ;;  %v5179_v18 = vld [vmem:[#allocation2 + $0x4c] sm:$0xf]  ;;  %v4433_v51 = vor.u32 %v5176_v6, %v4430_v48  ;;  %v4514_v6 = vld [vmem:[#allocation2 + $0xe4] sm:$0xf0] }
 0x134   :  { %v1703_v50 = vpop.f32.mrf.mxu1  ;;  %v5159_v48 = vld [vmem:[%s7662_s0 + $0x2ac] sm:$0xf] }
 0x135   :  { %v1879_v23 = vadd.f32 %v1878_v27, %v1790_v26  ;;  %v1704_v56 = vadd.f32 %v1703_v50, %v5812_v31  ;;  %v4445_v31 = vor.u32 %v5179_v18, %v4442_v59  ;;  %v4529_v26 = vor.u32 %v5200_v1, %v4526_v16  ;;  %v5158_v18 = vld [vmem:[%s7662_s0 + $0x2a4] sm:$0xf]  ;;  %v4358_v59 = vld [vmem:[%s7662_s0 + $0x2b8] sm:$0xf0]  ;;  %v4372_v16 = vld [vmem:[%s7662_s0 + $0x2b0] sm:$0xf] }
 0x136   :  { %v1970_v21 = vpop.f32.mrf.mxu0  ;;  %v4517_v1 = vor.u32 %v5197_v46, %v4514_v6 }
 0x137   :  { %v6204_v2 = vadd.f32 %v1967_v3, %v1879_v23  ;;  %1742 = vmatmul.bf16.gmra.mxu1 %v6195_v40  ;;  %1831 = vmatmul.bf16.gmra.mxu2 %v6197_v29  ;;  %v4502_v29 = vld [vmem:[#allocation2 + $0xcc] sm:$0xf0] }
 0x138   :  { %1920 = vmatmul.bf16.gmra.mxu3 %v6199_v8  ;;  %2118 = vmatpush.bf16.msra.mxu2 %v4445_v31 }
 0x139   :  { %7956 = vst [vmem:[#allocation84_spill] sm:$0xff] %v6204_v2  ;;  %2009 = vmatmul.bf16.gmra.mxu0 %v6202_v20  ;;  %2208 = vmatpush.bf16.msra.mxu3 %v4529_v26  ;;  %v6237_v20 = vor.u32 %v5158_v18, %v4358_v59 }
 0x13a   :  { %v1792_v49 = vpop.f32.mrf.mxu2 }
 0x13b   :  { %v1793_v23 = vadd.f32 %v1792_v49, %v1704_v56  ;;  %v1881_v3 = vpop.f32.mrf.mxu3  ;;  %v5173_v56 = vld [vmem:[#allocation2 + $0x1c] sm:$0xf]  ;;  %7958 = vst [vmem:[#allocation86_spill] sm:$0xff] %v6237_v20 }
 0x13c   :  { %v1705_v19 = vpop.f32.mrf.mxu1  ;;  %2119 = vmatpush.bf16.msra.mxu2 %v4433_v51  ;;  %v4421_v49 = vor.u32 %v5173_v56, %v4418_v13  ;;  %v5163_v51 = vld [vmem:[%s7662_s0 + $0x2c4] sm:$0xf0]  ;;  %v4406_v56 = vld [vmem:[#allocation2 + $0xc] sm:$0xf0]  ;;  %v5194_v13 = vld [vmem:[#allocation2 + $0xc4] sm:$0xf] }
 0x13d   :  { %v1882_v61 = vadd.f32 %v1881_v3, %v1793_v23  ;;  %v1706_v27 = vadd.f32 %v1705_v19, %v5829_v55  ;;  %v5162_v55 = vld [vmem:[%s7662_s0 + $0x2bc] sm:$0xf0]  ;;  %v5227_v23 = vld [vmem:[#allocation2 + $0x1cc] sm:$0xf]  ;;  %v4366_v3 = vld [vmem:[%s7662_s0 + $0x2c0] sm:$0xf0]  ;;  %2209 = vmatpush.bf16.msra.mxu3 %v4517_v1  ;;  %v6244_v53 = vor.u32 %v5163_v51, %v4372_v16 }
 0x13e   :  { %v1972_v50 = vpop.f32.mrf.mxu0  ;;  %v6239_v8 = vor.u32 %v5162_v55, %v4364_v47  ;;  %v5263_v55 = vld [vmem:[#allocation2 + $0x2ec] sm:$0xf]  ;;  %v5218_v16 = vld [vmem:[#allocation2 + $0x184] sm:$0xf]  ;;  %v4598_v51 = vld [vmem:[#allocation2 + $0x18c] sm:$0xf0] }
 0x13f   :  { %v6217_v31 = vadd.f32 %v1970_v21, %v1882_v61  ;;  %v4634_v21 = vld [vmem:[#allocation2 + $0x1d4] sm:$0xf0]  ;;  %v5170_v61 = vld [vmem:[#allocation2 + $0x4] sm:$0xf]  ;;  %7961 = vst [vmem:[#allocation89_spill] sm:$0xff] %v6244_v53 }
 0x140   :  { %v4637_v19 = vor.u32 %v5227_v23, %v4634_v21  ;;  %7959 = vst [vmem:[#allocation87_spill] sm:$0xff] %v6239_v8  ;;  %2120 = vmatpush.bf16.msra.mxu2 %v4421_v49  ;;  %v4409_v2 = vor.u32 %v5170_v61, %v4406_v56  ;;  %v4622_v23 = vld [vmem:[#allocation2 + $0x1bc] sm:$0xf0]  ;;  %v4778_v49 = vld [vmem:[#allocation2 + $0x2f4] sm:$0xf0]  ;;  %v4601_v61 = vor.u32 %v5218_v16, %v4598_v51 }
 0x141   :  { %7957 = vst [vmem:[#allocation85_spill] sm:$0xff] %v6217_v31  ;;  %v6241_v31 = vor.u32 %v5159_v48, %v4366_v3  ;;  %v4625_v59 = vor.u32 %v5224_v60, %v4622_v23  ;;  %v5221_v48 = vld [vmem:[#allocation2 + $0x19c] sm:$0xf]  ;;  %v4390_v23 = vld [vmem:[%s7662_s0 + $0x2f0] sm:$0xf0] }
 0x142   :  { %v1794_v26 = vpop.f32.mrf.mxu2  ;;  %2296 = vmatpush.bf16.msra.mxu0 %v4637_v19 }
 0x143   :  { %v1795_v46 = vadd.f32 %v1794_v26, %v1706_v27  ;;  %v1883_v6 = vpop.f32.mrf.mxu3  ;;  %7960 = vst [vmem:[#allocation88_spill] sm:$0xff] %v6241_v31  ;;  %v4505_v27 = vor.u32 %v5194_v13, %v4502_v29  ;;  %v5164_v13 = vld [vmem:[%s7662_s0 + $0x2d4] sm:$0xf] }
 0x144   :  { %v1708_v40 = vpop.f32.mrf.mxu1  ;;  %2121 = vmatpush.bf16.msra.mxu2 %v4409_v2 }
 0x145   :  { %v1884_v21 = vadd.f32 %v1883_v6, %v1795_v46  ;;  %v1709_v33 = vadd.f32 %v1708_v40, %v5870_v36  ;;  %2210 = vmatpush.bf16.msra.mxu3 %v4505_v27  ;;  %v4781_v36 = vor.u32 %v5263_v55, %v4778_v49  ;;  %v4610_v40 = vld [vmem:[#allocation2 + $0x1a4] sm:$0xf0]  ;;  %v4388_v46 = vld [vmem:[%s7662_s0 + $0x2d8] sm:$0xf]  ;;  %v5165_v6 = vld [vmem:[%s7662_s0 + $0x2dc] sm:$0xf] }
 0x146   :  { %v1975_v18 = vpop.f32.mrf.mxu0  ;;  %2297 = vmatpush.bf16.msra.mxu0 %v4625_v59  ;;  %v4613_v60 = vor.u32 %v5221_v48, %v4610_v40  ;;  %v4396_v27 = vld [vmem:[%s7662_s0 + $0x2e0] sm:$0xf]  ;;  %v6283_v40 = vor.u32 %v5165_v6, %v4390_v23 }
 0x147   :  { %v6246_v47 = vadd.f32 %v1972_v50, %v1884_v21  ;;  %1747 = vmatmul.bf16.gmra.mxu1 %v6237_v20  ;;  %1836 = vmatmul.bf16.gmra.mxu2 %v6239_v8 }
 0x148   :  { %1925 = vmatmul.bf16.gmra.mxu3 %v6241_v31  ;;  %2381 = vmatpush.bf16.msrb.mxu1 %v4781_v36  ;;  %7964 = vst [vmem:[#allocation92_spill] sm:$0xff] %v6283_v40 }
 0x149   :  { %2014 = vmatmul.bf16.gmra.mxu0 %v6244_v53  ;;  %v7987_v53 = vld [vmem:[#allocation48_spill] sm:$0xff] }
 0x14a   :  { %v1797_v29 = vpop.f32.mrf.mxu2  ;;  %2298 = vmatpush.bf16.msra.mxu0 %v4613_v60 }
 0x14b   :  { %v1798_v50 = vadd.f32 %v1797_v29, %v1709_v33  ;;  %v1886_v1 = vpop.f32.mrf.mxu3  ;;  %v4382_v33 = vld [vmem:[%s7662_s0 + $0x2e8] sm:$0xf0] }
 0x14c   :  { %v1710_v3 = vpop.f32.mrf.mxu1  ;;  %v6279_v49 = vor.u32 %v5164_v13, %v4382_v33 }
 0x14d   :  { %v1887_v19 = vadd.f32 %v1886_v1, %v1798_v50  ;;  %v1711_v2 = vadd.f32 %v1710_v3, %v5887_v43  ;;  %v5168_v43 = vld [vmem:[%s7662_s0 + $0x2ec] sm:$0xf0] }
 0x14e   :  { %v1977_v26 = vpop.f32.mrf.mxu0  ;;  %2299 = vmatpush.bf16.msra.mxu0 %v4601_v61  ;;  %7962 = vst [vmem:[#allocation90_spill] sm:$0xff] %v6279_v49  ;;  %v6281_v48 = vor.u32 %v5168_v43, %v4388_v46  ;;  %v4038_v46 = vld [vmem:[%s7662_s0 + $0x28] sm:$0xf0] }
 0x14f   :  { %v6253_v56 = vadd.f32 %v1975_v18, %v1887_v19  ;;  %v5169_v18 = vld [vmem:[%s7662_s0 + $0x2f4] sm:$0xf0] }
 0x150   :  { %7963 = vst [vmem:[#allocation91_spill] sm:$0xff] %v6281_v48  ;;  %v6286_v50 = vor.u32 %v5169_v18, %v4396_v27 }
 0x152   :  { %v1799_v21 = vpop.f32.mrf.mxu2  ;;  %7965 = vst [vmem:[#allocation93_spill] sm:$0xff] %v6286_v50 }
 0x153   :  { %v1800_v59 = vadd.f32 %v1799_v21, %v1711_v2  ;;  %v1888_v55 = vpop.f32.mrf.mxu3 }
 0x154   :  { %v1713_v36 = vpop.f32.mrf.mxu1 }
 0x155   :  { %v1889_v29 = vadd.f32 %v1888_v55, %v1800_v59  ;;  %v1714_v60 = vadd.f32 %v1713_v36, %v5928_v22  ;;  %v5260_v36 = vld [vmem:[#allocation2 + $0x2d4] sm:$0xf] }
 0x156   :  { %v1980_v1 = vpop.f32.mrf.mxu0 }
 0x157   :  { %v6288_v3 = vadd.f32 %v1977_v26, %v1889_v29  ;;  %1752 = vmatmul.bf16.gmra.mxu1 %v6279_v49  ;;  %1841 = vmatmul.bf16.gmra.mxu2 %v6281_v48  ;;  %v5076_v26 = vld [vmem:[%s7662_s0 + $0x14] sm:$0xf]  ;;  %v4766_v29 = vld [vmem:[#allocation2 + $0x2dc] sm:$0xf0] }
 0x158   :  { %1930 = vmatmul.bf16.gmra.mxu3 %v6283_v40  ;;  %v6303_v21 = vor.u32 %v5076_v26, %v4038_v46  ;;  %v4062_v26 = vld [vmem:[%s7662_s0 + $0x58] sm:$0xf0] }
 0x159   :  { %2019 = vmatmul.bf16.gmra.mxu0 %v6286_v50  ;;  %v7986_v50 = vld [vmem:[#allocation13_spill] sm:$0xff]  ;;  %v5193_v40 = vld [vmem:[#allocation2 + $0xb8] sm:$0xf0] }
 0x15a   :  { %v1802_v16 = vpop.f32.mrf.mxu2  ;;  %7966 = vst [vmem:[#allocation94_spill] sm:$0xff] %v6303_v21 }
 0x15b   :  { %v1803_v51 = vadd.f32 %v1802_v16, %v1714_v60  ;;  %v1891_v19 = vpop.f32.mrf.mxu3  ;;  %v4769_v60 = vor.u32 %v5260_v36, %v4766_v29 }
 0x15c   :  { %v1715_v2 = vpop.f32.mrf.mxu1 }
 0x15d   :  { %v1892_v61 = vadd.f32 %v1891_v19, %v1803_v51  ;;  %v1716_v22 = vadd.f32 %v1715_v2, %v5945_v38  ;;  %2382 = vmatpush.bf16.msrb.mxu1 %v4769_v60 }
 0x15e   :  { %v1982_v13 = vpop.f32.mrf.mxu0 }
 0x15f   :  { %v6295_v33 = vadd.f32 %v1980_v1, %v1892_v61 }
 0x162   :  { %v1804_v43 = vpop.f32.mrf.mxu2 }
 0x163   :  { %v1805_v6 = vadd.f32 %v1804_v43, %v1716_v22  ;;  %v1893_v23 = vpop.f32.mrf.mxu3 }
 0x164   :  { %v1718_v27 = vpop.f32.mrf.mxu1 }
 0x165   :  { %v1894_v18 = vadd.f32 %v1893_v23, %v1805_v6  ;;  %v1719_v38 = vadd.f32 %v1718_v27, %v5765_v42 }
 0x166   :  { %v1985_v59 = vpop.f32.mrf.mxu0 }
 0x167   :  { %v6306_v55 = vadd.f32 %v1982_v13, %v1894_v18  ;;  %2033 = vmatmul.bf16.vlgmr.msra.gmra.mxu1 %v6303_v21  ;;  %2122 = vmatmul.bf16.vlgmr.msra.gmra.mxu2 %v5460_v41  ;;  %v5082_v13 = vld [vmem:[%s7662_s0 + $0x44] sm:$0xf] }
 0x168   :  { %2211 = vmatmul.bf16.vlgmr.msra.gmra.mxu3 %v5598_v63  ;;  %v6321_v23 = vor.u32 %v5082_v13, %v4062_v26 }
 0x169   :  { %2300 = vmatmul.bf16.vlgmr.msra.gmra.mxu0 %v5600_v0 }
 0x16a   :  { %v1807_v1 = vpop.f32.mrf.mxu2  ;;  %7967 = vst [vmem:[#allocation95_spill] sm:$0xff] %v6321_v23 }
 0x16b   :  { %v1808_v16 = vadd.f32 %v1807_v1, %v1719_v38  ;;  %v1896_v51 = vpop.f32.mrf.mxu3 }
 0x16c   :  { %v1720_v19 = vpop.f32.mrf.mxu1 }
 0x16d   :  { %v1897_v42 = vadd.f32 %v1896_v51, %v1808_v16  ;;  %v1721_v2 = vadd.f32 %v1720_v19, %v5800_v5 }
 0x16e   :  { %v1987_v61 = vpop.f32.mrf.mxu0 }
 0x16f   :  { %v6313_v22 = vadd.f32 %v1985_v59, %v1897_v42  ;;  %v5088_v42 = vld [vmem:[%s7662_s0 + $0x74] sm:$0xf] }
 0x172   :  { %v1809_v46 = vpop.f32.mrf.mxu2 }
 0x173   :  { %v1810_v43 = vadd.f32 %v1809_v46, %v1721_v2  ;;  %v1898_v6 = vpop.f32.mrf.mxu3  ;;  %v4086_v2 = vld [vmem:[%s7662_s0 + $0x88] sm:$0xf0] }
 0x174   :  { %v1723_v27 = vpop.f32.mrf.mxu1  ;;  %v6339_v46 = vor.u32 %v5088_v42, %v4086_v2  ;;  %v5094_v2 = vld [vmem:[%s7662_s0 + $0xa4] sm:$0xf] }
 0x175   :  { %v1899_v18 = vadd.f32 %v1898_v6, %v1810_v43  ;;  %v1724_v5 = vadd.f32 %v1723_v27, %v5823_v45 }
 0x176   :  { %v1990_v38 = vpop.f32.mrf.mxu0  ;;  %7968 = vst [vmem:[#allocation96_spill] sm:$0xff] %v6339_v46 }
 0x177   :  { %v6324_v59 = vadd.f32 %v1987_v61, %v1899_v18  ;;  %2038 = vmatmul.bf16.gmra.mxu1 %v6321_v23  ;;  %2127 = vmatmul.bf16.gmra.mxu2 %v5496_v30 }
 0x178   :  { %2216 = vmatmul.bf16.gmra.mxu3 %v5634_v14 }
 0x179   :  { %2305 = vmatmul.bf16.gmra.mxu0 %v5636_v15 }
 0x17a   :  { %v1812_v36 = vpop.f32.mrf.mxu2 }
 0x17b   :  { %v1813_v29 = vadd.f32 %v1812_v36, %v1724_v5  ;;  %v1901_v60 = vpop.f32.mrf.mxu3  ;;  %v5257_v5 = vld [vmem:[#allocation2 + $0x2bc] sm:$0xf] }
 0x17c   :  { %v1725_v1 = vpop.f32.mrf.mxu1 }
 0x17d   :  { %v1902_v16 = vadd.f32 %v1901_v60, %v1813_v29  ;;  %v1726_v51 = vadd.f32 %v1725_v1, %v5858_v32 }
 0x17e   :  { %v1992_v19 = vpop.f32.mrf.mxu0 }
 0x17f   :  { %v6331_v45 = vadd.f32 %v1990_v38, %v1902_v16  ;;  %v4754_v38 = vld [vmem:[#allocation2 + $0x2c4] sm:$0xf0] }
 0x180   :  { %v4757_v36 = vor.u32 %v5257_v5, %v4754_v38 }
 0x182   :  { %v1814_v61 = vpop.f32.mrf.mxu2  ;;  %2383 = vmatpush.bf16.msrb.mxu1 %v4757_v36 }
 0x183   :  { %v1815_v13 = vadd.f32 %v1814_v61, %v1726_v51  ;;  %v1903_v26 = vpop.f32.mrf.mxu3  ;;  %v4110_v61 = vld [vmem:[%s7662_s0 + $0xb8] sm:$0xf0] }
 0x184   :  { %v1728_v43 = vpop.f32.mrf.mxu1 }
 0x185   :  { %v1904_v6 = vadd.f32 %v1903_v26, %v1815_v13  ;;  %v1729_v32 = vadd.f32 %v1728_v43, %v5881_v4 }
 0x186   :  { %v1995_v27 = vpop.f32.mrf.mxu0 }
 0x187   :  { %v6342_v18 = vadd.f32 %v1992_v19, %v1904_v6  ;;  %2043 = vmatmul.bf16.gmra.mxu1 %v6339_v46  ;;  %2132 = vmatmul.bf16.gmra.mxu2 %v5532_v25  ;;  %v6357_v6 = vor.u32 %v5094_v2, %v4110_v61  ;;  %v4134_v2 = vld [vmem:[%s7662_s0 + $0xe8] sm:$0xf0] }
 0x188   :  { %2221 = vmatmul.bf16.gmra.mxu3 %v5670_v34  ;;  %v5251_v34 = vld [vmem:[#allocation2 + $0x28c] sm:$0xf] }
 0x189   :  { %2310 = vmatmul.bf16.gmra.mxu0 %v5672_v35  ;;  %7969 = vst [vmem:[#allocation97_spill] sm:$0xff] %v6357_v6  ;;  %v7982_v35 = vld [vmem:[#allocation43_spill] sm:$0xff] }
 0x18a   :  { %v1817_v29 = vpop.f32.mrf.mxu2 }
 0x18b   :  { %v1818_v60 = vadd.f32 %v1817_v29, %v1729_v32  ;;  %v1906_v1 = vpop.f32.mrf.mxu3 }
 0x18c   :  { %v1730_v16 = vpop.f32.mrf.mxu1 }
 0x18d   :  { %v1907_v4 = vadd.f32 %v1906_v1, %v1818_v60  ;;  %v1731_v51 = vadd.f32 %v1730_v16, %v5916_v17 }
 0x18e   :  { %v1997_v19 = vpop.f32.mrf.mxu0 }
 0x18f   :  { %v6349_v42 = vadd.f32 %v1995_v27, %v1907_v4 }
 0x192   :  { %v1819_v13 = vpop.f32.mrf.mxu2 }
 0x193   :  { %v1820_v26 = vadd.f32 %v1819_v13, %v1731_v51  ;;  %v1908_v43 = vpop.f32.mrf.mxu3 }
 0x194   :  { %v1733_v32 = vpop.f32.mrf.mxu1 }
 0x195   :  { %v1909_v5 = vadd.f32 %v1908_v43, %v1820_v26  ;;  %v1734_v17 = vadd.f32 %v1733_v32, %v5939_v62 }
 0x196   :  { %v2000_v38 = vpop.f32.mrf.mxu0 }
 0x197   :  { %v6360_v27 = vadd.f32 %v1997_v19, %v1909_v5  ;;  %2048 = vmatmul.bf16.gmra.mxu1 %v6357_v6  ;;  %2137 = vmatmul.bf16.gmra.mxu2 %v5568_v54  ;;  %v5100_v19 = vld [vmem:[%s7662_s0 + $0xd4] sm:$0xf] }
 0x198   :  { %2226 = vmatmul.bf16.gmra.mxu3 %v5706_v57  ;;  %v6375_v43 = vor.u32 %v5100_v19, %v4134_v2  ;;  %v7971_v2 = vld [vmem:[#allocation38_spill] sm:$0xff] }
 0x199   :  { %2315 = vmatmul.bf16.gmra.mxu0 %v5708_v58  ;;  %v7977_v58 = vld [vmem:[#allocation44_spill] sm:$0xff]  ;;  %v7981_v57 = vld [vmem:[#allocation42_spill] sm:$0xff] }
 0x19a   :  { %v1822_v36 = vpop.f32.mrf.mxu2  ;;  %7970 = vst [vmem:[#allocation98_spill] sm:$0xff] %v6375_v43 }
 0x19b   :  { %v1823_v29 = vadd.f32 %v1822_v36, %v1734_v17  ;;  %v1911_v60 = vpop.f32.mrf.mxu3  ;;  %v5254_v36 = vld [vmem:[#allocation2 + $0x2a4] sm:$0xf] }
 0x19c   :  { %v1735_v1 = vpop.f32.mrf.mxu1 }
 0x19d   :  { %v1912_v16 = vadd.f32 %v1911_v60, %v1823_v29  ;;  %v1736_v4 = vadd.f32 %v1735_v1, %v5976_v52  ;;  %v4742_v29 = vld [vmem:[#allocation2 + $0x2ac] sm:$0xf0] }
 0x19e   :  { %v2002_v51 = vpop.f32.mrf.mxu0  ;;  %v4745_v60 = vor.u32 %v5254_v36, %v4742_v29 }
 0x19f   :  { %v6367_v62 = vadd.f32 %v2000_v38, %v1912_v16 }
 0x1a0   :  { %2384 = vmatpush.bf16.msrb.mxu1 %v4745_v60 }
 0x1a2   :  { %v1824_v61 = vpop.f32.mrf.mxu2 }
 0x1a3   :  { %v1825_v13 = vadd.f32 %v1824_v61, %v1736_v4  ;;  %v1913_v26 = vpop.f32.mrf.mxu3 }
 0x1a4   :  { %v1738_v32 = vpop.f32.mrf.mxu1 }
 0x1a5   :  { %v1914_v5 = vadd.f32 %v1913_v26, %v1825_v13  ;;  %v1739_v52 = vadd.f32 %v1738_v32, %v5768_v44  ;;  %v5106_v26 = vld [vmem:[%s7662_s0 + $0x104] sm:$0xf]  ;;  %v4158_v32 = vld [vmem:[%s7662_s0 + $0x118] sm:$0xf0] }
 0x1a6   :  { %v2005_v17 = vpop.f32.mrf.mxu0  ;;  %v6393_v29 = vor.u32 %v5106_v26, %v4158_v32 }
 0x1a7   :  { %v6378_v38 = vadd.f32 %v2002_v51, %v1914_v5  ;;  %2053 = vmatmul.bf16.gmra.mxu1 %v6375_v43  ;;  %2142 = vmatmul.bf16.gmra.mxu2 %v5454_v37 }
 0x1a8   :  { %2231 = vmatmul.bf16.gmra.mxu3 %v5747_v11  ;;  %7972 = vst [vmem:[#allocation38_spill] sm:$0xff] %v6393_v29 }
 0x1a9   :  { %2320 = vmatmul.bf16.gmra.mxu0 %v5749_v12  ;;  %v7976_v12 = vld [vmem:[#allocation37_spill] sm:$0xff] }
 0x1aa   :  { %v1827_v1 = vpop.f32.mrf.mxu2 }
 0x1ab   :  { %v1828_v16 = vadd.f32 %v1827_v1, %v1739_v52  ;;  %v1916_v4 = vpop.f32.mrf.mxu3 }
 0x1ac   :  { %v1740_v19 = vpop.f32.mrf.mxu1 }
 0x1ad   :  { %v1917_v44 = vadd.f32 %v1916_v4, %v1828_v16  ;;  %v1741_v51 = vadd.f32 %v1740_v19, %v7971_v2  ;;  %v7973_v16 = vld [vmem:[#allocation41_spill] sm:$0xff]  ;;  %v7975_v2 = vld [vmem:[#allocation36_spill] sm:$0xff] }
 0x1ae   :  { %v2007_v61 = vpop.f32.mrf.mxu0 }
 0x1af   :  { %v6385_v13 = vadd.f32 %v2005_v17, %v1917_v44  ;;  %v7974_v44 = vld [vmem:[#allocation7_spill] sm:$0xff] }
 0x1b2   :  { %v1829_v5 = vpop.f32.mrf.mxu2 }
 0x1b3   :  { %v1830_v36 = vadd.f32 %v1829_v5, %v1741_v51  ;;  %v1918_v52 = vpop.f32.mrf.mxu3 }
 0x1b4   :  { %v1743_v60 = vpop.f32.mrf.mxu1 }
 0x1b5   :  { %v1919_v1 = vadd.f32 %v1918_v52, %v1830_v36  ;;  %v1744_v4 = vadd.f32 %v1743_v60, %v7973_v16 }
 0x1b6   :  { %v2010_v19 = vpop.f32.mrf.mxu0 }
 0x1b7   :  { %v6396_v17 = vadd.f32 %v2007_v61, %v1919_v1  ;;  %2058 = vmatmul.bf16.gmra.mxu1 %v6393_v29  ;;  %2147 = vmatmul.bf16.gmra.mxu2 %v7974_v44  ;;  %v5112_v61 = vld [vmem:[%s7662_s0 + $0x134] sm:$0xf]  ;;  %v4182_v1 = vld [vmem:[%s7662_s0 + $0x148] sm:$0xf0] }
 0x1b8   :  { %2236 = vmatmul.bf16.gmra.mxu3 %v7975_v2 }
 0x1b9   :  { %2325 = vmatmul.bf16.gmra.mxu0 %v7976_v12 }
 0x1ba   :  { %v1832_v11 = vpop.f32.mrf.mxu2 }
 0x1bb   :  { %v1833_v51 = vadd.f32 %v1832_v11, %v1744_v4  ;;  %v1921_v5 = vpop.f32.mrf.mxu3  ;;  %v6411_v11 = vor.u32 %v5112_v61, %v4182_v1 }
 0x1bc   :  { %v1745_v26 = vpop.f32.mrf.mxu1 }
 0x1bd   :  { %v1922_v32 = vadd.f32 %v1921_v5, %v1833_v51  ;;  %v1746_v36 = vadd.f32 %v1745_v26, %v7977_v58  ;;  %7978 = vst [vmem:[#allocation41_spill] sm:$0xff] %v6411_v11  ;;  %v7979_v5 = vld [vmem:[#allocation47_spill] sm:$0xff] }
 0x1be   :  { %v2012_v52 = vpop.f32.mrf.mxu0 }
 0x1bf   :  { %v6403_v60 = vadd.f32 %v2010_v19, %v1922_v32  ;;  %v7980_v32 = vld [vmem:[#allocation10_spill] sm:$0xff] }
 0x1c2   :  { %v1834_v16 = vpop.f32.mrf.mxu2 }
 0x1c3   :  { %v1835_v12 = vadd.f32 %v1834_v16, %v1746_v36  ;;  %v1923_v2 = vpop.f32.mrf.mxu3  ;;  %v4730_v36 = vld [vmem:[#allocation2 + $0x294] sm:$0xf0] }
 0x1c4   :  { %v1748_v4 = vpop.f32.mrf.mxu1  ;;  %v4733_v61 = vor.u32 %v5251_v34, %v4730_v36  ;;  %v4206_v34 = vld [vmem:[%s7662_s0 + $0x178] sm:$0xf0]  ;;  %v5311_v36 = vld [vmem:[#allocation2 + $0x46c] sm:$0xf] }
 0x1c5   :  { %v1924_v51 = vadd.f32 %v1923_v2, %v1835_v12  ;;  %v1749_v58 = vadd.f32 %v1748_v4, %v7979_v5  ;;  %v7983_v4 = vld [vmem:[#allocation50_spill] sm:$0xff]  ;;  %v4874_v5 = vld [vmem:[#allocation2 + $0x3b4] sm:$0xf0] }
 0x1c6   :  { %v2015_v26 = vpop.f32.mrf.mxu0  ;;  %2385 = vmatpush.bf16.msrb.mxu1 %v4733_v61 }
 0x1c7   :  { %v6414_v19 = vadd.f32 %v2012_v52, %v1924_v51  ;;  %2063 = vmatmul.bf16.gmra.mxu1 %v6411_v11  ;;  %2152 = vmatmul.bf16.gmra.mxu2 %v7980_v32  ;;  %v5287_v51 = vld [vmem:[#allocation2 + $0x3ac] sm:$0xf] }
 0x1c8   :  { %2241 = vmatmul.bf16.gmra.mxu3 %v7981_v57  ;;  %v4877_v0 = vor.u32 %v5287_v51, %v4874_v5 }
 0x1c9   :  { %2330 = vmatmul.bf16.gmra.mxu0 %v7982_v35  ;;  %v5118_v35 = vld [vmem:[%s7662_s0 + $0x164] sm:$0xf] }
 0x1ca   :  { %v1837_v16 = vpop.f32.mrf.mxu2  ;;  %2470 = vmatpush.bf16.msrb.mxu2 %v4877_v0  ;;  %v4496_v0 = vld [vmem:[#allocation2 + $0xb0] sm:$0xf] }
 0x1cb   :  { %v1838_v1 = vadd.f32 %v1837_v16, %v1749_v58  ;;  %v1926_v15 = vpop.f32.mrf.mxu3 }
 0x1cc   :  { %v1750_v12 = vpop.f32.mrf.mxu1 }
 0x1cd   :  { %v1927_v2 = vadd.f32 %v1926_v15, %v1838_v1  ;;  %v1751_v52 = vadd.f32 %v1750_v12, %v7983_v4  ;;  %v4970_v15 = vld [vmem:[#allocation2 + $0x474] sm:$0xf0]  ;;  %v6429_v1 = vor.u32 %v5118_v35, %v4206_v34  ;;  %v7988_v35 = vld [vmem:[#allocation49_spill] sm:$0xff] }
 0x1ce   :  { %v2017_v14 = vpop.f32.mrf.mxu0  ;;  %v4973_v12 = vor.u32 %v5311_v36, %v4970_v15 }
 0x1cf   :  { %v6421_v63 = vadd.f32 %v2015_v26, %v1927_v2  ;;  %7984 = vst [vmem:[#allocation7_spill] sm:$0xff] %v6429_v1  ;;  %v7985_v2 = vld [vmem:[#allocation53_spill] sm:$0xff] }
 0x1d0   :  { %2559 = vmatpush.bf16.msrb.mxu3 %v4973_v12 }
 0x1d2   :  { %v1839_v58 = vpop.f32.mrf.mxu2 }
 0x1d3   :  { %v1840_v16 = vadd.f32 %v1839_v58, %v1751_v52  ;;  %v1928_v61 = vpop.f32.mrf.mxu3  ;;  %v4497_v52 = vor.u32 %v5193_v40, %v4496_v0  ;;  %v4230_v40 = vld [vmem:[%s7662_s0 + $0x1a8] sm:$0xf0] }
 0x1d4   :  { %v1753_v4 = vpop.f32.mrf.mxu1 }
 0x1d5   :  { %v1929_v26 = vadd.f32 %v1928_v61, %v1840_v16  ;;  %v1754_v51 = vadd.f32 %v1753_v4, %v7985_v2  ;;  %2648 = vmatpush.bf16.msrb.mxu0 %v4497_v52  ;;  %v7989_v61 = vld [vmem:[#allocation56_spill] sm:$0xff] }
 0x1d6   :  { %v2020_v5 = vpop.f32.mrf.mxu0 }
 0x1d7   :  { %v6432_v57 = vadd.f32 %v2017_v14, %v1929_v26  ;;  %2068 = vmatmul.bf16.gmra.mxu1 %v6429_v1  ;;  %2157 = vmatmul.bf16.gmra.mxu2 %v7986_v50  ;;  %v5124_v26 = vld [vmem:[%s7662_s0 + $0x194] sm:$0xf] }
 0x1d8   :  { %2246 = vmatmul.bf16.gmra.mxu3 %v7987_v53 }
 0x1d9   :  { %2335 = vmatmul.bf16.gmra.mxu0 %v7988_v35  ;;  %v5366_v35 = vld [vmem:[%s7664_s2] sm:$0x7] }
 0x1da   :  { %v1842_v34 = vpop.f32.mrf.mxu2  ;;  %v6457_v53 = vperm.slane %v5366_v35, 1  ;;  %v4862_v35 = vld [vmem:[#allocation2 + $0x39c] sm:$0xf0] }
 0x1db   :  { %v1843_v58 = vadd.f32 %v1842_v34, %v1754_v51  ;;  %v1931_v36 = vpop.f32.mrf.mxu3  ;;  %v6447_v51 = vor.u32 %v5124_v26, %v4230_v40  ;;  %v5248_v26 = vld [vmem:[#allocation2 + $0x274] sm:$0xf]  ;;  %v4718_v40 = vld [vmem:[#allocation2 + $0x27c] sm:$0xf0] }
 0x1dc   :  { %v1755_v15 = vpop.f32.mrf.mxu1 }
 0x1dd   :  { %v1932_v16 = vadd.f32 %v1931_v36, %v1843_v58  ;;  %v1756_v14 = vadd.f32 %v1755_v15, %v7989_v61  ;;  %7991 = vst [vmem:[#allocation47_spill] sm:$0xff] %v6447_v51  ;;  %v7992_v36 = vld [vmem:[#allocation59_spill] sm:$0xff] }
 0x1de   :  { %v2022_v12 = vpop.f32.mrf.mxu0 }
 0x1df   :  { %v6439_v4 = vadd.f32 %v2020_v5, %v1932_v16  ;;  %v7994_v16 = vld [vmem:[#allocation5_spill] sm:$0xff] }
 0x1e1   :  { %7990 = vst [vmem:[#allocation44_spill] sm:$0xff] %v6439_v4 }
 0x1e2   :  { %v1844_v2 = vpop.f32.mrf.mxu2 }
 0x1e3   :  { %v1845_v0 = vadd.f32 %v1844_v2, %v1756_v14  ;;  %v1933_v52 = vpop.f32.mrf.mxu3  ;;  %v7995_v14 = vld [vmem:[#allocation54_spill] sm:$0xff]  ;;  %v7996_v2 = vld [vmem:[#allocation55_spill] sm:$0xff] }
 0x1e4   :  { %v2034_v34 = vpop.f32.mrf.mxu1 }
 0x1e5   :  { %v1934_v58 = vadd.f32 %v1933_v52, %v1845_v0  ;;  %v2035_v15 = vadd.f32 %v2034_v34, %v7992_v36  ;;  %v4721_v0 = vor.u32 %v5248_v26, %v4718_v40  ;;  %v5308_v26 = vld [vmem:[#allocation2 + $0x454] sm:$0xf]  ;;  %v5130_v40 = vld [vmem:[%s7662_s0 + $0x1c4] sm:$0xf] }
 0x1e6   :  { %v2301_v61 = vpop.f32.mrf.mxu0 }
 0x1e7   :  { %v6450_v5 = vadd.f32 %v2022_v12, %v1934_v58  ;;  %2073 = vmatmul.bf16.gmra.mxu1 %v6447_v51  ;;  %2162 = vmatmul.bf16.gmra.mxu2 %v7994_v16  ;;  %v3278_v36 = vmul.f32 0.1, %v2035_v15  ;;  %v5284_v51 = vld [vmem:[#allocation2 + $0x394] sm:$0xf]  ;;  %vm3182_vm0 = vcmp.gt.f32.partialorder %v2035_v15, 0.0 }
 0x1e8   :  { %2251 = vmatmul.bf16.gmra.mxu3 %v7995_v14  ;;  %2386 = vmatpush.bf16.msrb.mxu1 %v4721_v0  ;;  %v4865_v14 = vor.u32 %v5284_v51, %v4862_v35  ;;  %v4254_v0 = vld [vmem:[%s7662_s0 + $0x1d8] sm:$0xf0] }
 0x1e9   :  { %7993 = vst [vmem:[#allocation10_spill] sm:$0xff] %v6450_v5  ;;  %2340 = vmatmul.bf16.gmra.mxu0 %v7996_v2  ;;  %v6478_v35 = vor.u32 %v5130_v40, %v4254_v0 }
 0x1ea   :  { %v2123_v52 = vpop.f32.mrf.mxu2  ;;  %2471 = vmatpush.bf16.msrb.mxu2 %v4865_v14 }
 0x1eb   :  { %v2124_v12 = vadd.f32 %v2123_v52, %v6457_v53  ;;  %v2212_v34 = vpop.f32.mrf.mxu3  ;;  %v6471_v52 = vsel %vm3182_vm0, %v2035_v15, %v3278_v36  ;;  %8000 = vst [vmem:[#allocation59_spill] sm:$0xff] %v6478_v35  ;;  %v5190_v36 = vld [vmem:[#allocation2 + $0xa0] sm:$0xf0] }
 0x1ec   :  { %v2036_v58 = vpop.f32.mrf.mxu1  ;;  %7998 = vst [vmem:[#allocation53_spill] sm:$0xff] %v6471_v52  ;;  %v8006_v52 = vld [vmem:[#allocation69_spill] sm:$0xff] }
 0x1ed   :  { %v2213_v31 = vadd.f32 %v2212_v34, %v2124_v12  ;;  %v2037_v16 = vadd.f32 %v2036_v58, %v6031_v10  ;;  %v4958_v10 = vld [vmem:[#allocation2 + $0x45c] sm:$0xf0] }
 0x1ee   :  { %v2303_v5 = vpop.f32.mrf.mxu0  ;;  %v4961_v51 = vor.u32 %v5308_v26, %v4958_v10 }
 0x1ef   :  { %vm3185_vm1 = vcmp.gt.f32.partialorder %v2037_v16, 0.0  ;;  %v3281_v50 = vmul.f32 0.1, %v2037_v16  ;;  %v6463_v1 = vadd.f32 %v2301_v61, %v2213_v31 }
 0x1f0   :  { %2560 = vmatpush.bf16.msrb.mxu3 %v4961_v51 }
 0x1f1   :  { %7997 = vst [vmem:[#allocation50_spill] sm:$0xff] %v6463_v1  ;;  %v6473_v12 = vsel %vm3185_vm1, %v2037_v16, %v3281_v50  ;;  %v8001_v50 = vld [vmem:[#allocation8_spill] sm:$0xff] }
 0x1f2   :  { %7999 = vst [vmem:[#allocation56_spill] sm:$0xff] %v6473_v12  ;;  %v2125_v61 = vpop.f32.mrf.mxu2  ;;  %v4484_v16 = vld [vmem:[#allocation2 + $0x98] sm:$0xf] }
 0x1f3   :  { %v2126_v34 = vadd.f32 %v2125_v61, %v6457_v53  ;;  %v2214_v58 = vpop.f32.mrf.mxu3  ;;  %v4485_v26 = vor.u32 %v5190_v36, %v4484_v16  ;;  %v5136_v16 = vld [vmem:[%s7662_s0 + $0x1f4] sm:$0xf]  ;;  %v4278_v36 = vld [vmem:[%s7662_s0 + $0x208] sm:$0xf0] }
 0x1f4   :  { %v2039_v2 = vpop.f32.mrf.mxu1 }
 0x1f5   :  { %v2215_v1 = vadd.f32 %v2214_v58, %v2126_v34  ;;  %v2040_v14 = vadd.f32 %v2039_v2, %v6039_v9  ;;  %2649 = vmatpush.bf16.msrb.mxu0 %v4485_v26 }
 0x1f6   :  { %v2306_v4 = vpop.f32.mrf.mxu0 }
 0x1f7   :  { %v6481_v15 = vadd.f32 %v2303_v5, %v2215_v1  ;;  %2078 = vmatmul.bf16.gmra.mxu1 %v6478_v35  ;;  %2167 = vmatmul.bf16.gmra.mxu2 %v8001_v50  ;;  %v3284_v2 = vmul.f32 0.1, %v2040_v14  ;;  %v8002_v5 = vld [vmem:[#allocation68_spill] sm:$0xff]  ;;  %vm3188_vm2 = vcmp.gt.f32.partialorder %v2040_v14, 0.0 }
 0x1f8   :  { %2256 = vmatmul.bf16.gmra.mxu3 %v6023_v39 }
 0x1f9   :  { %2345 = vmatmul.bf16.gmra.mxu0 %v6025_v28  ;;  %v6497_v26 = vsel %vm3188_vm2, %v2040_v14, %v3284_v2  ;;  %v8008_v14 = vld [vmem:[#allocation11_spill] sm:$0xff]  ;;  %v8009_v2 = vld [vmem:[#allocation64_spill] sm:$0xff] }
 0x1fa   :  { %v2128_v40 = vpop.f32.mrf.mxu2  ;;  %8003 = vst [vmem:[#allocation68_spill] sm:$0xff] %v6497_v26  ;;  %v4850_v26 = vld [vmem:[#allocation2 + $0x384] sm:$0xf0] }
 0x1fb   :  { %v2129_v0 = vadd.f32 %v2128_v40, %v6457_v53  ;;  %v2217_v10 = vpop.f32.mrf.mxu3 }
 0x1fc   :  { %v2041_v9 = vpop.f32.mrf.mxu1 }
 0x1fd   :  { %v2218_v1 = vadd.f32 %v2217_v10, %v2129_v0  ;;  %v2042_v51 = vadd.f32 %v2041_v9, %v8002_v5  ;;  %v8010_v10 = vld [vmem:[#allocation65_spill] sm:$0xff] }
 0x1fe   :  { %v2308_v61 = vpop.f32.mrf.mxu0 }
 0x1ff   :  { %vm3191_vm3 = vcmp.gt.f32.partialorder %v2042_v51, 0.0  ;;  %v3287_v34 = vmul.f32 0.1, %v2042_v51  ;;  %v6489_v58 = vadd.f32 %v2306_v4, %v2218_v1  ;;  %v6504_v1 = vor.u32 %v5136_v16, %v4278_v36 }
 0x201   :  { %v6499_v40 = vsel %vm3191_vm3, %v2042_v51, %v3287_v34  ;;  %8005 = vst [vmem:[#allocation100_spill] sm:$0xff] %v6504_v1  ;;  %v5245_v51 = vld [vmem:[#allocation2 + $0x25c] sm:$0xf]  ;;  %v4706_v34 = vld [vmem:[#allocation2 + $0x264] sm:$0xf0] }
 0x202   :  { %8004 = vst [vmem:[#allocation99_spill] sm:$0xff] %v6499_v40  ;;  %v2130_v0 = vpop.f32.mrf.mxu2 }
 0x203   :  { %v2131_v9 = vadd.f32 %v2130_v0, %v6457_v53  ;;  %v2219_v4 = vpop.f32.mrf.mxu3  ;;  %v4709_v0 = vor.u32 %v5245_v51, %v4706_v34  ;;  %v5305_v51 = vld [vmem:[#allocation2 + $0x43c] sm:$0xf]  ;;  %v5142_v34 = vld [vmem:[%s7662_s0 + $0x224] sm:$0xf] }
 0x204   :  { %v2044_v5 = vpop.f32.mrf.mxu1 }
 0x205   :  { %v2220_v31 = vadd.f32 %v2219_v4, %v2131_v9  ;;  %v2045_v12 = vadd.f32 %v2044_v5, %v8006_v52  ;;  %2387 = vmatpush.bf16.msrb.mxu1 %v4709_v0  ;;  %v5281_v5 = vld [vmem:[#allocation2 + $0x37c] sm:$0xf] }
 0x206   :  { %v2311_v28 = vpop.f32.mrf.mxu0  ;;  %v4302_v0 = vld [vmem:[%s7662_s0 + $0x238] sm:$0xf0] }
 0x207   :  { %v6507_v39 = vadd.f32 %v2308_v61, %v2220_v31  ;;  %2083 = vmatmul.bf16.gmra.mxu1 %v6504_v1  ;;  %2172 = vmatmul.bf16.gmra.mxu2 %v8008_v14  ;;  %v3290_v4 = vmul.f32 0.1, %v2045_v12  ;;  %vm3194_vm4 = vcmp.gt.f32.partialorder %v2045_v12, 0.0 }
 0x208   :  { %2261 = vmatmul.bf16.gmra.mxu3 %v8009_v2  ;;  %v4853_v2 = vor.u32 %v5281_v5, %v4850_v26  ;;  %v6530_v5 = vor.u32 %v5142_v34, %v4302_v0 }
 0x209   :  { %8007 = vst [vmem:[#allocation69_spill] sm:$0xff] %v6507_v39  ;;  %2350 = vmatmul.bf16.gmra.mxu0 %v8010_v10 }
 0x20a   :  { %v2133_v16 = vpop.f32.mrf.mxu2  ;;  %2472 = vmatpush.bf16.msrb.mxu2 %v4853_v2  ;;  %8014 = vst [vmem:[#allocation104_spill] sm:$0xff] %v6530_v5 }
 0x20b   :  { %v2134_v36 = vadd.f32 %v2133_v16, %v6457_v53  ;;  %v2222_v9 = vpop.f32.mrf.mxu3 }
 0x20c   :  { %v2046_v52 = vpop.f32.mrf.mxu1 }
 0x20d   :  { %v2223_v31 = vadd.f32 %v2222_v9, %v2134_v36  ;;  %v2047_v61 = vadd.f32 %v2046_v52, %v6119_v7  ;;  %v4946_v7 = vld [vmem:[#allocation2 + $0x444] sm:$0xf0]  ;;  %v6523_v36 = vsel %vm3194_vm4, %v2045_v12, %v3290_v4 }
 0x20e   :  { %v2313_v40 = vpop.f32.mrf.mxu0  ;;  %v4949_v16 = vor.u32 %v5305_v51, %v4946_v7  ;;  %8012 = vst [vmem:[#allocation102_spill] sm:$0xff] %v6523_v36  ;;  %v8016_v12 = vld [vmem:[#allocation14_spill] sm:$0xff]  ;;  %v8018_v7 = vld [vmem:[#allocation71_spill] sm:$0xff] }
 0x20f   :  { %vm3197_vm5 = vcmp.gt.f32.partialorder %v2047_v61, 0.0  ;;  %v3293_v14 = vmul.f32 0.1, %v2047_v61  ;;  %v6515_v1 = vadd.f32 %v2311_v28, %v2223_v31  ;;  %v8017_v4 = vld [vmem:[#allocation70_spill] sm:$0xff] }
 0x210   :  { %2561 = vmatpush.bf16.msrb.mxu3 %v4949_v16 }
 0x211   :  { %8011 = vst [vmem:[#allocation101_spill] sm:$0xff] %v6515_v1  ;;  %v6525_v9 = vsel %vm3197_vm5, %v2047_v61, %v3293_v14  ;;  %v4472_v14 = vld [vmem:[#allocation2 + $0x80] sm:$0xf]  ;;  %v5187_v61 = vld [vmem:[#allocation2 + $0x88] sm:$0xf0] }
 0x212   :  { %8013 = vst [vmem:[#allocation103_spill] sm:$0xff] %v6525_v9  ;;  %v2135_v26 = vpop.f32.mrf.mxu2  ;;  %v4473_v34 = vor.u32 %v5187_v61, %v4472_v14  ;;  %v5148_v14 = vld [vmem:[%s7662_s0 + $0x254] sm:$0xf]  ;;  %v4326_v61 = vld [vmem:[%s7662_s0 + $0x268] sm:$0xf0] }
 0x213   :  { %v2136_v52 = vadd.f32 %v2135_v26, %v6457_v53  ;;  %v2224_v31 = vpop.f32.mrf.mxu3 }
 0x214   :  { %v2049_v10 = vpop.f32.mrf.mxu1  ;;  %2650 = vmatpush.bf16.msrb.mxu0 %v4473_v34 }
 0x215   :  { %v2225_v1 = vadd.f32 %v2224_v31, %v2136_v52  ;;  %v2050_v2 = vadd.f32 %v2049_v10, %v6127_v24 }
 0x216   :  { %v2316_v39 = vpop.f32.mrf.mxu0 }
 0x217   :  { %v6533_v51 = vadd.f32 %v2313_v40, %v2225_v1  ;;  %2088 = vmatmul.bf16.gmra.mxu1 %v6530_v5  ;;  %2177 = vmatmul.bf16.gmra.mxu2 %v8016_v12  ;;  %v3296_v10 = vmul.f32 0.1, %v2050_v2  ;;  %v8019_v1 = vld [vmem:[#allocation78_spill] sm:$0xff]  ;;  %vm3200_vm6 = vcmp.gt.f32.partialorder %v2050_v2, 0.0 }
 0x218   :  { %2266 = vmatmul.bf16.gmra.mxu3 %v8017_v4 }
 0x219   :  { %8015 = vst [vmem:[#allocation105_spill] sm:$0xff] %v6533_v51  ;;  %2355 = vmatmul.bf16.gmra.mxu0 %v8018_v7  ;;  %v6549_v34 = vsel %vm3200_vm6, %v2050_v2, %v3296_v10  ;;  %v8024_v7 = vld [vmem:[#allocation79_spill] sm:$0xff]  ;;  %v8027_v2 = vld [vmem:[#allocation74_spill] sm:$0xff]  ;;  %v5242_v10 = vld [vmem:[#allocation2 + $0x244] sm:$0xf] }
 0x21a   :  { %v2138_v0 = vpop.f32.mrf.mxu2  ;;  %8021 = vst [vmem:[#allocation106_spill] sm:$0xff] %v6549_v34  ;;  %v5278_v34 = vld [vmem:[#allocation2 + $0x364] sm:$0xf] }
 0x21b   :  { %v2139_v16 = vadd.f32 %v2138_v0, %v6457_v53  ;;  %v2227_v26 = vpop.f32.mrf.mxu3 }
 0x21c   :  { %v2051_v24 = vpop.f32.mrf.mxu1 }
 0x21d   :  { %v2228_v40 = vadd.f32 %v2227_v26, %v2139_v16  ;;  %v2052_v52 = vadd.f32 %v2051_v24, %v8019_v1  ;;  %v8028_v26 = vld [vmem:[#allocation75_spill] sm:$0xff] }
 0x21e   :  { %v2318_v31 = vpop.f32.mrf.mxu0 }
 0x21f   :  { %vm3203_vm7 = vcmp.gt.f32.partialorder %v2052_v52, 0.0  ;;  %v3299_v28 = vmul.f32 0.1, %v2052_v52  ;;  %v6541_v36 = vadd.f32 %v2316_v39, %v2228_v40  ;;  %v6556_v40 = vor.u32 %v5148_v14, %v4326_v61 }
 0x221   :  { %8020 = vst [vmem:[#allocation78_spill] sm:$0xff] %v6541_v36  ;;  %v6551_v0 = vsel %vm3203_vm7, %v2052_v52, %v3299_v28  ;;  %v8026_v28 = vld [vmem:[#allocation6_spill] sm:$0xff]  ;;  %v4694_v52 = vld [vmem:[#allocation2 + $0x24c] sm:$0xf0]  ;;  %v8034_v36 = vld [vmem:[#allocation85_spill] sm:$0xff] }
 0x222   :  { %8022 = vst [vmem:[#allocation107_spill] sm:$0xff] %v6551_v0  ;;  %v2140_v16 = vpop.f32.mrf.mxu2  ;;  %v4838_v0 = vld [vmem:[#allocation2 + $0x36c] sm:$0xf0] }
 0x223   :  { %v2141_v24 = vadd.f32 %v2140_v16, %v6457_v53  ;;  %v2229_v39 = vpop.f32.mrf.mxu3  ;;  %8023 = vst [vmem:[#allocation108_spill] sm:$0xff] %v6556_v40  ;;  %v4697_v16 = vor.u32 %v5242_v10, %v4694_v52  ;;  %v5302_v10 = vld [vmem:[#allocation2 + $0x424] sm:$0xf] }
 0x224   :  { %v2054_v1 = vpop.f32.mrf.mxu1  ;;  %v5154_v52 = vld [vmem:[%s7662_s0 + $0x284] sm:$0xf] }
 0x225   :  { %v2230_v9 = vadd.f32 %v2229_v39, %v2141_v24  ;;  %v2055_v4 = vadd.f32 %v2054_v1, %v8024_v7  ;;  %2388 = vmatpush.bf16.msrb.mxu1 %v4697_v16  ;;  %v4350_v16 = vld [vmem:[%s7662_s0 + $0x298] sm:$0xf0] }
 0x226   :  { %v2321_v12 = vpop.f32.mrf.mxu0 }
 0x227   :  { %v6559_v5 = vadd.f32 %v2318_v31, %v2230_v9  ;;  %2093 = vmatmul.bf16.gmra.mxu1 %v6556_v40  ;;  %2182 = vmatmul.bf16.gmra.mxu2 %v8026_v28  ;;  %v3302_v39 = vmul.f32 0.1, %v2055_v4  ;;  %v8029_v31 = vld [vmem:[#allocation84_spill] sm:$0xff]  ;;  %vm3206_vm8 = vcmp.gt.f32.partialorder %v2055_v4, 0.0 }
 0x228   :  { %2271 = vmatmul.bf16.gmra.mxu3 %v8027_v2  ;;  %v4841_v2 = vor.u32 %v5278_v34, %v4838_v0 }
 0x229   :  { %8025 = vst [vmem:[#allocation79_spill] sm:$0xff] %v6559_v5  ;;  %2360 = vmatmul.bf16.gmra.mxu0 %v8028_v26 }
 0x22a   :  { %v2143_v14 = vpop.f32.mrf.mxu2  ;;  %2473 = vmatpush.bf16.msrb.mxu2 %v4841_v2 }
 0x22b   :  { %v2144_v61 = vadd.f32 %v2143_v14, %v6457_v53  ;;  %v2232_v24 = vpop.f32.mrf.mxu3  ;;  %v4934_v14 = vld [vmem:[#allocation2 + $0x42c] sm:$0xf0] }
 0x22c   :  { %v2056_v7 = vpop.f32.mrf.mxu1 }
 0x22d   :  { %v2233_v9 = vadd.f32 %v2232_v24, %v2144_v61  ;;  %v2057_v1 = vadd.f32 %v2056_v7, %v8029_v31  ;;  %v4937_v61 = vor.u32 %v5302_v10, %v4934_v14  ;;  %v6575_v24 = vsel %vm3206_vm8, %v2055_v4, %v3302_v39  ;;  %v5275_v10 = vld [vmem:[#allocation2 + $0x34c] sm:$0xf]  ;;  %v4826_v4 = vld [vmem:[#allocation2 + $0x354] sm:$0xf0]  ;;  %v4460_v14 = vld [vmem:[#allocation2 + $0x68] sm:$0xf] }
 0x22e   :  { %v2323_v28 = vpop.f32.mrf.mxu0  ;;  %8031 = vst [vmem:[#allocation109_spill] sm:$0xff] %v6575_v24  ;;  %v6582_v31 = vor.u32 %v5154_v52, %v4350_v16  ;;  %v5299_v39 = vld [vmem:[#allocation2 + $0x40c] sm:$0xf]  ;;  %v5184_v52 = vld [vmem:[#allocation2 + $0x70] sm:$0xf0] }
 0x22f   :  { %vm3209_vm9 = vcmp.gt.f32.partialorder %v2057_v1, 0.0  ;;  %v3305_v40 = vmul.f32 0.1, %v2057_v1  ;;  %v6567_v5 = vadd.f32 %v2321_v12, %v2233_v9  ;;  %2562 = vmatpush.bf16.msrb.mxu3 %v4937_v61  ;;  %v8037_v12 = vld [vmem:[#allocation80_spill] sm:$0xff]  ;;  %v8038_v61 = vld [vmem:[#allocation81_spill] sm:$0xff] }
 0x230   :  { %8033 = vst [vmem:[#allocation111_spill] sm:$0xff] %v6582_v31  ;;  %v4922_v16 = vld [vmem:[#allocation2 + $0x414] sm:$0xf0]  ;;  %v4814_v24 = vld [vmem:[#allocation2 + $0x33c] sm:$0xf0] }
 0x231   :  { %8030 = vst [vmem:[#allocation84_spill] sm:$0xff] %v6567_v5  ;;  %v6577_v7 = vsel %vm3209_vm9, %v2057_v1, %v3305_v40  ;;  %v8036_v1 = vld [vmem:[#allocation9_spill] sm:$0xff] }
 0x232   :  { %8032 = vst [vmem:[#allocation110_spill] sm:$0xff] %v6577_v7  ;;  %v2145_v34 = vpop.f32.mrf.mxu2 }
 0x233   :  { %v2146_v0 = vadd.f32 %v2145_v34, %v6457_v53  ;;  %v2234_v9 = vpop.f32.mrf.mxu3  ;;  %v4829_v34 = vor.u32 %v5275_v10, %v4826_v4  ;;  %v4910_v10 = vld [vmem:[#allocation2 + $0x3fc] sm:$0xf0] }
 0x234   :  { %v2059_v26 = vpop.f32.mrf.mxu1 }
 0x235   :  { %v2235_v5 = vadd.f32 %v2234_v9, %v2146_v0  ;;  %v2060_v2 = vadd.f32 %v2059_v26, %v8034_v36  ;;  %v4461_v0 = vor.u32 %v5184_v52, %v4460_v14  ;;  %2474 = vmatpush.bf16.msrb.mxu2 %v4829_v34  ;;  %v4925_v36 = vor.u32 %v5299_v39, %v4922_v16  ;;  %v5272_v9 = vld [vmem:[#allocation2 + $0x334] sm:$0xf]  ;;  %v5269_v52 = vld [vmem:[#allocation2 + $0x31c] sm:$0xf]  ;;  %v4802_v16 = vld [vmem:[#allocation2 + $0x324] sm:$0xf0] }
 0x236   :  { %v2326_v51 = vpop.f32.mrf.mxu0  ;;  %v5160_v34 = vld [vmem:[%s7662_s0 + $0x2b4] sm:$0xf] }
 0x237   :  { %v6585_v40 = vadd.f32 %v2323_v28, %v2235_v5  ;;  %2098 = vmatmul.bf16.gmra.mxu1 %v6582_v31  ;;  %2187 = vmatmul.bf16.gmra.mxu2 %v8036_v1  ;;  %v5296_v5 = vld [vmem:[#allocation2 + $0x3f4] sm:$0xf]  ;;  %v4817_v1 = vor.u32 %v5272_v9, %v4814_v24  ;;  %vm3212_vm10 = vcmp.gt.f32.partialorder %v2060_v2, 0.0  ;;  %v3308_v31 = vmul.f32 0.1, %v2060_v2 }
 0x238   :  { %2276 = vmatmul.bf16.gmra.mxu3 %v8037_v12  ;;  %2651 = vmatpush.bf16.msrb.mxu0 %v4461_v0  ;;  %v4913_v12 = vor.u32 %v5296_v5, %v4910_v10  ;;  %v4898_v9 = vld [vmem:[#allocation2 + $0x3e4] sm:$0xf0]  ;;  %v5181_v5 = vld [vmem:[#allocation2 + $0x58] sm:$0xf0] }
 0x239   :  { %8035 = vst [vmem:[#allocation85_spill] sm:$0xff] %v6585_v40  ;;  %2365 = vmatmul.bf16.gmra.mxu0 %v8038_v61  ;;  %2563 = vmatpush.bf16.msrb.mxu3 %v4925_v36  ;;  %v4805_v36 = vor.u32 %v5269_v52, %v4802_v16  ;;  %v6602_v10 = vsel %vm3212_vm10, %v2060_v2, %v3308_v31  ;;  %v4436_v2 = vld [vmem:[#allocation2 + $0x38] sm:$0xf] }
 0x23a   :  { %v2148_v26 = vpop.f32.mrf.mxu2  ;;  %2475 = vmatpush.bf16.msrb.mxu2 %v4817_v1  ;;  %v4448_v1 = vld [vmem:[#allocation2 + $0x50] sm:$0xf]  ;;  %8040 = vst [vmem:[#allocation113_spill] sm:$0xff] %v6602_v10 }
 0x23b   :  { %v2149_v28 = vadd.f32 %v2148_v26, %v6457_v53  ;;  %v2237_v7 = vpop.f32.mrf.mxu3  ;;  %v5293_v26 = vld [vmem:[#allocation2 + $0x3dc] sm:$0xf] }
 0x23c   :  { %v2061_v4 = vpop.f32.mrf.mxu1 }
 0x23d   :  { %v2238_v40 = vadd.f32 %v2237_v7, %v2149_v28  ;;  %v2062_v14 = vadd.f32 %v2061_v4, %v6246_v47  ;;  %2564 = vmatpush.bf16.msrb.mxu3 %v4913_v12  ;;  %v4374_v47 = vld [vmem:[%s7662_s0 + $0x2c8] sm:$0xf0]  ;;  %v4901_v7 = vor.u32 %v5293_v26, %v4898_v9  ;;  %v4449_v28 = vor.u32 %v5181_v5, %v4448_v1  ;;  %v5290_v12 = vld [vmem:[#allocation2 + $0x3c4] sm:$0xf]  ;;  %v4886_v9 = vld [vmem:[#allocation2 + $0x3cc] sm:$0xf0] }
 0x23e   :  { %v2328_v39 = vpop.f32.mrf.mxu0  ;;  %2476 = vmatpush.bf16.msrb.mxu2 %v4805_v36  ;;  %v6609_v26 = vor.u32 %v5160_v34, %v4374_v47  ;;  %v4889_v5 = vor.u32 %v5290_v12, %v4886_v9  ;;  %v4592_v34 = vld [vmem:[#allocation2 + $0x170] sm:$0xf]  ;;  %v5217_v47 = vld [vmem:[#allocation2 + $0x178] sm:$0xf0] }
 0x23f   :  { %vm3215_vm11 = vcmp.gt.f32.partialorder %v2062_v14, 0.0  ;;  %v3311_v0 = vmul.f32 0.1, %v2062_v14  ;;  %v6596_v24 = vadd.f32 %v2326_v51, %v2238_v40  ;;  %v5266_v51 = vld [vmem:[#allocation2 + $0x304] sm:$0xf]  ;;  %2652 = vmatpush.bf16.msrb.mxu0 %v4449_v28 }
 0x240   :  { %v4790_v40 = vld [vmem:[#allocation2 + $0x30c] sm:$0xf0]  ;;  %8042 = vst [vmem:[#allocation115_spill] sm:$0xff] %v6609_v26 }
 0x241   :  { %8039 = vst [vmem:[#allocation112_spill] sm:$0xff] %v6596_v24  ;;  %v6604_v4 = vsel %vm3215_vm11, %v2062_v14, %v3311_v0  ;;  %2565 = vmatpush.bf16.msrb.mxu3 %v4901_v7  ;;  %v4793_v36 = vor.u32 %v5266_v51, %v4790_v40  ;;  %v5178_v14 = vld [vmem:[#allocation2 + $0x40] sm:$0xf0]  ;;  %v4424_v7 = vld [vmem:[#allocation2 + $0x20] sm:$0xf] }
 0x242   :  { %8041 = vst [vmem:[#allocation114_spill] sm:$0xff] %v6604_v4  ;;  %v2150_v61 = vpop.f32.mrf.mxu2  ;;  %v4437_v50 = vor.u32 %v5178_v14, %v4436_v2 }
 0x243   :  { %v2151_v16 = vadd.f32 %v2150_v61, %v6457_v53  ;;  %v2239_v24 = vpop.f32.mrf.mxu3  ;;  %2477 = vmatpush.bf16.msrb.mxu2 %v4793_v36  ;;  %v8043_v61 = vld [vmem:[#allocation12_spill] sm:$0xff]  ;;  %v5172_v36 = vld [vmem:[#allocation2 + $0x10] sm:$0xf0] }
 0x244   :  { %v2064_v31 = vpop.f32.mrf.mxu1  ;;  %2653 = vmatpush.bf16.msrb.mxu0 %v4437_v50 }
 0x245   :  { %v2240_v0 = vadd.f32 %v2239_v24, %v2151_v16  ;;  %v2065_v1 = vadd.f32 %v2064_v31, %v6253_v56  ;;  %2566 = vmatpush.bf16.msrb.mxu3 %v4889_v5  ;;  %v4593_v56 = vor.u32 %v5217_v47, %v4592_v34  ;;  %v5175_v24 = vld [vmem:[#allocation2 + $0x28] sm:$0xf0]  ;;  %v4412_v16 = vld [vmem:[#allocation2 + $0x8] sm:$0xf]  ;;  %v5166_v34 = vld [vmem:[%s7662_s0 + $0x2e4] sm:$0xf] }
 0x246   :  { %v2331_v35 = vpop.f32.mrf.mxu0  ;;  %v4425_v51 = vor.u32 %v5175_v24, %v4424_v7  ;;  %v4413_v2 = vor.u32 %v5172_v36, %v4412_v16  ;;  %v4398_v47 = vld [vmem:[%s7662_s0 + $0x2f8] sm:$0xf0] }
 0x247   :  { %v6612_v52 = vadd.f32 %v2328_v39, %v2240_v0  ;;  %2103 = vmatmul.bf16.gmra.mxu1 %v6609_v26  ;;  %2192 = vmatmul.bf16.gmra.mxu2 %v8043_v61  ;;  %v3314_v9 = vmul.f32 0.1, %v2065_v1  ;;  %vm3218_vm12 = vcmp.gt.f32.partialorder %v2065_v1, 0.0 }
 0x248   :  { %2281 = vmatmul.bf16.gmra.mxu3 %v6237_v20  ;;  %2737 = vmatpush.bf16.msra.mxu1 %v4593_v56 }
 0x249   :  { %2370 = vmatmul.bf16.gmra.mxu0 %v6239_v8  ;;  %v6628_v7 = vsel %vm3218_vm12, %v2065_v1, %v3314_v9  ;;  %v8047_v1 = vld [vmem:[#allocation15_spill] sm:$0xff]  ;;  %v5262_v8 = vld [vmem:[#allocation2 + $0x2e0] sm:$0xf0] }
 0x24a   :  { %v2153_v28 = vpop.f32.mrf.mxu2  ;;  %2654 = vmatpush.bf16.msrb.mxu0 %v4425_v51  ;;  %8044 = vst [vmem:[#allocation12_spill] sm:$0xff] %v6628_v7  ;;  %v6635_v51 = vor.u32 %v5166_v34, %v4398_v47 }
 0x24b   :  { %v2154_v39 = vadd.f32 %v2153_v28, %v6457_v53  ;;  %v2242_v40 = vpop.f32.mrf.mxu3 }
 0x24c   :  { %v2066_v12 = vpop.f32.mrf.mxu1  ;;  %8046 = vst [vmem:[#allocation117_spill] sm:$0xff] %v6635_v51 }
 0x24d   :  { %v2243_v50 = vadd.f32 %v2242_v40, %v2154_v39  ;;  %v2067_v31 = vadd.f32 %v2066_v12, %v6288_v3 }
 0x24e   :  { %v2333_v14 = vpop.f32.mrf.mxu0  ;;  %2655 = vmatpush.bf16.msrb.mxu0 %v4413_v2 }
 0x24f   :  { %vm3221_vm13 = vcmp.gt.f32.partialorder %v2067_v31, 0.0  ;;  %v3317_v0 = vmul.f32 0.1, %v2067_v31  ;;  %v6620_v5 = vadd.f32 %v2331_v35, %v2243_v50 }
 0x251   :  { %v6630_v56 = vsel %vm3221_vm13, %v2067_v31, %v3317_v0 }
 0x252   :  { %8045 = vst [vmem:[#allocation116_spill] sm:$0xff] %v6630_v56  ;;  %v2155_v3 = vpop.f32.mrf.mxu2 }
 0x253   :  { %v2156_v35 = vadd.f32 %v2155_v3, %v6457_v53  ;;  %v2244_v28 = vpop.f32.mrf.mxu3 }
 0x254   :  { %v2069_v39 = vpop.f32.mrf.mxu1 }
 0x255   :  { %v2245_v40 = vadd.f32 %v2244_v28, %v2156_v35  ;;  %v2070_v12 = vadd.f32 %v2069_v39, %v6295_v33 }
 0x256   :  { %v2336_v16 = vpop.f32.mrf.mxu0 }
 0x257   :  { %v6638_v36 = vadd.f32 %v2333_v14, %v2245_v40  ;;  %2108 = vmatmul.bf16.gmra.mxu1 %v6635_v51  ;;  %2197 = vmatmul.bf16.gmra.mxu2 %v8047_v1  ;;  %v3320_v0 = vmul.f32 0.1, %v2070_v12  ;;  %vm3224_vm14 = vcmp.gt.f32.partialorder %v2070_v12, 0.0 }
 0x258   :  { %2286 = vmatmul.bf16.gmra.mxu3 %v6279_v49 }
 0x259   :  { %2375 = vmatmul.bf16.gmra.mxu0 %v6281_v48  ;;  %v6648_v35 = vsel %vm3224_vm14, %v2070_v12, %v3320_v0  ;;  %v8051_v12 = vld [vmem:[#allocation19_spill] sm:$0xff]  ;;  %v4580_v0 = vld [vmem:[#allocation2 + $0x158] sm:$0xf] }
 0x25a   :  { %v2158_v9 = vpop.f32.mrf.mxu2  ;;  %8048 = vst [vmem:[#allocation15_spill] sm:$0xff] %v6648_v35 }
 0x25b   :  { %v2159_v50 = vadd.f32 %v2158_v9, %v6457_v53  ;;  %v2247_v31 = vpop.f32.mrf.mxu3 }
 0x25c   :  { %v2071_v2 = vpop.f32.mrf.mxu1 }
 0x25d   :  { %v2248_v34 = vadd.f32 %v2247_v31, %v2159_v50  ;;  %v2072_v33 = vadd.f32 %v2071_v2, %v6306_v55 }
 0x25e   :  { %v2338_v14 = vpop.f32.mrf.mxu0 }
 0x25f   :  { %vm3227_vm15 = vcmp.gt.f32.partialorder %v2072_v33, 0.0  ;;  %v3323_v47 = vmul.f32 0.1, %v2072_v33  ;;  %v6646_v3 = vadd.f32 %v2336_v16, %v2248_v34  ;;  %v8050_v16 = vld [vmem:[#allocation18_spill] sm:$0xff]  ;;  %v5214_v34 = vld [vmem:[#allocation2 + $0x160] sm:$0xf0] }
 0x261   :  { %v6650_v28 = vsel %vm3227_vm15, %v2072_v33, %v3323_v47  ;;  %v4581_v33 = vor.u32 %v5214_v34, %v4580_v0 }
 0x262   :  { %8049 = vst [vmem:[#allocation118_spill] sm:$0xff] %v6650_v28  ;;  %v2160_v39 = vpop.f32.mrf.mxu2 }
 0x263   :  { %v2161_v9 = vadd.f32 %v2160_v39, %v6457_v53  ;;  %v2249_v24 = vpop.f32.mrf.mxu3  ;;  %2738 = vmatpush.bf16.msra.mxu1 %v4581_v33 }
 0x264   :  { %v2074_v50 = vpop.f32.mrf.mxu1 }
 0x265   :  { %v2250_v31 = vadd.f32 %v2249_v24, %v2161_v9  ;;  %v2075_v55 = vadd.f32 %v2074_v50, %v6313_v22 }
 0x266   :  { %v2341_v2 = vpop.f32.mrf.mxu0 }
 0x267   :  { %v6656_v7 = vadd.f32 %v2338_v14, %v2250_v31  ;;  %2389 = vmatmul.bf16.vlgmr.msrb.gmra.mxu1 %v8050_v16  ;;  %2478 = vmatmul.bf16.vlgmr.msrb.gmra.mxu2 %v8051_v12  ;;  %v3326_v9 = vmul.f32 0.1, %v2075_v55  ;;  %vm3230_vm0 = vcmp.gt.f32.partialorder %v2075_v55, 0.0 }
 0x268   :  { %2567 = vmatmul.bf16.vlgmr.msrb.gmra.mxu3 %v6303_v21 }
 0x269   :  { %2656 = vmatmul.bf16.vlgmr.msrb.gmra.mxu0 %v5460_v41  ;;  %v6666_v28 = vsel %vm3230_vm0, %v2075_v55, %v3326_v9  ;;  %v8055_v55 = vld [vmem:[#allocation23_spill] sm:$0xff] }
 0x26a   :  { %v2163_v47 = vpop.f32.mrf.mxu2  ;;  %8052 = vst [vmem:[#allocation18_spill] sm:$0xff] %v6666_v28 }
 0x26b   :  { %v2164_v39 = vadd.f32 %v2163_v47, %v6457_v53  ;;  %v2252_v24 = vpop.f32.mrf.mxu3 }
 0x26c   :  { %v2076_v22 = vpop.f32.mrf.mxu1 }
 0x26d   :  { %v2253_v14 = vadd.f32 %v2252_v24, %v2164_v39  ;;  %v2077_v50 = vadd.f32 %v2076_v22, %v6324_v59 }
 0x26e   :  { %v2343_v31 = vpop.f32.mrf.mxu0 }
 0x26f   :  { %vm3233_vm1 = vcmp.gt.f32.partialorder %v2077_v50, 0.0  ;;  %v3329_v40 = vmul.f32 0.1, %v2077_v50  ;;  %v6664_v35 = vadd.f32 %v2341_v2, %v2253_v14  ;;  %v8054_v2 = vld [vmem:[#allocation22_spill] sm:$0xff] }
 0x271   :  { %v6668_v41 = vsel %vm3233_vm1, %v2077_v50, %v3329_v40 }
 0x272   :  { %8053 = vst [vmem:[#allocation19_spill] sm:$0xff] %v6668_v41  ;;  %v2165_v0 = vpop.f32.mrf.mxu2 }
 0x273   :  { %v2166_v33 = vadd.f32 %v2165_v0, %v6457_v53  ;;  %v2254_v47 = vpop.f32.mrf.mxu3 }
 0x274   :  { %v2079_v39 = vpop.f32.mrf.mxu1 }
 0x275   :  { %v2255_v24 = vadd.f32 %v2254_v47, %v2166_v33  ;;  %v2080_v59 = vadd.f32 %v2079_v39, %v6331_v45 }
 0x276   :  { %v2346_v22 = vpop.f32.mrf.mxu0 }
 0x277   :  { %v6674_v56 = vadd.f32 %v2343_v31, %v2255_v24  ;;  %2394 = vmatmul.bf16.gmra.mxu1 %v8054_v2  ;;  %2483 = vmatmul.bf16.gmra.mxu2 %v8055_v55  ;;  %v3332_v0 = vmul.f32 0.1, %v2080_v59  ;;  %vm3236_vm2 = vcmp.gt.f32.partialorder %v2080_v59, 0.0 }
 0x278   :  { %2572 = vmatmul.bf16.gmra.mxu3 %v6321_v23 }
 0x279   :  { %2661 = vmatmul.bf16.gmra.mxu0 %v5496_v30  ;;  %v6684_v24 = vsel %vm3236_vm2, %v2080_v59, %v3332_v0  ;;  %v8059_v59 = vld [vmem:[#allocation27_spill] sm:$0xff]  ;;  %v4568_v0 = vld [vmem:[#allocation2 + $0x140] sm:$0xf] }
 0x27a   :  { %v2168_v40 = vpop.f32.mrf.mxu2  ;;  %8056 = vst [vmem:[#allocation22_spill] sm:$0xff] %v6684_v24 }
 0x27b   :  { %v2169_v9 = vadd.f32 %v2168_v40, %v6457_v53  ;;  %v2257_v14 = vpop.f32.mrf.mxu3 }
 0x27c   :  { %v2081_v50 = vpop.f32.mrf.mxu1 }
 0x27d   :  { %v2258_v33 = vadd.f32 %v2257_v14, %v2169_v9  ;;  %v2082_v45 = vadd.f32 %v2081_v50, %v6342_v18 }
 0x27e   :  { %v2348_v31 = vpop.f32.mrf.mxu0 }
 0x27f   :  { %vm3239_vm3 = vcmp.gt.f32.partialorder %v2082_v45, 0.0  ;;  %v3335_v47 = vmul.f32 0.1, %v2082_v45  ;;  %v6682_v39 = vadd.f32 %v2346_v22, %v2258_v33  ;;  %v8058_v22 = vld [vmem:[#allocation26_spill] sm:$0xff] }
 0x280   :  { %v5211_v33 = vld [vmem:[#allocation2 + $0x148] sm:$0xf0] }
 0x281   :  { %v6686_v34 = vsel %vm3239_vm3, %v2082_v45, %v3335_v47  ;;  %v4569_v45 = vor.u32 %v5211_v33, %v4568_v0 }
 0x282   :  { %8057 = vst [vmem:[#allocation23_spill] sm:$0xff] %v6686_v34  ;;  %v2170_v30 = vpop.f32.mrf.mxu2 }
 0x283   :  { %v2171_v28 = vadd.f32 %v2170_v30, %v6457_v53  ;;  %v2259_v41 = vpop.f32.mrf.mxu3  ;;  %2739 = vmatpush.bf16.msra.mxu1 %v4569_v45 }
 0x284   :  { %v2084_v9 = vpop.f32.mrf.mxu1 }
 0x285   :  { %v2260_v14 = vadd.f32 %v2259_v41, %v2171_v28  ;;  %v2085_v18 = vadd.f32 %v2084_v9, %v6349_v42 }
 0x286   :  { %v2351_v50 = vpop.f32.mrf.mxu0 }
 0x287   :  { %v6692_v10 = vadd.f32 %v2348_v31, %v2260_v14  ;;  %2399 = vmatmul.bf16.gmra.mxu1 %v8058_v22  ;;  %2488 = vmatmul.bf16.gmra.mxu2 %v8059_v59  ;;  %v3338_v41 = vmul.f32 0.1, %v2085_v18  ;;  %vm3242_vm4 = vcmp.gt.f32.partialorder %v2085_v18, 0.0 }
 0x288   :  { %2577 = vmatmul.bf16.gmra.mxu3 %v6339_v46  ;;  %v5265_v46 = vld [vmem:[#allocation2 + $0x2f8] sm:$0xf0] }
 0x289   :  { %2666 = vmatmul.bf16.gmra.mxu0 %v5532_v25  ;;  %v6702_v34 = vsel %vm3242_vm4, %v2085_v18, %v3338_v41  ;;  %v8063_v18 = vld [vmem:[#allocation31_spill] sm:$0xff] }
 0x28a   :  { %v2173_v47 = vpop.f32.mrf.mxu2  ;;  %8060 = vst [vmem:[#allocation26_spill] sm:$0xff] %v6702_v34 }
 0x28b   :  { %v2174_v30 = vadd.f32 %v2173_v47, %v6457_v53  ;;  %v2262_v28 = vpop.f32.mrf.mxu3 }
 0x28c   :  { %v2086_v42 = vpop.f32.mrf.mxu1 }
 0x28d   :  { %v2263_v31 = vadd.f32 %v2262_v28, %v2174_v30  ;;  %v2087_v9 = vadd.f32 %v2086_v42, %v6360_v27 }
 0x28e   :  { %v2353_v14 = vpop.f32.mrf.mxu0 }
 0x28f   :  { %vm3245_vm5 = vcmp.gt.f32.partialorder %v2087_v9, 0.0  ;;  %v3341_v40 = vmul.f32 0.1, %v2087_v9  ;;  %v6700_v24 = vadd.f32 %v2351_v50, %v2263_v31  ;;  %v8062_v50 = vld [vmem:[#allocation30_spill] sm:$0xff] }
 0x291   :  { %v6704_v25 = vsel %vm3245_vm5, %v2087_v9, %v3341_v40 }
 0x292   :  { %8061 = vst [vmem:[#allocation27_spill] sm:$0xff] %v6704_v25  ;;  %v2175_v0 = vpop.f32.mrf.mxu2 }
 0x293   :  { %v2176_v45 = vadd.f32 %v2175_v0, %v6457_v53  ;;  %v2264_v47 = vpop.f32.mrf.mxu3 }
 0x294   :  { %v2089_v30 = vpop.f32.mrf.mxu1 }
 0x295   :  { %v2265_v28 = vadd.f32 %v2264_v47, %v2176_v45  ;;  %v2090_v27 = vadd.f32 %v2089_v30, %v6367_v62 }
 0x296   :  { %v2356_v42 = vpop.f32.mrf.mxu0 }
 0x297   :  { %v6710_v4 = vadd.f32 %v2353_v14, %v2265_v28  ;;  %2404 = vmatmul.bf16.gmra.mxu1 %v8062_v50  ;;  %2493 = vmatmul.bf16.gmra.mxu2 %v8063_v18  ;;  %v3344_v0 = vmul.f32 0.1, %v2090_v27  ;;  %vm3248_vm6 = vcmp.gt.f32.partialorder %v2090_v27, 0.0 }
 0x298   :  { %2582 = vmatmul.bf16.gmra.mxu3 %v6357_v6 }
 0x299   :  { %2671 = vmatmul.bf16.gmra.mxu0 %v5568_v54  ;;  %v6720_v28 = vsel %vm3248_vm6, %v2090_v27, %v3344_v0  ;;  %v8067_v27 = vld [vmem:[#allocation35_spill] sm:$0xff]  ;;  %v4556_v0 = vld [vmem:[#allocation2 + $0x128] sm:$0xf] }
 0x29a   :  { %v2178_v40 = vpop.f32.mrf.mxu2  ;;  %8064 = vst [vmem:[#allocation30_spill] sm:$0xff] %v6720_v28 }
 0x29b   :  { %v2179_v41 = vadd.f32 %v2178_v40, %v6457_v53  ;;  %v2267_v31 = vpop.f32.mrf.mxu3 }
 0x29c   :  { %v2091_v9 = vpop.f32.mrf.mxu1 }
 0x29d   :  { %v2268_v45 = vadd.f32 %v2267_v31, %v2179_v41  ;;  %v2092_v62 = vadd.f32 %v2091_v9, %v6378_v38 }
 0x29e   :  { %v2358_v14 = vpop.f32.mrf.mxu0 }
 0x29f   :  { %vm3251_vm7 = vcmp.gt.f32.partialorder %v2092_v62, 0.0  ;;  %v3347_v47 = vmul.f32 0.1, %v2092_v62  ;;  %v6718_v30 = vadd.f32 %v2356_v42, %v2268_v45  ;;  %v8066_v42 = vld [vmem:[#allocation34_spill] sm:$0xff]  ;;  %v5208_v45 = vld [vmem:[#allocation2 + $0x130] sm:$0xf0] }
 0x2a1   :  { %v6722_v33 = vsel %vm3251_vm7, %v2092_v62, %v3347_v47  ;;  %v4557_v62 = vor.u32 %v5208_v45, %v4556_v0 }
 0x2a2   :  { %8065 = vst [vmem:[#allocation31_spill] sm:$0xff] %v6722_v33  ;;  %v2180_v54 = vpop.f32.mrf.mxu2 }
 0x2a3   :  { %v2181_v34 = vadd.f32 %v2180_v54, %v6457_v53  ;;  %v2269_v25 = vpop.f32.mrf.mxu3  ;;  %2740 = vmatpush.bf16.msra.mxu1 %v4557_v62 }
 0x2a4   :  { %v2094_v41 = vpop.f32.mrf.mxu1 }
 0x2a5   :  { %v2270_v31 = vadd.f32 %v2269_v25, %v2181_v34  ;;  %v2095_v38 = vadd.f32 %v2094_v41, %v6385_v13 }
 0x2a6   :  { %v2361_v9 = vpop.f32.mrf.mxu0 }
 0x2a7   :  { %v6728_v6 = vadd.f32 %v2358_v14, %v2270_v31  ;;  %2409 = vmatmul.bf16.gmra.mxu1 %v8066_v42  ;;  %2498 = vmatmul.bf16.gmra.mxu2 %v8067_v27  ;;  %v3350_v25 = vmul.f32 0.1, %v2095_v38  ;;  %vm3254_vm8 = vcmp.gt.f32.partialorder %v2095_v38, 0.0 }
 0x2a8   :  { %2587 = vmatmul.bf16.gmra.mxu3 %v6375_v43 }
 0x2a9   :  { %2676 = vmatmul.bf16.gmra.mxu0 %v5454_v37  ;;  %v6738_v33 = vsel %vm3254_vm8, %v2095_v38, %v3350_v25  ;;  %v8071_v38 = vld [vmem:[#allocation40_spill] sm:$0xff] }
 0x2aa   :  { %v2183_v47 = vpop.f32.mrf.mxu2  ;;  %8068 = vst [vmem:[#allocation34_spill] sm:$0xff] %v6738_v33 }
 0x2ab   :  { %v2184_v54 = vadd.f32 %v2183_v47, %v6457_v53  ;;  %v2272_v34 = vpop.f32.mrf.mxu3 }
 0x2ac   :  { %v2096_v13 = vpop.f32.mrf.mxu1 }
 0x2ad   :  { %v2273_v14 = vadd.f32 %v2272_v34, %v2184_v54  ;;  %v2097_v41 = vadd.f32 %v2096_v13, %v6396_v17 }
 0x2ae   :  { %v2363_v31 = vpop.f32.mrf.mxu0 }
 0x2af   :  { %vm3257_vm9 = vcmp.gt.f32.partialorder %v2097_v41, 0.0  ;;  %v3353_v40 = vmul.f32 0.1, %v2097_v41  ;;  %v6736_v28 = vadd.f32 %v2361_v9, %v2273_v14  ;;  %v8070_v9 = vld [vmem:[#allocation39_spill] sm:$0xff] }
 0x2b1   :  { %v6740_v37 = vsel %vm3257_vm9, %v2097_v41, %v3353_v40 }
 0x2b2   :  { %8069 = vst [vmem:[#allocation35_spill] sm:$0xff] %v6740_v37  ;;  %v2185_v0 = vpop.f32.mrf.mxu2 }
 0x2b3   :  { %v2186_v62 = vadd.f32 %v2185_v0, %v6457_v53  ;;  %v2274_v47 = vpop.f32.mrf.mxu3 }
 0x2b4   :  { %v2099_v54 = vpop.f32.mrf.mxu1 }
 0x2b5   :  { %v2275_v34 = vadd.f32 %v2274_v47, %v2186_v62  ;;  %v2100_v17 = vadd.f32 %v2099_v54, %v6403_v60 }
 0x2b6   :  { %v2366_v13 = vpop.f32.mrf.mxu0 }
 0x2b7   :  { %v6746_v43 = vadd.f32 %v2363_v31, %v2275_v34  ;;  %2414 = vmatmul.bf16.gmra.mxu1 %v8070_v9  ;;  %2503 = vmatmul.bf16.gmra.mxu2 %v8071_v38  ;;  %v3356_v0 = vmul.f32 0.1, %v2100_v17  ;;  %vm3260_vm10 = vcmp.gt.f32.partialorder %v2100_v17, 0.0 }
 0x2b8   :  { %2592 = vmatmul.bf16.gmra.mxu3 %v6393_v29 }
 0x2b9   :  { %2681 = vmatmul.bf16.gmra.mxu0 %v7974_v44  ;;  %v6756_v34 = vsel %vm3260_vm10, %v2100_v17, %v3356_v0  ;;  %v8075_v17 = vld [vmem:[#allocation46_spill] sm:$0xff]  ;;  %v4544_v0 = vld [vmem:[#allocation2 + $0x110] sm:$0xf] }
 0x2ba   :  { %v2188_v40 = vpop.f32.mrf.mxu2  ;;  %8072 = vst [vmem:[#allocation39_spill] sm:$0xff] %v6756_v34 }
 0x2bb   :  { %v2189_v25 = vadd.f32 %v2188_v40, %v6457_v53  ;;  %v2277_v14 = vpop.f32.mrf.mxu3 }
 0x2bc   :  { %v2101_v41 = vpop.f32.mrf.mxu1 }
 0x2bd   :  { %v2278_v62 = vadd.f32 %v2277_v14, %v2189_v25  ;;  %v2102_v60 = vadd.f32 %v2101_v41, %v6414_v19 }
 0x2be   :  { %v2368_v31 = vpop.f32.mrf.mxu0 }
 0x2bf   :  { %vm3263_vm11 = vcmp.gt.f32.partialorder %v2102_v60, 0.0  ;;  %v3359_v47 = vmul.f32 0.1, %v2102_v60  ;;  %v6754_v54 = vadd.f32 %v2366_v13, %v2278_v62  ;;  %v8074_v13 = vld [vmem:[#allocation45_spill] sm:$0xff]  ;;  %v5205_v62 = vld [vmem:[#allocation2 + $0x118] sm:$0xf0] }
 0x2c1   :  { %v6758_v45 = vsel %vm3263_vm11, %v2102_v60, %v3359_v47  ;;  %v4545_v60 = vor.u32 %v5205_v62, %v4544_v0 }
 0x2c2   :  { %8073 = vst [vmem:[#allocation40_spill] sm:$0xff] %v6758_v45  ;;  %v2190_v44 = vpop.f32.mrf.mxu2  ;;  %v4688_v45 = vld [vmem:[#allocation2 + $0x230] sm:$0xf] }
 0x2c3   :  { %v2191_v33 = vadd.f32 %v2190_v44, %v6457_v53  ;;  %v2279_v37 = vpop.f32.mrf.mxu3  ;;  %2741 = vmatpush.bf16.msra.mxu1 %v4545_v60 }
 0x2c4   :  { %v2104_v25 = vpop.f32.mrf.mxu1 }
 0x2c5   :  { %v2280_v14 = vadd.f32 %v2279_v37, %v2191_v33  ;;  %v2105_v19 = vadd.f32 %v2104_v25, %v6421_v63 }
 0x2c6   :  { %v2371_v41 = vpop.f32.mrf.mxu0 }
 0x2c7   :  { %v6764_v29 = vadd.f32 %v2368_v31, %v2280_v14  ;;  %2419 = vmatmul.bf16.gmra.mxu1 %v8074_v13  ;;  %2508 = vmatmul.bf16.gmra.mxu2 %v8075_v17  ;;  %v3362_v37 = vmul.f32 0.1, %v2105_v19  ;;  %vm3266_vm12 = vcmp.gt.f32.partialorder %v2105_v19, 0.0 }
 0x2c8   :  { %2597 = vmatmul.bf16.gmra.mxu3 %v6411_v11  ;;  %v5241_v11 = vld [vmem:[#allocation2 + $0x238] sm:$0xf0] }
 0x2c9   :  { %2686 = vmatmul.bf16.gmra.mxu0 %v7980_v32  ;;  %v4784_v32 = vld [vmem:[#allocation2 + $0x2f0] sm:$0xf]  ;;  %v6774_v0 = vsel %vm3266_vm12, %v2105_v19, %v3362_v37  ;;  %v4689_v60 = vor.u32 %v5241_v11, %v4688_v45  ;;  %v8080_v11 = vld [vmem:[#allocation52_spill] sm:$0xff] }
 0x2ca   :  { %v2193_v47 = vpop.f32.mrf.mxu2  ;;  %8076 = vst [vmem:[#allocation45_spill] sm:$0xff] %v6774_v0  ;;  %v8081_v45 = vld [vmem:[#allocation7_spill] sm:$0xff] }
 0x2cb   :  { %v2194_v44 = vadd.f32 %v2193_v47, %v6457_v53  ;;  %v2282_v33 = vpop.f32.mrf.mxu3  ;;  %2826 = vmatpush.bf16.msra.mxu2 %v4689_v60 }
 0x2cc   :  { %v2106_v63 = vpop.f32.mrf.mxu1 }
 0x2cd   :  { %v2283_v31 = vadd.f32 %v2282_v33, %v2194_v44  ;;  %v2107_v25 = vadd.f32 %v2106_v63, %v6432_v57  ;;  %v4785_v63 = vor.u32 %v5265_v46, %v4784_v32  ;;  %v4880_v44 = vld [vmem:[#allocation2 + $0x3b0] sm:$0xf]  ;;  %v5289_v46 = vld [vmem:[#allocation2 + $0x3b8] sm:$0xf0] }
 0x2ce   :  { %v2373_v14 = vpop.f32.mrf.mxu0 }
 0x2cf   :  { %vm3269_vm13 = vcmp.gt.f32.partialorder %v2107_v25, 0.0  ;;  %v3365_v40 = vmul.f32 0.1, %v2107_v25  ;;  %v6772_v34 = vadd.f32 %v2371_v41, %v2283_v31  ;;  %v8078_v31 = vld [vmem:[#allocation44_spill] sm:$0xff]  ;;  %2915 = vmatpush.bf16.msra.mxu3 %v4785_v63 }
 0x2d1   :  { %v6776_v62 = vsel %vm3269_vm13, %v2107_v25, %v3365_v40  ;;  %v8079_v40 = vld [vmem:[#allocation51_spill] sm:$0xff]  ;;  %v8082_v25 = vld [vmem:[#allocation13_spill] sm:$0xff] }
 0x2d2   :  { %8077 = vst [vmem:[#allocation46_spill] sm:$0xff] %v6776_v62  ;;  %v2195_v47 = vpop.f32.mrf.mxu2 }
 0x2d3   :  { %v2196_v57 = vadd.f32 %v2195_v47, %v6457_v53  ;;  %v2284_v33 = vpop.f32.mrf.mxu3 }
 0x2d4   :  { %v2109_v23 = vpop.f32.mrf.mxu1 }
 0x2d5   :  { %v2285_v41 = vadd.f32 %v2284_v33, %v2196_v57  ;;  %v2110_v21 = vadd.f32 %v2109_v23, %v8078_v31  ;;  %v4881_v57 = vor.u32 %v5289_v46, %v4880_v44 }
 0x2d6   :  { %v2376_v19 = vpop.f32.mrf.mxu0 }
 0x2d7   :  { %v6782_v37 = vadd.f32 %v2373_v14, %v2285_v41  ;;  %2424 = vmatmul.bf16.gmra.mxu1 %v8079_v40  ;;  %2513 = vmatmul.bf16.gmra.mxu2 %v8080_v11  ;;  %v3368_v33 = vmul.f32 0.1, %v2110_v21  ;;  %v8083_v14 = vld [vmem:[#allocation10_spill] sm:$0xff]  ;;  %vm3272_vm14 = vcmp.gt.f32.partialorder %v2110_v21, 0.0 }
 0x2d8   :  { %2602 = vmatmul.bf16.gmra.mxu3 %v8081_v45  ;;  %3004 = vmatpush.bf16.msra.mxu0 %v4881_v57  ;;  %v8086_v57 = vld [vmem:[#allocation50_spill] sm:$0xff] }
 0x2d9   :  { %2691 = vmatmul.bf16.gmra.mxu0 %v8082_v25  ;;  %v6792_v25 = vsel %vm3272_vm14, %v2110_v21, %v3368_v33  ;;  %v8089_v21 = vld [vmem:[#allocation58_spill] sm:$0xff]  ;;  %v4532_v33 = vld [vmem:[#allocation2 + $0xf8] sm:$0xf] }
 0x2da   :  { %v2198_v47 = vpop.f32.mrf.mxu2  ;;  %8084 = vst [vmem:[#allocation44_spill] sm:$0xff] %v6792_v25  ;;  %v5238_v25 = vld [vmem:[#allocation2 + $0x220] sm:$0xf0] }
 0x2db   :  { %v2199_v32 = vadd.f32 %v2198_v47, %v6457_v53  ;;  %v2287_v60 = vpop.f32.mrf.mxu3 }
 0x2dc   :  { %v2111_v23 = vpop.f32.mrf.mxu1 }
 0x2dd   :  { %v2288_v63 = vadd.f32 %v2287_v60, %v2199_v32  ;;  %v2112_v41 = vadd.f32 %v2111_v23, %v8083_v14 }
 0x2de   :  { %v2378_v31 = vpop.f32.mrf.mxu0 }
 0x2df   :  { %vm3275_vm15 = vcmp.gt.f32.partialorder %v2112_v41, 0.0  ;;  %v3371_v0 = vmul.f32 0.1, %v2112_v41  ;;  %v6790_v62 = vadd.f32 %v2376_v19, %v2288_v63  ;;  %v8088_v19 = vld [vmem:[#allocation57_spill] sm:$0xff] }
 0x2e0   :  { %v5202_v63 = vld [vmem:[#allocation2 + $0x100] sm:$0xf0] }
 0x2e1   :  { %v6794_v45 = vsel %vm3275_vm15, %v2112_v41, %v3371_v0  ;;  %v8090_v0 = vld [vmem:[#allocation47_spill] sm:$0xff]  ;;  %v8091_v41 = vld [vmem:[#allocation5_spill] sm:$0xff] }
 0x2e2   :  { %8085 = vst [vmem:[#allocation51_spill] sm:$0xff] %v6794_v45  ;;  %v2200_v48 = vpop.f32.mrf.mxu2  ;;  %v4772_v45 = vld [vmem:[#allocation2 + $0x2d8] sm:$0xf] }
 0x2e3   :  { %v2201_v47 = vadd.f32 %v2200_v48, %v6457_v53  ;;  %v2289_v46 = vpop.f32.mrf.mxu3  ;;  %v4533_v53 = vor.u32 %v5202_v63, %v4532_v33  ;;  %v4773_v20 = vor.u32 %v5262_v8, %v4772_v45  ;;  %v4868_v8 = vld [vmem:[#allocation2 + $0x398] sm:$0xf]  ;;  %v8096_v45 = vld [vmem:[#allocation59_spill] sm:$0xff] }
 0x2e4   :  { %v2390_v32 = vpop.f32.mrf.mxu1 }
 0x2e5   :  { %v2290_v60 = vadd.f32 %v2289_v46, %v2201_v47  ;;  %v2391_v23 = vadd.f32 %v2390_v32, %v8086_v57  ;;  %2742 = vmatpush.bf16.msra.mxu1 %v4533_v53  ;;  %v4676_v57 = vld [vmem:[#allocation2 + $0x218] sm:$0xf]  ;;  %2916 = vmatpush.bf16.msra.mxu3 %v4773_v20 }
 0x2e6   :  { %v6800_v14 = vpop.f32.mrf.mxu0 }
 0x2e7   :  { %8087 = vst [vmem:[#allocation52_spill] sm:$0xff] %v6800_v14  ;;  %v6802_v49 = vadd.f32 %v2378_v31, %v2290_v60  ;;  %2429 = vmatmul.bf16.gmra.mxu1 %v8088_v19  ;;  %2518 = vmatmul.bf16.gmra.mxu2 %v8089_v21 }
 0x2e8   :  { %2607 = vmatmul.bf16.gmra.mxu3 %v8090_v0  ;;  %v4677_v0 = vor.u32 %v5238_v25, %v4676_v57  ;;  %v5286_v25 = vld [vmem:[#allocation2 + $0x3a0] sm:$0xf0] }
 0x2e9   :  { %2696 = vmatmul.bf16.gmra.mxu0 %v8091_v41 }
 0x2ea   :  { %v2479_v48 = vpop.f32.mrf.mxu2  ;;  %2827 = vmatpush.bf16.msra.mxu2 %v4677_v0 }
 0x2eb   :  { %v2480_v44 = vadd.f32 %v2479_v48, %v2391_v23  ;;  %v2568_v47 = vpop.f32.mrf.mxu3  ;;  %v8094_v48 = vld [vmem:[#allocation62_spill] sm:$0xff] }
 0x2ec   :  { %v2392_v46 = vpop.f32.mrf.mxu1 }
 0x2ed   :  { %v2569_v32 = vadd.f32 %v2568_v47, %v2480_v44  ;;  %v2393_v31 = vadd.f32 %v2392_v46, %v6481_v15  ;;  %v8095_v47 = vld [vmem:[#allocation63_spill] sm:$0xff] }
 0x2ee   :  { %v6809_v60 = vpop.f32.mrf.mxu0 }
 0x2ef   :  { %8092 = vst [vmem:[#allocation13_spill] sm:$0xff] %v6809_v60  ;;  %v3279_v33 = vmul.f32 0.1, %v2569_v32  ;;  %vm3183_vm0 = vcmp.gt.f32.partialorder %v2569_v32, 0.0 }
 0x2f2   :  { %v2481_v21 = vpop.f32.mrf.mxu2 }
 0x2f3   :  { %v2482_v19 = vadd.f32 %v2481_v21, %v2393_v31  ;;  %v2570_v41 = vpop.f32.mrf.mxu3  ;;  %v6817_v21 = vsel %vm3183_vm0, %v2569_v32, %v3279_v33 }
 0x2f4   :  { %v2395_v23 = vpop.f32.mrf.mxu1  ;;  %8097 = vst [vmem:[#allocation50_spill] sm:$0xff] %v6817_v21 }
 0x2f5   :  { %v2571_v63 = vadd.f32 %v2570_v41, %v2482_v19  ;;  %v2396_v44 = vadd.f32 %v2395_v23, %v6489_v58  ;;  %v8099_v19 = vld [vmem:[#allocation8_spill] sm:$0xff]  ;;  %v4869_v58 = vor.u32 %v5286_v25, %v4868_v8  ;;  %v8102_v8 = vld [vmem:[#allocation101_spill] sm:$0xff] }
 0x2f6   :  { %v6812_v15 = vpop.f32.mrf.mxu0 }
 0x2f7   :  { %8093 = vst [vmem:[#allocation10_spill] sm:$0xff] %v6812_v15  ;;  %vm3186_vm1 = vcmp.gt.f32.partialorder %v2571_v63, 0.0  ;;  %v3282_v53 = vmul.f32 0.1, %v2571_v63  ;;  %2434 = vmatmul.bf16.gmra.mxu1 %v8094_v48  ;;  %2523 = vmatmul.bf16.gmra.mxu2 %v8095_v47  ;;  %v8100_v47 = vld [vmem:[#allocation69_spill] sm:$0xff] }
 0x2f8   :  { %2612 = vmatmul.bf16.gmra.mxu3 %v8096_v45  ;;  %3005 = vmatpush.bf16.msra.mxu0 %v4869_v58  ;;  %v8104_v58 = vld [vmem:[#allocation66_spill] sm:$0xff] }
 0x2f9   :  { %v6819_v20 = vsel %vm3186_vm1, %v2571_v63, %v3282_v53  ;;  %2701 = vmatmul.bf16.gmra.mxu0 %v8099_v19 }
 0x2fa   :  { %8098 = vst [vmem:[#allocation5_spill] sm:$0xff] %v6819_v20  ;;  %v2484_v46 = vpop.f32.mrf.mxu2 }
 0x2fb   :  { %v2485_v31 = vadd.f32 %v2484_v46, %v2396_v44  ;;  %v2573_v57 = vpop.f32.mrf.mxu3  ;;  %v8105_v46 = vld [vmem:[#allocation67_spill] sm:$0xff] }
 0x2fc   :  { %v2397_v41 = vpop.f32.mrf.mxu1 }
 0x2fd   :  { %v2574_v23 = vadd.f32 %v2573_v57, %v2485_v31  ;;  %v2398_v48 = vadd.f32 %v2397_v41, %v8100_v47  ;;  %v8106_v47 = vld [vmem:[#allocation100_spill] sm:$0xff]  ;;  %v4520_v31 = vld [vmem:[#allocation2 + $0xe0] sm:$0xf]  ;;  %v5199_v57 = vld [vmem:[#allocation2 + $0xe8] sm:$0xf0] }
 0x2fe   :  { %v6825_v45 = vpop.f32.mrf.mxu0  ;;  %v4521_v41 = vor.u32 %v5199_v57, %v4520_v31  ;;  %v4760_v31 = vld [vmem:[#allocation2 + $0x2c0] sm:$0xf] }
 0x2ff   :  { %8101 = vst [vmem:[#allocation8_spill] sm:$0xff] %v6825_v45  ;;  %v3285_v15 = vmul.f32 0.1, %v2574_v23  ;;  %vm3189_vm2 = vcmp.gt.f32.partialorder %v2574_v23, 0.0  ;;  %v4664_v45 = vld [vmem:[#allocation2 + $0x200] sm:$0xf] }
 0x300   :  { %2743 = vmatpush.bf16.msra.mxu1 %v4521_v41 }
 0x302   :  { %v2486_v32 = vpop.f32.mrf.mxu2 }
 0x303   :  { %v2487_v33 = vadd.f32 %v2486_v32, %v2398_v48  ;;  %v2575_v63 = vpop.f32.mrf.mxu3  ;;  %v8107_v48 = vld [vmem:[#allocation11_spill] sm:$0xff]  ;;  %v6834_v32 = vsel %vm3189_vm2, %v2574_v23, %v3285_v15  ;;  %v5259_v15 = vld [vmem:[#allocation2 + $0x2c8] sm:$0xf0] }
 0x304   :  { %v2400_v53 = vpop.f32.mrf.mxu1  ;;  %8108 = vst [vmem:[#allocation101_spill] sm:$0xff] %v6834_v32  ;;  %v8115_v32 = vld [vmem:[#allocation73_spill] sm:$0xff] }
 0x305   :  { %v2576_v19 = vadd.f32 %v2575_v63, %v2487_v33  ;;  %v2401_v25 = vadd.f32 %v2400_v53, %v8102_v8  ;;  %v8112_v53 = vld [vmem:[#allocation78_spill] sm:$0xff] }
 0x306   :  { %v6828_v0 = vpop.f32.mrf.mxu0 }
 0x307   :  { %8103 = vst [vmem:[#allocation69_spill] sm:$0xff] %v6828_v0  ;;  %vm3192_vm3 = vcmp.gt.f32.partialorder %v2576_v19, 0.0  ;;  %v3288_v44 = vmul.f32 0.1, %v2576_v19  ;;  %2439 = vmatmul.bf16.gmra.mxu1 %v8104_v58  ;;  %2528 = vmatmul.bf16.gmra.mxu2 %v8105_v46  ;;  %v8110_v58 = vld [vmem:[#allocation105_spill] sm:$0xff] }
 0x308   :  { %2617 = vmatmul.bf16.gmra.mxu3 %v8106_v47 }
 0x309   :  { %2706 = vmatmul.bf16.gmra.mxu0 %v8107_v48  ;;  %v6836_v33 = vsel %vm3192_vm3, %v2576_v19, %v3288_v44  ;;  %v5235_v48 = vld [vmem:[#allocation2 + $0x208] sm:$0xf0]  ;;  %v4761_v19 = vor.u32 %v5259_v15, %v4760_v31 }
 0x30a   :  { %8109 = vst [vmem:[#allocation11_spill] sm:$0xff] %v6836_v33  ;;  %v2489_v63 = vpop.f32.mrf.mxu2  ;;  %v4665_v23 = vor.u32 %v5235_v48, %v4664_v45  ;;  %v4856_v45 = vld [vmem:[#allocation2 + $0x380] sm:$0xf]  ;;  %v8116_v48 = vld [vmem:[#allocation104_spill] sm:$0xff]  ;;  %v8117_v31 = vld [vmem:[#allocation14_spill] sm:$0xff] }
 0x30b   :  { %v2490_v8 = vadd.f32 %v2489_v63, %v2401_v25  ;;  %v2578_v21 = vpop.f32.mrf.mxu3  ;;  %2917 = vmatpush.bf16.msra.mxu3 %v4761_v19 }
 0x30c   :  { %v2402_v20 = vpop.f32.mrf.mxu1  ;;  %2828 = vmatpush.bf16.msra.mxu2 %v4665_v23 }
 0x30d   :  { %v2579_v46 = vadd.f32 %v2578_v21, %v2490_v8  ;;  %v2403_v47 = vadd.f32 %v2402_v20, %v8110_v58  ;;  %v8114_v8 = vld [vmem:[#allocation72_spill] sm:$0xff] }
 0x30e   :  { %v6841_v0 = vpop.f32.mrf.mxu0 }
 0x30f   :  { %8111 = vst [vmem:[#allocation105_spill] sm:$0xff] %v6841_v0  ;;  %v3291_v63 = vmul.f32 0.1, %v2579_v46  ;;  %vm3195_vm4 = vcmp.gt.f32.partialorder %v2579_v46, 0.0 }
 0x311   :  { %v6850_v23 = vsel %vm3195_vm4, %v2579_v46, %v3291_v63 }
 0x312   :  { %v2491_v44 = vpop.f32.mrf.mxu2  ;;  %8118 = vst [vmem:[#allocation14_spill] sm:$0xff] %v6850_v23 }
 0x313   :  { %v2492_v57 = vadd.f32 %v2491_v44, %v2403_v47  ;;  %v2580_v60 = vpop.f32.mrf.mxu3  ;;  %v5283_v47 = vld [vmem:[#allocation2 + $0x388] sm:$0xf0] }
 0x314   :  { %v2405_v25 = vpop.f32.mrf.mxu1  ;;  %v4857_v15 = vor.u32 %v5283_v47, %v4856_v45 }
 0x315   :  { %v2581_v41 = vadd.f32 %v2580_v60, %v2492_v57  ;;  %v2406_v21 = vadd.f32 %v2405_v25, %v8112_v53 }
 0x316   :  { %v6844_v20 = vpop.f32.mrf.mxu0  ;;  %3006 = vmatpush.bf16.msra.mxu0 %v4857_v15  ;;  %v8124_v15 = vld [vmem:[#allocation76_spill] sm:$0xff] }
 0x317   :  { %8113 = vst [vmem:[#allocation78_spill] sm:$0xff] %v6844_v20  ;;  %vm3198_vm5 = vcmp.gt.f32.partialorder %v2581_v41, 0.0  ;;  %v3294_v58 = vmul.f32 0.1, %v2581_v41  ;;  %2444 = vmatmul.bf16.gmra.mxu1 %v8114_v8  ;;  %2533 = vmatmul.bf16.gmra.mxu2 %v8115_v32  ;;  %v8120_v32 = vld [vmem:[#allocation79_spill] sm:$0xff] }
 0x318   :  { %2622 = vmatmul.bf16.gmra.mxu3 %v8116_v48 }
 0x319   :  { %2711 = vmatmul.bf16.gmra.mxu0 %v8117_v31  ;;  %v6852_v60 = vsel %vm3198_vm5, %v2581_v41, %v3294_v58  ;;  %v8122_v58 = vld [vmem:[#allocation84_spill] sm:$0xff] }
 0x31a   :  { %8119 = vst [vmem:[#allocation119_spill] sm:$0xff] %v6852_v60  ;;  %v2494_v53 = vpop.f32.mrf.mxu2 }
 0x31b   :  { %v2495_v44 = vadd.f32 %v2494_v53, %v2406_v21  ;;  %v2583_v57 = vpop.f32.mrf.mxu3  ;;  %v8125_v53 = vld [vmem:[#allocation77_spill] sm:$0xff] }
 0x31c   :  { %v2407_v25 = vpop.f32.mrf.mxu1 }
 0x31d   :  { %v2584_v33 = vadd.f32 %v2583_v57, %v2495_v44  ;;  %v2408_v8 = vadd.f32 %v2407_v25, %v8120_v32  ;;  %v8126_v32 = vld [vmem:[#allocation108_spill] sm:$0xff]  ;;  %v4508_v44 = vld [vmem:[#allocation2 + $0xc8] sm:$0xf]  ;;  %v5196_v57 = vld [vmem:[#allocation2 + $0xd0] sm:$0xf0] }
 0x31e   :  { %v6857_v48 = vpop.f32.mrf.mxu0 }
 0x31f   :  { %8121 = vst [vmem:[#allocation79_spill] sm:$0xff] %v6857_v48  ;;  %v3297_v63 = vmul.f32 0.1, %v2584_v33  ;;  %vm3201_vm6 = vcmp.gt.f32.partialorder %v2584_v33, 0.0 }
 0x321   :  { %v6866_v25 = vsel %vm3201_vm6, %v2584_v33, %v3297_v63  ;;  %v5256_v33 = vld [vmem:[#allocation2 + $0x2b0] sm:$0xf0] }
 0x322   :  { %v2496_v20 = vpop.f32.mrf.mxu2 }
 0x323   :  { %v2497_v31 = vadd.f32 %v2496_v20, %v2408_v8  ;;  %v2585_v45 = vpop.f32.mrf.mxu3  ;;  %v8127_v20 = vld [vmem:[#allocation6_spill] sm:$0xff]  ;;  %v4509_v8 = vor.u32 %v5196_v57, %v4508_v44 }
 0x324   :  { %v2410_v46 = vpop.f32.mrf.mxu1  ;;  %8128 = vst [vmem:[#allocation6_spill] sm:$0xff] %v6866_v25  ;;  %v4748_v44 = vld [vmem:[#allocation2 + $0x2a8] sm:$0xf]  ;;  %v4736_v25 = vld [vmem:[#allocation2 + $0x290] sm:$0xf] }
 0x325   :  { %v2586_v41 = vadd.f32 %v2585_v45, %v2497_v31  ;;  %v2411_v47 = vadd.f32 %v2410_v46, %v8122_v58  ;;  %2744 = vmatpush.bf16.msra.mxu1 %v4509_v8  ;;  %v5229_v46 = vld [vmem:[#allocation2 + $0x1d8] sm:$0xf0] }
 0x326   :  { %v6860_v0 = vpop.f32.mrf.mxu0 }
 0x327   :  { %8123 = vst [vmem:[#allocation84_spill] sm:$0xff] %v6860_v0  ;;  %vm3204_vm7 = vcmp.gt.f32.partialorder %v2586_v41, 0.0  ;;  %v3300_v21 = vmul.f32 0.1, %v2586_v41  ;;  %2449 = vmatmul.bf16.gmra.mxu1 %v8124_v15  ;;  %2538 = vmatmul.bf16.gmra.mxu2 %v8125_v53  ;;  %v8130_v53 = vld [vmem:[#allocation85_spill] sm:$0xff] }
 0x328   :  { %2627 = vmatmul.bf16.gmra.mxu3 %v8126_v32  ;;  %v4652_v0 = vld [vmem:[#allocation2 + $0x1e8] sm:$0xf] }
 0x329   :  { %2716 = vmatmul.bf16.gmra.mxu0 %v8127_v20  ;;  %v6868_v31 = vsel %vm3204_vm7, %v2586_v41, %v3300_v21  ;;  %v5232_v20 = vld [vmem:[#allocation2 + $0x1f0] sm:$0xf0]  ;;  %v4749_v41 = vor.u32 %v5256_v33, %v4748_v44 }
 0x32a   :  { %8129 = vst [vmem:[#allocation120_spill] sm:$0xff] %v6868_v31  ;;  %v2499_v45 = vpop.f32.mrf.mxu2  ;;  %v4653_v63 = vor.u32 %v5232_v20, %v4652_v0  ;;  %v8134_v0 = vld [vmem:[#allocation82_spill] sm:$0xff]  ;;  %v8135_v20 = vld [vmem:[#allocation83_spill] sm:$0xff] }
 0x32b   :  { %v2500_v58 = vadd.f32 %v2499_v45, %v2411_v47  ;;  %v2588_v19 = vpop.f32.mrf.mxu3  ;;  %2918 = vmatpush.bf16.msra.mxu3 %v4749_v41  ;;  %v8136_v33 = vld [vmem:[#allocation111_spill] sm:$0xff]  ;;  %v5253_v41 = vld [vmem:[#allocation2 + $0x298] sm:$0xf0] }
 0x32c   :  { %v2412_v23 = vpop.f32.mrf.mxu1  ;;  %2829 = vmatpush.bf16.msra.mxu2 %v4653_v63  ;;  %v5280_v63 = vld [vmem:[#allocation2 + $0x370] sm:$0xf0] }
 0x32d   :  { %v2589_v60 = vadd.f32 %v2588_v19, %v2500_v58  ;;  %v2413_v32 = vadd.f32 %v2412_v23, %v8130_v53  ;;  %v8132_v19 = vld [vmem:[#allocation112_spill] sm:$0xff]  ;;  %v4640_v53 = vld [vmem:[#allocation2 + $0x1d0] sm:$0xf] }
 0x32e   :  { %v6873_v15 = vpop.f32.mrf.mxu0  ;;  %v4641_v44 = vor.u32 %v5229_v46, %v4640_v53  ;;  %v5247_v46 = vld [vmem:[#allocation2 + $0x268] sm:$0xf0] }
 0x32f   :  { %8131 = vst [vmem:[#allocation85_spill] sm:$0xff] %v6873_v15  ;;  %v3303_v47 = vmul.f32 0.1, %v2589_v60  ;;  %vm3207_vm8 = vcmp.gt.f32.partialorder %v2589_v60, 0.0  ;;  %v5226_v15 = vld [vmem:[#allocation2 + $0x1c0] sm:$0xf0] }
 0x330   :  { %2830 = vmatpush.bf16.msra.mxu2 %v4641_v44  ;;  %v5223_v44 = vld [vmem:[#allocation2 + $0x1a8] sm:$0xf0] }
 0x332   :  { %v2501_v21 = vpop.f32.mrf.mxu2 }
 0x333   :  { %v2502_v57 = vadd.f32 %v2501_v21, %v2413_v32  ;;  %v2590_v48 = vpop.f32.mrf.mxu3  ;;  %v4844_v32 = vld [vmem:[#allocation2 + $0x368] sm:$0xf]  ;;  %v8138_v21 = vld [vmem:[#allocation9_spill] sm:$0xff] }
 0x334   :  { %v2415_v45 = vpop.f32.mrf.mxu1 }
 0x335   :  { %v2591_v8 = vadd.f32 %v2590_v48, %v2502_v57  ;;  %v2416_v58 = vadd.f32 %v2415_v45, %v8132_v19  ;;  %v6882_v48 = vsel %vm3207_vm8, %v2589_v60, %v3303_v47  ;;  %v4845_v57 = vor.u32 %v5280_v63, %v4844_v32  ;;  %v5250_v47 = vld [vmem:[#allocation2 + $0x280] sm:$0xf0]  ;;  %v4712_v63 = vld [vmem:[#allocation2 + $0x260] sm:$0xf] }
 0x336   :  { %v6876_v23 = vpop.f32.mrf.mxu0  ;;  %8137 = vst [vmem:[#allocation121_spill] sm:$0xff] %v6882_v48  ;;  %v4737_v45 = vor.u32 %v5253_v41, %v4736_v25 }
 0x337   :  { %8133 = vst [vmem:[#allocation112_spill] sm:$0xff] %v6876_v23  ;;  %vm3210_vm9 = vcmp.gt.f32.partialorder %v2591_v8, 0.0  ;;  %v3306_v31 = vmul.f32 0.1, %v2591_v8  ;;  %2454 = vmatmul.bf16.gmra.mxu1 %v8134_v0  ;;  %2543 = vmatmul.bf16.gmra.mxu2 %v8135_v20  ;;  %v4628_v0 = vld [vmem:[#allocation2 + $0x1b8] sm:$0xf] }
 0x338   :  { %2632 = vmatmul.bf16.gmra.mxu3 %v8136_v33  ;;  %v4724_v20 = vld [vmem:[#allocation2 + $0x278] sm:$0xf]  ;;  %3007 = vmatpush.bf16.msra.mxu0 %v4845_v57  ;;  %v4629_v60 = vor.u32 %v5226_v15, %v4628_v0  ;;  %v5277_v57 = vld [vmem:[#allocation2 + $0x358] sm:$0xf0] }
 0x339   :  { %2721 = vmatmul.bf16.gmra.mxu0 %v8138_v21  ;;  %v6885_v19 = vsel %vm3210_vm9, %v2591_v8, %v3306_v31  ;;  %2919 = vmatpush.bf16.msra.mxu3 %v4737_v45  ;;  %v4725_v21 = vor.u32 %v5250_v47, %v4724_v20  ;;  %v4616_v8 = vld [vmem:[#allocation2 + $0x1a0] sm:$0xf]  ;;  %v4604_v45 = vld [vmem:[#allocation2 + $0x188] sm:$0xf]  ;;  %v5220_v20 = vld [vmem:[#allocation2 + $0x190] sm:$0xf0] }
 0x33a   :  { %v2504_v23 = vpop.f32.mrf.mxu2  ;;  %2831 = vmatpush.bf16.msra.mxu2 %v4629_v60  ;;  %v4617_v41 = vor.u32 %v5223_v44, %v4616_v8  ;;  %v5244_v60 = vld [vmem:[#allocation2 + $0x250] sm:$0xf0]  ;;  %v5274_v8 = vld [vmem:[#allocation2 + $0x340] sm:$0xf0] }
 0x33b   :  { %v2505_v53 = vadd.f32 %v2504_v23, %v2416_v58  ;;  %v2593_v33 = vpop.f32.mrf.mxu3  ;;  %v4713_v58 = vor.u32 %v5247_v46, %v4712_v63  ;;  %v4832_v23 = vld [vmem:[#allocation2 + $0x350] sm:$0xf] }
 0x33c   :  { %v2417_v14 = vpop.f32.mrf.mxu1  ;;  %v4833_v15 = vor.u32 %v5277_v57, %v4832_v23  ;;  %v8139_v57 = vld [vmem:[#allocation88_spill] sm:$0xff] }
 0x33d   :  { %v2594_v32 = vadd.f32 %v2593_v33, %v2505_v53  ;;  %v2418_v25 = vadd.f32 %v2417_v14, %v6612_v52  ;;  %2920 = vmatpush.bf16.msra.mxu3 %v4725_v21  ;;  %v4700_v33 = vld [vmem:[#allocation2 + $0x248] sm:$0xf]  ;;  %v4605_v14 = vor.u32 %v5220_v20, %v4604_v45  ;;  %v4820_v21 = vld [vmem:[#allocation2 + $0x338] sm:$0xf]  ;;  %v4808_v45 = vld [vmem:[#allocation2 + $0x320] sm:$0xf] }
 0x33e   :  { %v6890_v31 = vpop.f32.mrf.mxu0  ;;  %2832 = vmatpush.bf16.msra.mxu2 %v4617_v41  ;;  %3008 = vmatpush.bf16.msra.mxu0 %v4833_v15  ;;  %v4701_v63 = vor.u32 %v5244_v60, %v4700_v33  ;;  %v4821_v41 = vor.u32 %v5274_v8, %v4820_v21  ;;  %v4976_v15 = vld [vmem:[#allocation2 + $0x470] sm:$0xf] }
 0x33f   :  { %v3309_v47 = vmul.f32 0.1, %v2594_v32  ;;  %vm3213_vm10 = vcmp.gt.f32.partialorder %v2594_v32, 0.0 }
 0x341   :  { %2921 = vmatpush.bf16.msra.mxu3 %v4713_v58  ;;  %v8140_v58 = vld [vmem:[#allocation89_spill] sm:$0xff]  ;;  %v6899_v20 = vsel %vm3213_vm10, %v2594_v32, %v3309_v47 }
 0x342   :  { %v2506_v0 = vpop.f32.mrf.mxu2  ;;  %2833 = vmatpush.bf16.msra.mxu2 %v4605_v14  ;;  %3009 = vmatpush.bf16.msra.mxu0 %v4821_v41  ;;  %v4796_v41 = vld [vmem:[#allocation2 + $0x308] sm:$0xf] }
 0x343   :  { %v2507_v53 = vadd.f32 %v2506_v0, %v2418_v25  ;;  %v2595_v52 = vpop.f32.mrf.mxu3  ;;  %v5313_v0 = vld [vmem:[#allocation2 + $0x478] sm:$0xf0] }
 0x344   :  { %v2420_v48 = vpop.f32.mrf.mxu1 }
 0x345   :  { %v2596_v44 = vadd.f32 %v2595_v52, %v2507_v53  ;;  %v2421_v46 = vadd.f32 %v2420_v48, %v6620_v5  ;;  %2922 = vmatpush.bf16.msra.mxu3 %v4701_v63  ;;  %v4977_v5 = vor.u32 %v5313_v0, %v4976_v15  ;;  %v5271_v48 = vld [vmem:[#allocation2 + $0x328] sm:$0xf0] }
 0x346   :  { %v6893_v23 = vpop.f32.mrf.mxu0  ;;  %v4809_v52 = vor.u32 %v5271_v48, %v4808_v45 }
 0x347   :  { %vm3216_vm11 = vcmp.gt.f32.partialorder %v2596_v44, 0.0  ;;  %v3312_v25 = vmul.f32 0.1, %v2596_v44  ;;  %2459 = vmatmul.bf16.gmra.mxu1 %v8139_v57  ;;  %2548 = vmatmul.bf16.gmra.mxu2 %v8140_v58 }
 0x348   :  { %2637 = vmatmul.bf16.gmra.mxu3 %v6609_v26  ;;  %3093 = vmatpush.bf16.msrb.mxu1 %v4977_v5  ;;  %v5268_v26 = vld [vmem:[#allocation2 + $0x310] sm:$0xf0] }
 0x349   :  { %2726 = vmatmul.bf16.gmra.mxu0 %v8043_v61  ;;  %v6901_v33 = vsel %vm3216_vm11, %v2596_v44, %v3312_v25  ;;  %v4797_v15 = vor.u32 %v5268_v26, %v4796_v41 }
 0x34a   :  { %v2509_v53 = vpop.f32.mrf.mxu2  ;;  %3010 = vmatpush.bf16.msra.mxu0 %v4809_v52  ;;  %v8141_v52 = vld [vmem:[#allocation92_spill] sm:$0xff] }
 0x34b   :  { %v2510_v60 = vadd.f32 %v2509_v53, %v2421_v46  ;;  %v2598_v21 = vpop.f32.mrf.mxu3 }
 0x34c   :  { %v2422_v8 = vpop.f32.mrf.mxu1 }
 0x34d   :  { %v2599_v61 = vadd.f32 %v2598_v21, %v2510_v60  ;;  %v2423_v63 = vadd.f32 %v2422_v8, %v6638_v36  ;;  %v8142_v36 = vld [vmem:[#allocation93_spill] sm:$0xff] }
 0x34e   :  { %v6906_v32 = vpop.f32.mrf.mxu0  ;;  %3011 = vmatpush.bf16.msra.mxu0 %v4797_v15 }
 0x34f   :  { %v3315_v45 = vmul.f32 0.1, %v2599_v61  ;;  %vm3219_vm12 = vcmp.gt.f32.partialorder %v2599_v61, 0.0 }
 0x351   :  { %v6915_v26 = vsel %vm3219_vm12, %v2599_v61, %v3315_v45 }
 0x352   :  { %v2511_v47 = vpop.f32.mrf.mxu2 }
 0x353   :  { %v2512_v44 = vadd.f32 %v2511_v47, %v2423_v63  ;;  %v2600_v25 = vpop.f32.mrf.mxu3 }
 0x354   :  { %v2425_v0 = vpop.f32.mrf.mxu1 }
 0x355   :  { %v2601_v48 = vadd.f32 %v2600_v25, %v2512_v44  ;;  %v2426_v46 = vadd.f32 %v2425_v0, %v6646_v3 }
 0x356   :  { %v6909_v5 = vpop.f32.mrf.mxu0 }
 0x357   :  { %vm3222_vm13 = vcmp.gt.f32.partialorder %v2601_v48, 0.0  ;;  %v3318_v53 = vmul.f32 0.1, %v2601_v48  ;;  %2464 = vmatmul.bf16.gmra.mxu1 %v8141_v52  ;;  %2553 = vmatmul.bf16.gmra.mxu2 %v8142_v36 }
 0x358   :  { %2642 = vmatmul.bf16.gmra.mxu3 %v6635_v51 }
 0x359   :  { %2731 = vmatmul.bf16.gmra.mxu0 %v8047_v1  ;;  %v6917_v60 = vsel %vm3222_vm13, %v2601_v48, %v3318_v53 }
 0x35a   :  { %v2514_v21 = vpop.f32.mrf.mxu2 }
 0x35b   :  { %v2515_v8 = vadd.f32 %v2514_v21, %v2426_v46  ;;  %v2603_v41 = vpop.f32.mrf.mxu3  ;;  %v8143_v21 = vld [vmem:[#allocation16_spill] sm:$0xff] }
 0x35c   :  { %v2427_v63 = vpop.f32.mrf.mxu1 }
 0x35d   :  { %v2604_v15 = vadd.f32 %v2603_v41, %v2515_v8  ;;  %v2428_v47 = vadd.f32 %v2427_v63, %v6656_v7  ;;  %v8144_v8 = vld [vmem:[#allocation17_spill] sm:$0xff]  ;;  %v4964_v7 = vld [vmem:[#allocation2 + $0x458] sm:$0xf] }
 0x35e   :  { %v6922_v44 = vpop.f32.mrf.mxu0  ;;  %v5310_v41 = vld [vmem:[#allocation2 + $0x460] sm:$0xf0] }
 0x35f   :  { %v3321_v61 = vmul.f32 0.1, %v2604_v15  ;;  %vm3225_vm14 = vcmp.gt.f32.partialorder %v2604_v15, 0.0  ;;  %v4965_v63 = vor.u32 %v5310_v41, %v4964_v7 }
 0x361   :  { %3094 = vmatpush.bf16.msrb.mxu1 %v4965_v63  ;;  %v8145_v63 = vld [vmem:[#allocation20_spill] sm:$0xff] }
 0x362   :  { %v2516_v25 = vpop.f32.mrf.mxu2 }
 0x363   :  { %v2517_v0 = vadd.f32 %v2516_v25, %v2428_v47  ;;  %v2605_v14 = vpop.f32.mrf.mxu3  ;;  %v6931_v47 = vsel %vm3225_vm14, %v2604_v15, %v3321_v61 }
 0x364   :  { %v2430_v1 = vpop.f32.mrf.mxu1 }
 0x365   :  { %v2606_v45 = vadd.f32 %v2605_v14, %v2517_v0  ;;  %v2431_v48 = vadd.f32 %v2430_v1, %v6664_v35 }
 0x366   :  { %v6925_v53 = vpop.f32.mrf.mxu0 }
 0x367   :  { %vm3228_vm15 = vcmp.gt.f32.partialorder %v2606_v45, 0.0  ;;  %v3324_v46 = vmul.f32 0.1, %v2606_v45  ;;  %2745 = vmatmul.bf16.vlgmr.msra.gmra.mxu1 %v8143_v21  ;;  %2834 = vmatmul.bf16.vlgmr.msra.gmra.mxu2 %v8144_v8 }
 0x368   :  { %2923 = vmatmul.bf16.vlgmr.msra.gmra.mxu3 %v8050_v16 }
 0x369   :  { %3012 = vmatmul.bf16.vlgmr.msra.gmra.mxu0 %v8051_v12  ;;  %v6933_v14 = vsel %vm3228_vm15, %v2606_v45, %v3324_v46 }
 0x36a   :  { %v2519_v35 = vpop.f32.mrf.mxu2 }
 0x36b   :  { %v2520_v0 = vadd.f32 %v2519_v35, %v2431_v48  ;;  %v2608_v1 = vpop.f32.mrf.mxu3  ;;  %v8146_v35 = vld [vmem:[#allocation21_spill] sm:$0xff] }
 0x36c   :  { %v2432_v21 = vpop.f32.mrf.mxu1 }
 0x36d   :  { %v2609_v8 = vadd.f32 %v2608_v1, %v2520_v0  ;;  %v2433_v16 = vadd.f32 %v2432_v21, %v6674_v56 }
 0x36e   :  { %v6938_v3 = vpop.f32.mrf.mxu0 }
 0x36f   :  { %v3327_v61 = vmul.f32 0.1, %v2609_v8  ;;  %vm3231_vm0 = vcmp.gt.f32.partialorder %v2609_v8, 0.0 }
 0x371   :  { %v6947_v56 = vsel %vm3231_vm0, %v2609_v8, %v3327_v61 }
 0x372   :  { %v2521_v51 = vpop.f32.mrf.mxu2 }
 0x373   :  { %v2522_v12 = vadd.f32 %v2521_v51, %v2433_v16  ;;  %v2610_v7 = vpop.f32.mrf.mxu3 }
 0x374   :  { %v2435_v15 = vpop.f32.mrf.mxu1 }
 0x375   :  { %v2611_v45 = vadd.f32 %v2610_v7, %v2522_v12  ;;  %v2436_v46 = vadd.f32 %v2435_v15, %v6682_v39 }
 0x376   :  { %v6941_v41 = vpop.f32.mrf.mxu0 }
 0x377   :  { %vm3234_vm1 = vcmp.gt.f32.partialorder %v2611_v45, 0.0  ;;  %v3330_v48 = vmul.f32 0.1, %v2611_v45  ;;  %2750 = vmatmul.bf16.gmra.mxu1 %v8145_v63  ;;  %2839 = vmatmul.bf16.gmra.mxu2 %v8146_v35 }
 0x378   :  { %2928 = vmatmul.bf16.gmra.mxu3 %v8054_v2 }
 0x379   :  { %3017 = vmatmul.bf16.gmra.mxu0 %v8055_v55  ;;  %v6949_v51 = vsel %vm3234_vm1, %v2611_v45, %v3330_v48 }
 0x37a   :  { %v2524_v0 = vpop.f32.mrf.mxu2 }
 0x37b   :  { %v2525_v1 = vadd.f32 %v2524_v0, %v2436_v46  ;;  %v2613_v21 = vpop.f32.mrf.mxu3  ;;  %v8147_v0 = vld [vmem:[#allocation24_spill] sm:$0xff] }
 0x37c   :  { %v2437_v16 = vpop.f32.mrf.mxu1 }
 0x37d   :  { %v2614_v12 = vadd.f32 %v2613_v21, %v2525_v1  ;;  %v2438_v7 = vadd.f32 %v2437_v16, %v6692_v10  ;;  %v8148_v1 = vld [vmem:[#allocation25_spill] sm:$0xff]  ;;  %v5307_v21 = vld [vmem:[#allocation2 + $0x448] sm:$0xf0] }
 0x37e   :  { %v6954_v15 = vpop.f32.mrf.mxu0  ;;  %v4952_v10 = vld [vmem:[#allocation2 + $0x440] sm:$0xf] }
 0x37f   :  { %v3333_v8 = vmul.f32 0.1, %v2614_v12  ;;  %vm3237_vm2 = vcmp.gt.f32.partialorder %v2614_v12, 0.0  ;;  %v4953_v16 = vor.u32 %v5307_v21, %v4952_v10 }
 0x381   :  { %3095 = vmatpush.bf16.msrb.mxu1 %v4953_v16  ;;  %v8149_v16 = vld [vmem:[#allocation28_spill] sm:$0xff] }
 0x382   :  { %v2526_v63 = vpop.f32.mrf.mxu2 }
 0x383   :  { %v2527_v2 = vadd.f32 %v2526_v63, %v2438_v7  ;;  %v2615_v35 = vpop.f32.mrf.mxu3  ;;  %v6963_v7 = vsel %vm3237_vm2, %v2614_v12, %v3333_v8 }
 0x384   :  { %v2440_v55 = vpop.f32.mrf.mxu1 }
 0x385   :  { %v2616_v61 = vadd.f32 %v2615_v35, %v2527_v2  ;;  %v2441_v45 = vadd.f32 %v2440_v55, %v6700_v24 }
 0x386   :  { %v6957_v48 = vpop.f32.mrf.mxu0 }
 0x387   :  { %vm3240_vm3 = vcmp.gt.f32.partialorder %v2616_v61, 0.0  ;;  %v3336_v46 = vmul.f32 0.1, %v2616_v61  ;;  %2755 = vmatmul.bf16.gmra.mxu1 %v8147_v0  ;;  %2844 = vmatmul.bf16.gmra.mxu2 %v8148_v1 }
 0x388   :  { %2933 = vmatmul.bf16.gmra.mxu3 %v8058_v22 }
 0x389   :  { %3022 = vmatmul.bf16.gmra.mxu0 %v8059_v59  ;;  %v6965_v63 = vsel %vm3240_vm3, %v2616_v61, %v3336_v46 }
 0x38a   :  { %v2529_v24 = vpop.f32.mrf.mxu2 }
 0x38b   :  { %v2530_v35 = vadd.f32 %v2529_v24, %v2441_v45  ;;  %v2618_v55 = vpop.f32.mrf.mxu3  ;;  %v8150_v24 = vld [vmem:[#allocation29_spill] sm:$0xff] }
 0x38c   :  { %v2442_v0 = vpop.f32.mrf.mxu1 }
 0x38d   :  { %v2619_v1 = vadd.f32 %v2618_v55, %v2530_v35  ;;  %v2443_v22 = vadd.f32 %v2442_v0, %v6710_v4 }
 0x38e   :  { %v6970_v39 = vpop.f32.mrf.mxu0 }
 0x38f   :  { %v3339_v8 = vmul.f32 0.1, %v2619_v1  ;;  %vm3243_vm4 = vcmp.gt.f32.partialorder %v2619_v1, 0.0 }
 0x391   :  { %v6979_v4 = vsel %vm3243_vm4, %v2619_v1, %v3339_v8 }
 0x392   :  { %v2531_v25 = vpop.f32.mrf.mxu2  ;;  %8151 = vst [vmem:[#allocation9_spill] sm:$0xff] %v6979_v4 }
 0x393   :  { %v2532_v59 = vadd.f32 %v2531_v25, %v2443_v22  ;;  %v2620_v10 = vpop.f32.mrf.mxu3 }
 0x394   :  { %v2445_v12 = vpop.f32.mrf.mxu1 }
 0x395   :  { %v2621_v61 = vadd.f32 %v2620_v10, %v2532_v59  ;;  %v2446_v46 = vadd.f32 %v2445_v12, %v6718_v30 }
 0x396   :  { %v6973_v21 = vpop.f32.mrf.mxu0 }
 0x397   :  { %vm3246_vm5 = vcmp.gt.f32.partialorder %v2621_v61, 0.0  ;;  %v3342_v45 = vmul.f32 0.1, %v2621_v61  ;;  %2760 = vmatmul.bf16.gmra.mxu1 %v8149_v16  ;;  %2849 = vmatmul.bf16.gmra.mxu2 %v8150_v24 }
 0x398   :  { %2938 = vmatmul.bf16.gmra.mxu3 %v8062_v50 }
 0x399   :  { %3027 = vmatmul.bf16.gmra.mxu0 %v8063_v18  ;;  %v6981_v25 = vsel %vm3246_vm5, %v2621_v61, %v3342_v45 }
 0x39a   :  { %v2534_v35 = vpop.f32.mrf.mxu2 }
 0x39b   :  { %v2535_v55 = vadd.f32 %v2534_v35, %v2446_v46  ;;  %v2623_v0 = vpop.f32.mrf.mxu3  ;;  %v8152_v35 = vld [vmem:[#allocation32_spill] sm:$0xff] }
 0x39c   :  { %v2447_v22 = vpop.f32.mrf.mxu1 }
 0x39d   :  { %v2624_v59 = vadd.f32 %v2623_v0, %v2535_v55  ;;  %v2448_v10 = vadd.f32 %v2447_v22, %v6728_v6  ;;  %v8153_v55 = vld [vmem:[#allocation33_spill] sm:$0xff]  ;;  %v4940_v6 = vld [vmem:[#allocation2 + $0x428] sm:$0xf]  ;;  %v5304_v0 = vld [vmem:[#allocation2 + $0x430] sm:$0xf0] }
 0x39e   :  { %v6986_v12 = vpop.f32.mrf.mxu0  ;;  %v4941_v22 = vor.u32 %v5304_v0, %v4940_v6 }
 0x39f   :  { %v3345_v1 = vmul.f32 0.1, %v2624_v59  ;;  %vm3249_vm6 = vcmp.gt.f32.partialorder %v2624_v59, 0.0 }
 0x3a0   :  { %3096 = vmatpush.bf16.msrb.mxu1 %v4941_v22  ;;  %v8156_v22 = vld [vmem:[#allocation36_spill] sm:$0xff] }
 0x3a2   :  { %v2536_v16 = vpop.f32.mrf.mxu2 }
 0x3a3   :  { %v2537_v50 = vadd.f32 %v2536_v16, %v2448_v10  ;;  %v2625_v24 = vpop.f32.mrf.mxu3  ;;  %v6995_v10 = vsel %vm3249_vm6, %v2624_v59, %v3345_v1 }
 0x3a4   :  { %v2450_v18 = vpop.f32.mrf.mxu1  ;;  %8154 = vst [vmem:[#allocation88_spill] sm:$0xff] %v6995_v10 }
 0x3a5   :  { %v2626_v8 = vadd.f32 %v2625_v24, %v2537_v50  ;;  %v2451_v61 = vadd.f32 %v2450_v18, %v6736_v28  ;;  %v4916_v50 = vld [vmem:[#allocation2 + $0x3f8] sm:$0xf] }
 0x3a6   :  { %v6989_v45 = vpop.f32.mrf.mxu0 }
 0x3a7   :  { %vm3252_vm7 = vcmp.gt.f32.partialorder %v2626_v8, 0.0  ;;  %v3348_v46 = vmul.f32 0.1, %v2626_v8  ;;  %2765 = vmatmul.bf16.gmra.mxu1 %v8152_v35  ;;  %2854 = vmatmul.bf16.gmra.mxu2 %v8153_v55 }
 0x3a8   :  { %2943 = vmatmul.bf16.gmra.mxu3 %v8066_v42 }
 0x3a9   :  { %3032 = vmatmul.bf16.gmra.mxu0 %v8067_v27  ;;  %v6997_v16 = vsel %vm3252_vm7, %v2626_v8, %v3348_v46 }
 0x3aa   :  { %8155 = vst [vmem:[#allocation89_spill] sm:$0xff] %v6997_v16  ;;  %v2539_v28 = vpop.f32.mrf.mxu2 }
 0x3ab   :  { %v2540_v24 = vadd.f32 %v2539_v28, %v2451_v61  ;;  %v2628_v18 = vpop.f32.mrf.mxu3  ;;  %v8157_v28 = vld [vmem:[#allocation37_spill] sm:$0xff] }
 0x3ac   :  { %v2452_v35 = vpop.f32.mrf.mxu1 }
 0x3ad   :  { %v2629_v55 = vadd.f32 %v2628_v18, %v2540_v24  ;;  %v2453_v42 = vadd.f32 %v2452_v35, %v6746_v43 }
 0x3ae   :  { %v7002_v30 = vpop.f32.mrf.mxu0 }
 0x3af   :  { %v3351_v1 = vmul.f32 0.1, %v2629_v55  ;;  %vm3255_vm8 = vcmp.gt.f32.partialorder %v2629_v55, 0.0 }
 0x3b1   :  { %v7011_v43 = vsel %vm3255_vm8, %v2629_v55, %v3351_v1 }
 0x3b2   :  { %v2541_v2 = vpop.f32.mrf.mxu2  ;;  %8158 = vst [vmem:[#allocation92_spill] sm:$0xff] %v7011_v43 }
 0x3b3   :  { %v2542_v27 = vadd.f32 %v2541_v2, %v2453_v42  ;;  %v2630_v6 = vpop.f32.mrf.mxu3 }
 0x3b4   :  { %v2455_v59 = vpop.f32.mrf.mxu1 }
 0x3b5   :  { %v2631_v8 = vadd.f32 %v2630_v6, %v2542_v27  ;;  %v2456_v46 = vadd.f32 %v2455_v59, %v6754_v54  ;;  %v8170_v54 = vld [vmem:[#allocation55_spill] sm:$0xff] }
 0x3b6   :  { %v7005_v0 = vpop.f32.mrf.mxu0 }
 0x3b7   :  { %vm3258_vm9 = vcmp.gt.f32.partialorder %v2631_v8, 0.0  ;;  %v3354_v61 = vmul.f32 0.1, %v2631_v8  ;;  %2770 = vmatmul.bf16.gmra.mxu1 %v8156_v22  ;;  %2859 = vmatmul.bf16.gmra.mxu2 %v8157_v28 }
 0x3b8   :  { %2948 = vmatmul.bf16.gmra.mxu3 %v8070_v9 }
 0x3b9   :  { %3037 = vmatmul.bf16.gmra.mxu0 %v8071_v38  ;;  %v7013_v2 = vsel %vm3258_vm9, %v2631_v8, %v3354_v61 }
 0x3ba   :  { %8159 = vst [vmem:[#allocation93_spill] sm:$0xff] %v7013_v2  ;;  %v2544_v24 = vpop.f32.mrf.mxu2 }
 0x3bb   :  { %v2545_v18 = vadd.f32 %v2544_v24, %v2456_v46  ;;  %v2633_v35 = vpop.f32.mrf.mxu3  ;;  %v8160_v24 = vld [vmem:[#allocation42_spill] sm:$0xff] }
 0x3bc   :  { %v2457_v42 = vpop.f32.mrf.mxu1 }
 0x3bd   :  { %v2634_v27 = vadd.f32 %v2633_v35, %v2545_v18  ;;  %v2458_v6 = vadd.f32 %v2457_v42, %v6764_v29  ;;  %v8161_v18 = vld [vmem:[#allocation43_spill] sm:$0xff]  ;;  %v5301_v35 = vld [vmem:[#allocation2 + $0x418] sm:$0xf0] }
 0x3be   :  { %v7018_v59 = vpop.f32.mrf.mxu0  ;;  %v4928_v29 = vld [vmem:[#allocation2 + $0x410] sm:$0xf] }
 0x3bf   :  { %v3357_v55 = vmul.f32 0.1, %v2634_v27  ;;  %vm3261_vm10 = vcmp.gt.f32.partialorder %v2634_v27, 0.0  ;;  %v4929_v42 = vor.u32 %v5301_v35, %v4928_v29 }
 0x3c1   :  { %3097 = vmatpush.bf16.msrb.mxu1 %v4929_v42 }
 0x3c2   :  { %v2546_v22 = vpop.f32.mrf.mxu2 }
 0x3c3   :  { %v2547_v9 = vadd.f32 %v2546_v22, %v2458_v6  ;;  %v2635_v28 = vpop.f32.mrf.mxu3  ;;  %v7027_v6 = vsel %vm3261_vm10, %v2634_v27, %v3357_v55  ;;  %v5329_v27 = vld [vmem:[%s7665_s3 + $0x78] sm:$0xff] }
 0x3c4   :  { %v2460_v38 = vpop.f32.mrf.mxu1  ;;  %8162 = vst [vmem:[#allocation16_spill] sm:$0xff] %v7027_v6  ;;  %3803 = vmatpush.bf16.msrb.mxu3 %v5329_v27 }
 0x3c5   :  { %v2636_v1 = vadd.f32 %v2635_v28, %v2547_v9  ;;  %v2461_v8 = vadd.f32 %v2460_v38, %v6772_v34 }
 0x3c6   :  { %v7021_v61 = vpop.f32.mrf.mxu0 }
 0x3c7   :  { %vm3264_vm11 = vcmp.gt.f32.partialorder %v2636_v1, 0.0  ;;  %v3360_v46 = vmul.f32 0.1, %v2636_v1  ;;  %2775 = vmatmul.bf16.gmra.mxu1 %v8160_v24  ;;  %2864 = vmatmul.bf16.gmra.mxu2 %v8161_v18 }
 0x3c8   :  { %2953 = vmatmul.bf16.gmra.mxu3 %v8074_v13 }
 0x3c9   :  { %3042 = vmatmul.bf16.gmra.mxu0 %v8075_v17  ;;  %v7029_v22 = vsel %vm3264_vm11, %v2636_v1, %v3360_v46  ;;  %v5321_v17 = vld [vmem:[%s7665_s3 + $0x38] sm:$0xff] }
 0x3ca   :  { %8163 = vst [vmem:[#allocation17_spill] sm:$0xff] %v7029_v22  ;;  %v2549_v34 = vpop.f32.mrf.mxu2  ;;  %3714 = vmatpush.bf16.msrb.mxu2 %v5321_v17  ;;  %v8165_v17 = vld [vmem:[#allocation49_spill] sm:$0xff] }
 0x3cb   :  { %v2550_v28 = vadd.f32 %v2549_v34, %v2461_v8  ;;  %v2638_v38 = vpop.f32.mrf.mxu3  ;;  %v5337_v34 = vld [vmem:[%s7665_s3 + $0xb8] sm:$0xff] }
 0x3cc   :  { %v2462_v24 = vpop.f32.mrf.mxu1  ;;  %3892 = vmatpush.bf16.msrb.mxu0 %v5337_v34 }
 0x3cd   :  { %v2639_v18 = vadd.f32 %v2638_v38, %v2550_v28  ;;  %v2463_v13 = vadd.f32 %v2462_v24, %v6782_v37  ;;  %v8164_v24 = vld [vmem:[#allocation48_spill] sm:$0xff] }
 0x3ce   :  { %v7040_v55 = vpop.f32.mrf.mxu0 }
 0x3cf   :  { %v3363_v35 = vmul.f32 0.1, %v2639_v18  ;;  %vm3267_vm12 = vcmp.gt.f32.partialorder %v2639_v18, 0.0 }
 0x3d2   :  { %v2551_v1 = vpop.f32.mrf.mxu2 }
 0x3d3   :  { %v2552_v8 = vadd.f32 %v2551_v1, %v2463_v13  ;;  %v2640_v46 = vpop.f32.mrf.mxu3  ;;  %v7052_v13 = vsel %vm3267_vm12, %v2639_v18, %v3363_v35  ;;  %v8168_v35 = vld [vmem:[#allocation52_spill] sm:$0xff] }
 0x3d4   :  { %v2465_v29 = vpop.f32.mrf.mxu1  ;;  %8166 = vst [vmem:[#allocation20_spill] sm:$0xff] %v7052_v13  ;;  %v5298_v13 = vld [vmem:[#allocation2 + $0x400] sm:$0xf0] }
 0x3d5   :  { %v2641_v42 = vadd.f32 %v2640_v46, %v2552_v8  ;;  %v2466_v37 = vadd.f32 %v2465_v29, %v6790_v62 }
 0x3d6   :  { %v7046_v28 = vpop.f32.mrf.mxu0 }
 0x3d7   :  { %vm3270_vm13 = vcmp.gt.f32.partialorder %v2641_v42, 0.0  ;;  %v3366_v38 = vmul.f32 0.1, %v2641_v42  ;;  %2780 = vmatmul.bf16.gmra.mxu1 %v8164_v24  ;;  %2869 = vmatmul.bf16.gmra.mxu2 %v8165_v17 }
 0x3d8   :  { %2958 = vmatmul.bf16.gmra.mxu3 %v8079_v40  ;;  %v5367_v40 = vld [vmem:[%s7664_s2] sm:$0x7] }
 0x3d9   :  { %3047 = vmatmul.bf16.gmra.mxu0 %v8080_v11  ;;  %v7054_v62 = vsel %vm3270_vm13, %v2641_v42, %v3366_v38  ;;  %v7064_v11 = vperm.slane %v5367_v40, 2  ;;  %v8171_v40 = vld [vmem:[#allocation57_spill] sm:$0xff] }
 0x3da   :  { %8167 = vst [vmem:[#allocation21_spill] sm:$0xff] %v7054_v62  ;;  %v2554_v27 = vpop.f32.mrf.mxu2  ;;  %v8172_v62 = vld [vmem:[#allocation58_spill] sm:$0xff] }
 0x3db   :  { %v2555_v8 = vadd.f32 %v2554_v27, %v2466_v37  ;;  %v2643_v46 = vpop.f32.mrf.mxu3  ;;  %v2658_v42 = vadd.f32 %v8168_v35, %v7064_v11 }
 0x3dc   :  { %v2467_v29 = vpop.f32.mrf.mxu1 }
 0x3dd   :  { %v2644_v9 = vadd.f32 %v2643_v46, %v2555_v8  ;;  %v2468_v24 = vadd.f32 %v2467_v29, %v6802_v49  ;;  %v8169_v29 = vld [vmem:[#allocation54_spill] sm:$0xff] }
 0x3de   :  { %v7059_v17 = vpop.f32.mrf.mxu0 }
 0x3df   :  { %v3369_v27 = vmul.f32 0.1, %v2644_v9  ;;  %vm3273_vm14 = vcmp.gt.f32.partialorder %v2644_v9, 0.0 }
 0x3e2   :  { %v2556_v18 = vpop.f32.mrf.mxu2 }
 0x3e3   :  { %v2557_v34 = vadd.f32 %v2556_v18, %v2468_v24  ;;  %v2645_v38 = vpop.f32.mrf.mxu3  ;;  %v4917_v24 = vor.u32 %v5298_v13, %v4916_v50  ;;  %v7072_v18 = vsel %vm3273_vm14, %v2644_v9, %v3369_v27  ;;  %v5320_v50 = vld [vmem:[%s7665_s3 + $0x30] sm:$0xff]  ;;  %v8176_v27 = vld [vmem:[#allocation10_spill] sm:$0xff] }
 0x3e4   :  { %v2746_v37 = vpop.f32.mrf.mxu1  ;;  %8173 = vst [vmem:[#allocation24_spill] sm:$0xff] %v7072_v18  ;;  %v5328_v9 = vld [vmem:[%s7665_s3 + $0x70] sm:$0xff]  ;;  %3715 = vmatpush.bf16.msrb.mxu2 %v5320_v50  ;;  %v8179_v50 = vld [vmem:[#allocation62_spill] sm:$0xff] }
 0x3e5   :  { %v2646_v1 = vadd.f32 %v2645_v38, %v2557_v34  ;;  %v2747_v8 = vadd.f32 %v2746_v37, %v2658_v42  ;;  %v8175_v38 = vld [vmem:[#allocation13_spill] sm:$0xff]  ;;  %3098 = vmatpush.bf16.msrb.mxu1 %v4917_v24  ;;  %3804 = vmatpush.bf16.msrb.mxu3 %v5328_v9  ;;  %v8180_v9 = vld [vmem:[#allocation63_spill] sm:$0xff] }
 0x3e6   :  { %v3013_v49 = vpop.f32.mrf.mxu0  ;;  %v2660_v37 = vadd.f32 %v8175_v38, %v7064_v11 }
 0x3e7   :  { %vm3276_vm15 = vcmp.gt.f32.partialorder %v2646_v1, 0.0  ;;  %v3372_v46 = vmul.f32 0.1, %v2646_v1  ;;  %2785 = vmatmul.bf16.gmra.mxu1 %v8169_v29  ;;  %2874 = vmatmul.bf16.gmra.mxu2 %v8170_v54 }
 0x3e8   :  { %2963 = vmatmul.bf16.gmra.mxu3 %v8171_v40 }
 0x3e9   :  { %3052 = vmatmul.bf16.gmra.mxu0 %v8172_v62  ;;  %v7074_v35 = vsel %vm3276_vm15, %v2646_v1, %v3372_v46 }
 0x3ea   :  { %8174 = vst [vmem:[#allocation25_spill] sm:$0xff] %v7074_v35  ;;  %v2835_v42 = vpop.f32.mrf.mxu2 }
 0x3eb   :  { %v2836_v29 = vadd.f32 %v2835_v42, %v2747_v8  ;;  %v2924_v54 = vpop.f32.mrf.mxu3  ;;  %v2663_v8 = vadd.f32 %v8176_v27, %v7064_v11 }
 0x3ec   :  { %v2748_v40 = vpop.f32.mrf.mxu1 }
 0x3ed   :  { %v2925_v6 = vadd.f32 %v2924_v54, %v2836_v29  ;;  %v2749_v22 = vadd.f32 %v2748_v40, %v2660_v37  ;;  %v5336_v29 = vld [vmem:[%s7665_s3 + $0xb0] sm:$0xff] }
 0x3ee   :  { %v3015_v13 = vpop.f32.mrf.mxu0  ;;  %3893 = vmatpush.bf16.msrb.mxu0 %v5336_v29 }
 0x3ef   :  { %v7086_v62 = vadd.f32 %v3013_v49, %v2925_v6  ;;  %v8177_v6 = vld [vmem:[#allocation60_spill] sm:$0xff]  ;;  %v8178_v49 = vld [vmem:[#allocation61_spill] sm:$0xff] }
 0x3f2   :  { %v2837_v1 = vpop.f32.mrf.mxu2 }
 0x3f3   :  { %v2838_v46 = vadd.f32 %v2837_v1, %v2749_v22  ;;  %v2926_v24 = vpop.f32.mrf.mxu3  ;;  %v8181_v1 = vld [vmem:[#allocation8_spill] sm:$0xff] }
 0x3f4   :  { %v2751_v42 = vpop.f32.mrf.mxu1  ;;  %v2665_v27 = vadd.f32 %v8181_v1, %v7064_v11  ;;  %v8185_v1 = vld [vmem:[#allocation66_spill] sm:$0xff] }
 0x3f5   :  { %v2927_v38 = vadd.f32 %v2926_v24, %v2838_v46  ;;  %v2752_v37 = vadd.f32 %v2751_v42, %v2663_v8 }
 0x3f6   :  { %v3018_v54 = vpop.f32.mrf.mxu0 }
 0x3f7   :  { %v7093_v40 = vadd.f32 %v3015_v13, %v2927_v38  ;;  %2790 = vmatmul.bf16.gmra.mxu1 %v8177_v6  ;;  %2879 = vmatmul.bf16.gmra.mxu2 %v8178_v49  ;;  %v8182_v49 = vld [vmem:[#allocation69_spill] sm:$0xff] }
 0x3f8   :  { %2968 = vmatmul.bf16.gmra.mxu3 %v8179_v50  ;;  %v2668_v18 = vadd.f32 %v8182_v49, %v7064_v11 }
 0x3f9   :  { %3057 = vmatmul.bf16.gmra.mxu0 %v8180_v9 }
 0x3fa   :  { %v2840_v22 = vpop.f32.mrf.mxu2 }
 0x3fb   :  { %v2841_v8 = vadd.f32 %v2840_v22, %v2752_v37  ;;  %v2929_v46 = vpop.f32.mrf.mxu3  ;;  %v8183_v37 = vld [vmem:[#allocation64_spill] sm:$0xff]  ;;  %v8184_v22 = vld [vmem:[#allocation65_spill] sm:$0xff] }
 0x3fc   :  { %v2753_v24 = vpop.f32.mrf.mxu1 }
 0x3fd   :  { %v2930_v42 = vadd.f32 %v2929_v46, %v2841_v8  ;;  %v2754_v34 = vadd.f32 %v2753_v24, %v2665_v27  ;;  %v5295_v27 = vld [vmem:[#allocation2 + $0x3e8] sm:$0xf0]  ;;  %v8186_v8 = vld [vmem:[#allocation67_spill] sm:$0xff] }
 0x3fe   :  { %v3020_v13 = vpop.f32.mrf.mxu0 }
 0x3ff   :  { %v7101_v38 = vadd.f32 %v3018_v54, %v2930_v42  ;;  %v4904_v54 = vld [vmem:[#allocation2 + $0x3e0] sm:$0xf] }
 0x400   :  { %v4905_v46 = vor.u32 %v5295_v27, %v4904_v54 }
 0x402   :  { %v2842_v6 = vpop.f32.mrf.mxu2  ;;  %3099 = vmatpush.bf16.msrb.mxu1 %v4905_v46 }
 0x403   :  { %v2843_v50 = vadd.f32 %v2842_v6, %v2754_v34  ;;  %v2931_v29 = vpop.f32.mrf.mxu3  ;;  %v8187_v34 = vld [vmem:[#allocation105_spill] sm:$0xff] }
 0x404   :  { %v2756_v35 = vpop.f32.mrf.mxu1  ;;  %v2670_v42 = vadd.f32 %v8187_v34, %v7064_v11  ;;  %v5335_v34 = vld [vmem:[%s7665_s3 + $0xa8] sm:$0xff] }
 0x405   :  { %v2932_v9 = vadd.f32 %v2931_v29, %v2843_v50  ;;  %v2757_v43 = vadd.f32 %v2756_v35, %v2668_v18  ;;  %v5319_v50 = vld [vmem:[%s7665_s3 + $0x28] sm:$0xff]  ;;  %3894 = vmatpush.bf16.msrb.mxu0 %v5335_v34 }
 0x406   :  { %v3023_v2 = vpop.f32.mrf.mxu0  ;;  %v5327_v29 = vld [vmem:[%s7665_s3 + $0x68] sm:$0xff]  ;;  %3716 = vmatpush.bf16.msrb.mxu2 %v5319_v50  ;;  %v8195_v50 = vld [vmem:[#allocation79_spill] sm:$0xff] }
 0x407   :  { %v7105_v10 = vadd.f32 %v3020_v13, %v2932_v9  ;;  %2795 = vmatmul.bf16.gmra.mxu1 %v8183_v37  ;;  %2884 = vmatmul.bf16.gmra.mxu2 %v8184_v22 }
 0x408   :  { %2973 = vmatmul.bf16.gmra.mxu3 %v8185_v1 }
 0x409   :  { %3062 = vmatmul.bf16.gmra.mxu0 %v8186_v8  ;;  %3805 = vmatpush.bf16.msrb.mxu3 %v5327_v29  ;;  %v2675_v29 = vadd.f32 %v8195_v50, %v7064_v11  ;;  %v8199_v50 = vld [vmem:[#allocation76_spill] sm:$0xff] }
 0x40a   :  { %v2845_v24 = vpop.f32.mrf.mxu2 }
 0x40b   :  { %v2846_v6 = vadd.f32 %v2845_v24, %v2757_v43  ;;  %v2934_v18 = vpop.f32.mrf.mxu3  ;;  %v8189_v43 = vld [vmem:[#allocation78_spill] sm:$0xff] }
 0x40c   :  { %v2758_v35 = vpop.f32.mrf.mxu1  ;;  %v2673_v1 = vadd.f32 %v8189_v43, %v7064_v11 }
 0x40d   :  { %v2935_v13 = vadd.f32 %v2934_v18, %v2846_v6  ;;  %v2759_v49 = vadd.f32 %v2758_v35, %v2670_v42  ;;  %v8192_v18 = vld [vmem:[#allocation71_spill] sm:$0xff]  ;;  %v8193_v35 = vld [vmem:[#allocation72_spill] sm:$0xff] }
 0x40e   :  { %v3025_v9 = vpop.f32.mrf.mxu0 }
 0x40f   :  { %v7119_v37 = vadd.f32 %v3023_v2, %v2935_v13  ;;  %v8191_v2 = vld [vmem:[#allocation70_spill] sm:$0xff]  ;;  %v8194_v13 = vld [vmem:[#allocation73_spill] sm:$0xff] }
 0x411   :  { %8188 = vst [vmem:[#allocation28_spill] sm:$0xff] %v7119_v37 }
 0x412   :  { %v2847_v22 = vpop.f32.mrf.mxu2 }
 0x413   :  { %v2848_v54 = vadd.f32 %v2847_v22, %v2759_v49  ;;  %v2936_v27 = vpop.f32.mrf.mxu3 }
 0x414   :  { %v2761_v8 = vpop.f32.mrf.mxu1 }
 0x415   :  { %v2937_v46 = vadd.f32 %v2936_v27, %v2848_v54  ;;  %v2762_v24 = vadd.f32 %v2761_v8, %v2673_v1 }
 0x416   :  { %v3028_v42 = vpop.f32.mrf.mxu0 }
 0x417   :  { %v7126_v6 = vadd.f32 %v3025_v9, %v2937_v46  ;;  %2800 = vmatmul.bf16.gmra.mxu1 %v8191_v2  ;;  %2889 = vmatmul.bf16.gmra.mxu2 %v8192_v18  ;;  %v8196_v2 = vld [vmem:[#allocation84_spill] sm:$0xff] }
 0x418   :  { %2978 = vmatmul.bf16.gmra.mxu3 %v8193_v35  ;;  %v2678_v18 = vadd.f32 %v8196_v2, %v7064_v11 }
 0x419   :  { %8190 = vst [vmem:[#allocation29_spill] sm:$0xff] %v7126_v6  ;;  %3067 = vmatmul.bf16.gmra.mxu0 %v8194_v13 }
 0x41a   :  { %v2850_v49 = vpop.f32.mrf.mxu2 }
 0x41b   :  { %v2851_v22 = vadd.f32 %v2850_v49, %v2762_v24  ;;  %v2939_v43 = vpop.f32.mrf.mxu3  ;;  %v8197_v24 = vld [vmem:[#allocation74_spill] sm:$0xff]  ;;  %v8198_v49 = vld [vmem:[#allocation75_spill] sm:$0xff] }
 0x41c   :  { %v2763_v1 = vpop.f32.mrf.mxu1 }
 0x41d   :  { %v2940_v54 = vadd.f32 %v2939_v43, %v2851_v22  ;;  %v2764_v27 = vadd.f32 %v2763_v1, %v2675_v29  ;;  %v5292_v29 = vld [vmem:[#allocation2 + $0x3d0] sm:$0xf0]  ;;  %v8200_v22 = vld [vmem:[#allocation77_spill] sm:$0xff] }
 0x41e   :  { %v3030_v9 = vpop.f32.mrf.mxu0 }
 0x41f   :  { %v7134_v8 = vadd.f32 %v3028_v42, %v2940_v54  ;;  %v4892_v42 = vld [vmem:[#allocation2 + $0x3c8] sm:$0xf]  ;;  %v8201_v54 = vld [vmem:[#allocation85_spill] sm:$0xff] }
 0x420   :  { %v4893_v43 = vor.u32 %v5292_v29, %v4892_v42 }
 0x422   :  { %v2852_v46 = vpop.f32.mrf.mxu2  ;;  %3100 = vmatpush.bf16.msrb.mxu1 %v4893_v43 }
 0x423   :  { %v2853_v35 = vadd.f32 %v2852_v46, %v2764_v27  ;;  %v2941_v34 = vpop.f32.mrf.mxu3  ;;  %v2680_v27 = vadd.f32 %v8201_v54, %v7064_v11  ;;  %v5334_v54 = vld [vmem:[%s7665_s3 + $0xa0] sm:$0xff] }
 0x424   :  { %v2766_v16 = vpop.f32.mrf.mxu1  ;;  %3895 = vmatpush.bf16.msrb.mxu0 %v5334_v54 }
 0x425   :  { %v2942_v13 = vadd.f32 %v2941_v34, %v2853_v35  ;;  %v2767_v6 = vadd.f32 %v2766_v16, %v2678_v18  ;;  %v5318_v35 = vld [vmem:[%s7665_s3 + $0x20] sm:$0xff] }
 0x426   :  { %v3033_v37 = vpop.f32.mrf.mxu0  ;;  %v5326_v34 = vld [vmem:[%s7665_s3 + $0x60] sm:$0xff]  ;;  %3717 = vmatpush.bf16.msrb.mxu2 %v5318_v35 }
 0x427   :  { %v7138_v4 = vadd.f32 %v3030_v9, %v2942_v13  ;;  %2805 = vmatmul.bf16.gmra.mxu1 %v8197_v24  ;;  %2894 = vmatmul.bf16.gmra.mxu2 %v8198_v49  ;;  %v8202_v49 = vld [vmem:[#allocation112_spill] sm:$0xff] }
 0x428   :  { %2983 = vmatmul.bf16.gmra.mxu3 %v8199_v50  ;;  %v2683_v50 = vadd.f32 %v8202_v49, %v7064_v11 }
 0x429   :  { %3072 = vmatmul.bf16.gmra.mxu0 %v8200_v22  ;;  %3806 = vmatpush.bf16.msrb.mxu3 %v5326_v34  ;;  %v2685_v34 = vadd.f32 %v6890_v31, %v7064_v11  ;;  %v5315_v31 = vld [vmem:[%s7665_s3 + $0x8] sm:$0xff] }
 0x42a   :  { %v2855_v1 = vpop.f32.mrf.mxu2 }
 0x42b   :  { %v2856_v46 = vadd.f32 %v2855_v1, %v2767_v6  ;;  %v2944_v16 = vpop.f32.mrf.mxu3 }
 0x42c   :  { %v2768_v9 = vpop.f32.mrf.mxu1 }
 0x42d   :  { %v2945_v2 = vadd.f32 %v2944_v16, %v2856_v46  ;;  %v2769_v18 = vadd.f32 %v2768_v9, %v2680_v27  ;;  %v8203_v46 = vld [vmem:[#allocation80_spill] sm:$0xff] }
 0x42e   :  { %v7152_v13 = vpop.f32.mrf.mxu0  ;;  %v5317_v16 = vld [vmem:[%s7665_s3 + $0x18] sm:$0xff] }
 0x42f   :  { %v7154_v24 = vadd.f32 %v3033_v37, %v2945_v2  ;;  %v8204_v37 = vld [vmem:[#allocation81_spill] sm:$0xff]  ;;  %v5325_v9 = vld [vmem:[%s7665_s3 + $0x58] sm:$0xff]  ;;  %v8205_v2 = vld [vmem:[#allocation82_spill] sm:$0xff]  ;;  %3718 = vmatpush.bf16.msrb.mxu2 %v5317_v16 }
 0x430   :  { %3807 = vmatpush.bf16.msrb.mxu3 %v5325_v9  ;;  %v2688_v9 = vadd.f32 %v6893_v23, %v7064_v11  ;;  %v8208_v23 = vld [vmem:[#allocation87_spill] sm:$0xff] }
 0x432   :  { %v2857_v6 = vpop.f32.mrf.mxu2 }
 0x433   :  { %v2858_v42 = vadd.f32 %v2857_v6, %v2769_v18  ;;  %v2946_v29 = vpop.f32.mrf.mxu3  ;;  %v8206_v18 = vld [vmem:[#allocation83_spill] sm:$0xff] }
 0x434   :  { %v2771_v22 = vpop.f32.mrf.mxu1 }
 0x435   :  { %v7158_v43 = vadd.f32 %v2946_v29, %v2858_v42  ;;  %v2772_v1 = vadd.f32 %v2771_v22, %v2683_v50  ;;  %v5316_v50 = vld [vmem:[%s7665_s3 + $0x10] sm:$0xff] }
 0x436   :  { %v3038_v27 = vpop.f32.mrf.mxu0  ;;  %v5324_v42 = vld [vmem:[%s7665_s3 + $0x50] sm:$0xff]  ;;  %3719 = vmatpush.bf16.msrb.mxu2 %v5316_v50 }
 0x437   :  { %2810 = vmatmul.bf16.gmra.mxu1 %v8203_v46  ;;  %2899 = vmatmul.bf16.gmra.mxu2 %v8204_v37 }
 0x438   :  { %2988 = vmatmul.bf16.gmra.mxu3 %v8205_v2 }
 0x439   :  { %3077 = vmatmul.bf16.gmra.mxu0 %v8206_v18  ;;  %3808 = vmatpush.bf16.msrb.mxu3 %v5324_v42  ;;  %v8207_v42 = vld [vmem:[#allocation86_spill] sm:$0xff] }
 0x43a   :  { %v2860_v35 = vpop.f32.mrf.mxu2  ;;  %3720 = vmatpush.bf16.msrb.mxu2 %v5315_v31 }
 0x43b   :  { %v2861_v6 = vadd.f32 %v2860_v35, %v2772_v1  ;;  %v2949_v49 = vpop.f32.mrf.mxu3  ;;  %v5323_v1 = vld [vmem:[%s7665_s3 + $0x48] sm:$0xff]  ;;  %v5322_v35 = vld [vmem:[%s7665_s3 + $0x40] sm:$0xff] }
 0x43c   :  { %v2773_v29 = vpop.f32.mrf.mxu1 }
 0x43d   :  { %v2950_v22 = vadd.f32 %v2949_v49, %v2861_v6  ;;  %v2774_v54 = vadd.f32 %v2773_v29, %v2685_v34  ;;  %3809 = vmatpush.bf16.msrb.mxu3 %v5323_v1 }
 0x43e   :  { %v7181_v46 = vpop.f32.mrf.mxu0 }
 0x43f   :  { %v7183_v37 = vadd.f32 %v3038_v27, %v2950_v22  ;;  %v5314_v27 = vld [vmem:[%s7665_s3] sm:$0xff]  ;;  %v2690_v22 = vadd.f32 %v6906_v32, %v7064_v11  ;;  %v5333_v32 = vld [vmem:[%s7665_s3 + $0x98] sm:$0xff] }
 0x440   :  { %3721 = vmatpush.bf16.msrb.mxu2 %v5314_v27  ;;  %3896 = vmatpush.bf16.msrb.mxu0 %v5333_v32 }
 0x441   :  { %3810 = vmatpush.bf16.msrb.mxu3 %v5322_v35  ;;  %v2693_v35 = vadd.f32 %v6909_v5, %v7064_v11 }
 0x442   :  { %v2862_v16 = vpop.f32.mrf.mxu2 }
 0x443   :  { %v2863_v2 = vadd.f32 %v2862_v16, %v2774_v54  ;;  %v2951_v18 = vpop.f32.mrf.mxu3 }
 0x444   :  { %v2776_v34 = vpop.f32.mrf.mxu1 }
 0x445   :  { %v7199_v6 = vadd.f32 %v2951_v18, %v2863_v2  ;;  %v2777_v49 = vadd.f32 %v2776_v34, %v2688_v9 }
 0x446   :  { %v3043_v50 = vpop.f32.mrf.mxu0 }
 0x447   :  { %2815 = vmatmul.bf16.gmra.mxu1 %v8207_v42  ;;  %2904 = vmatmul.bf16.gmra.mxu2 %v8208_v23 }
 0x448   :  { %2993 = vmatmul.bf16.gmra.mxu3 %v8139_v57 }
 0x449   :  { %3082 = vmatmul.bf16.gmra.mxu0 %v8140_v58 }
 0x44a   :  { %v2865_v29 = vpop.f32.mrf.mxu2 }
 0x44b   :  { %v2866_v54 = vadd.f32 %v2865_v29, %v2777_v49  ;;  %v2954_v31 = vpop.f32.mrf.mxu3  ;;  %v8209_v29 = vld [vmem:[#allocation90_spill] sm:$0xff] }
 0x44c   :  { %v2778_v1 = vpop.f32.mrf.mxu1 }
 0x44d   :  { %v2955_v16 = vadd.f32 %v2954_v31, %v2866_v54  ;;  %v2779_v9 = vadd.f32 %v2778_v1, %v2690_v22  ;;  %v8210_v22 = vld [vmem:[#allocation91_spill] sm:$0xff] }
 0x44e   :  { %v7207_v2 = vpop.f32.mrf.mxu0 }
 0x44f   :  { %v7209_v18 = vadd.f32 %v3043_v50, %v2955_v16  ;;  %v2695_v50 = vadd.f32 %v6922_v44, %v7064_v11 }
 0x452   :  { %v2867_v27 = vpop.f32.mrf.mxu2 }
 0x453   :  { %v2868_v57 = vadd.f32 %v2867_v27, %v2779_v9  ;;  %v2956_v34 = vpop.f32.mrf.mxu3 }
 0x454   :  { %v2781_v58 = vpop.f32.mrf.mxu1 }
 0x455   :  { %v7213_v42 = vadd.f32 %v2956_v34, %v2868_v57  ;;  %v2782_v23 = vadd.f32 %v2781_v58, %v2693_v35 }
 0x456   :  { %v3048_v49 = vpop.f32.mrf.mxu0 }
 0x457   :  { %2820 = vmatmul.bf16.gmra.mxu1 %v8209_v29  ;;  %2909 = vmatmul.bf16.gmra.mxu2 %v8210_v22  ;;  %v8212_v22 = vld [vmem:[#allocation56_spill] sm:$0xff] }
 0x458   :  { %2998 = vmatmul.bf16.gmra.mxu3 %v8141_v52  ;;  %v2698_v52 = vadd.f32 %v6925_v53, %v7064_v11  ;;  %v2700_v53 = vadd.f32 %v6938_v3, %v7064_v11  ;;  %v5332_v3 = vld [vmem:[%s7665_s3 + $0x90] sm:$0xff] }
 0x459   :  { %3087 = vmatmul.bf16.gmra.mxu0 %v8142_v36 }
 0x45a   :  { %v2870_v5 = vpop.f32.mrf.mxu2  ;;  %3897 = vmatpush.bf16.msrb.mxu0 %v5332_v3 }
 0x45b   :  { %v2871_v54 = vadd.f32 %v2870_v5, %v2782_v23  ;;  %v2959_v31 = vpop.f32.mrf.mxu3  ;;  %v8211_v23 = vld [vmem:[#allocation94_spill] sm:$0xff]  ;;  %v8213_v5 = vld [vmem:[#allocation53_spill] sm:$0xff] }
 0x45c   :  { %v2783_v1 = vpop.f32.mrf.mxu1 }
 0x45d   :  { %v2960_v16 = vadd.f32 %v2959_v31, %v2871_v54  ;;  %v2784_v9 = vadd.f32 %v2783_v1, %v2695_v50  ;;  %v8214_v50 = vpack.c.bf16 %v8212_v22, %v8213_v5  ;;  %v8215_v54 = vld [vmem:[#allocation5_spill] sm:$0xff]  ;;  %v2703_v22 = vadd.f32 %v6941_v41, %v7064_v11 }
 0x45e   :  { %v7224_v27 = vpop.f32.mrf.mxu0 }
 0x45f   :  { %v7226_v35 = vadd.f32 %v3048_v49, %v2960_v16  ;;  %v8216_v49 = vld [vmem:[#allocation50_spill] sm:$0xff] }
 0x460   :  { %v8217_v31 = vpack.c.bf16 %v8215_v54, %v8216_v49 }
 0x462   :  { %v2872_v57 = vpop.f32.mrf.mxu2 }
 0x463   :  { %v2873_v34 = vadd.f32 %v2872_v57, %v2784_v9  ;;  %v2961_v58 = vpop.f32.mrf.mxu3 }
 0x464   :  { %v2786_v36 = vpop.f32.mrf.mxu1 }
 0x465   :  { %v7230_v32 = vadd.f32 %v2961_v58, %v2873_v34  ;;  %v2787_v29 = vadd.f32 %v2786_v36, %v2698_v52 }
 0x466   :  { %v3053_v44 = vpop.f32.mrf.mxu0 }
 0x467   :  { %3101 = vmatmul.bf16.vlgmr.msrb.gmra.mxu1 %v8211_v23  ;;  %3722 = vmatmul.bf16.vlgmr.msrb.gmra.mxu2 %v8214_v50 }
 0x468   :  { %3811 = vmatmul.bf16.vlgmr.msrb.gmra.mxu3 %v8217_v31 }
 0x46a   :  { %v2875_v1 = vpop.f32.mrf.mxu2 }
 0x46b   :  { %v2876_v16 = vadd.f32 %v2875_v1, %v2787_v29  ;;  %v2964_v9 = vpop.f32.mrf.mxu3  ;;  %v8219_v1 = vld [vmem:[#allocation95_spill] sm:$0xff] }
 0x46c   :  { %v2788_v57 = vpop.f32.mrf.mxu1 }
 0x46d   :  { %v2965_v34 = vadd.f32 %v2964_v9, %v2876_v16  ;;  %v2789_v52 = vadd.f32 %v2788_v57, %v2700_v53  ;;  %v8220_v53 = vld [vmem:[#allocation99_spill] sm:$0xff]  ;;  %v8224_v57 = vld [vmem:[#allocation101_spill] sm:$0xff] }
 0x46e   :  { %v7241_v58 = vpop.f32.mrf.mxu0  ;;  %v8223_v9 = vld [vmem:[#allocation11_spill] sm:$0xff] }
 0x46f   :  { %8218 = vst [vmem:[#allocation32_spill] sm:$0xff] %v7241_v58  ;;  %v7243_v36 = vadd.f32 %v3053_v44, %v2965_v34  ;;  %v8221_v44 = vld [vmem:[#allocation68_spill] sm:$0xff]  ;;  %v8225_v41 = vpack.c.bf16 %v8223_v9, %v8224_v57 }
 0x470   :  { %v8222_v16 = vpack.c.bf16 %v8220_v53, %v8221_v44  ;;  %v2708_v44 = vadd.f32 %v6957_v48, %v7064_v11  ;;  %v2710_v48 = vadd.f32 %v6970_v39, %v7064_v11  ;;  %v5331_v39 = vld [vmem:[%s7665_s3 + $0x88] sm:$0xff] }
 0x471   :  { %3898 = vmatpush.bf16.msrb.mxu0 %v5331_v39 }
 0x472   :  { %v2877_v23 = vpop.f32.mrf.mxu2 }
 0x473   :  { %v2878_v5 = vadd.f32 %v2877_v23, %v2789_v52  ;;  %v2966_v50 = vpop.f32.mrf.mxu3  ;;  %v2705_v52 = vadd.f32 %v6954_v15, %v7064_v11 }
 0x474   :  { %v2791_v54 = vpop.f32.mrf.mxu1 }
 0x475   :  { %v7247_v49 = vadd.f32 %v2966_v50, %v2878_v5  ;;  %v2792_v31 = vadd.f32 %v2791_v54, %v2703_v22 }
 0x476   :  { %v3058_v29 = vpop.f32.mrf.mxu0 }
 0x477   :  { %3106 = vmatmul.bf16.gmra.mxu1 %v8219_v1  ;;  %3727 = vmatmul.bf16.gmra.mxu2 %v8222_v16 }
 0x478   :  { %3816 = vmatmul.bf16.gmra.mxu3 %v8225_v41 }
 0x47a   :  { %v2880_v34 = vpop.f32.mrf.mxu2 }
 0x47b   :  { %v2881_v23 = vadd.f32 %v2880_v34, %v2792_v31  ;;  %v2969_v22 = vpop.f32.mrf.mxu3  ;;  %v8227_v31 = vld [vmem:[#allocation96_spill] sm:$0xff]  ;;  %v8228_v34 = vld [vmem:[#allocation103_spill] sm:$0xff] }
 0x47c   :  { %v2793_v5 = vpop.f32.mrf.mxu1 }
 0x47d   :  { %v2970_v50 = vadd.f32 %v2969_v22, %v2881_v23  ;;  %v2794_v54 = vadd.f32 %v2793_v5, %v2705_v52  ;;  %v8229_v23 = vld [vmem:[#allocation102_spill] sm:$0xff]  ;;  %v8231_v22 = vld [vmem:[#allocation119_spill] sm:$0xff] }
 0x47e   :  { %v7261_v58 = vpop.f32.mrf.mxu0  ;;  %v8230_v52 = vpack.c.bf16 %v8228_v34, %v8229_v23  ;;  %v2713_v34 = vadd.f32 %v6973_v21, %v7064_v11 }
 0x47f   :  { %8226 = vst [vmem:[#allocation33_spill] sm:$0xff] %v7261_v58  ;;  %v7263_v1 = vadd.f32 %v3058_v29, %v2970_v50  ;;  %v8232_v29 = vld [vmem:[#allocation14_spill] sm:$0xff] }
 0x480   :  { %v8233_v5 = vpack.c.bf16 %v8231_v22, %v8232_v29 }
 0x482   :  { %v2882_v53 = vpop.f32.mrf.mxu2 }
 0x483   :  { %v2883_v16 = vadd.f32 %v2882_v53, %v2794_v54  ;;  %v2971_v9 = vpop.f32.mrf.mxu3 }
 0x484   :  { %v2796_v3 = vpop.f32.mrf.mxu1 }
 0x485   :  { %v7267_v57 = vadd.f32 %v2971_v9, %v2883_v16  ;;  %v2797_v41 = vadd.f32 %v2796_v3, %v2708_v44 }
 0x486   :  { %v3063_v15 = vpop.f32.mrf.mxu0 }
 0x487   :  { %3111 = vmatmul.bf16.gmra.mxu1 %v8227_v31  ;;  %3732 = vmatmul.bf16.gmra.mxu2 %v8230_v52 }
 0x488   :  { %3821 = vmatmul.bf16.gmra.mxu3 %v8233_v5 }
 0x48a   :  { %v2885_v50 = vpop.f32.mrf.mxu2 }
 0x48b   :  { %v2886_v54 = vadd.f32 %v2885_v50, %v2797_v41  ;;  %v2974_v53 = vpop.f32.mrf.mxu3  ;;  %v8235_v50 = vld [vmem:[#allocation97_spill] sm:$0xff] }
 0x48c   :  { %v2798_v16 = vpop.f32.mrf.mxu1 }
 0x48d   :  { %v2975_v9 = vadd.f32 %v2974_v53, %v2886_v54  ;;  %v2799_v44 = vadd.f32 %v2798_v16, %v2710_v48  ;;  %v8236_v48 = vld [vmem:[#allocation107_spill] sm:$0xff]  ;;  %v8239_v53 = vld [vmem:[#allocation120_spill] sm:$0xff]  ;;  %v8240_v16 = vld [vmem:[#allocation6_spill] sm:$0xff] }
 0x48e   :  { %v7278_v3 = vpop.f32.mrf.mxu0  ;;  %v8241_v21 = vpack.c.bf16 %v8239_v53, %v8240_v16 }
 0x48f   :  { %8234 = vst [vmem:[#allocation36_spill] sm:$0xff] %v7278_v3  ;;  %v7280_v31 = vadd.f32 %v3063_v15, %v2975_v9  ;;  %v8237_v15 = vld [vmem:[#allocation106_spill] sm:$0xff]  ;;  %v2715_v9 = vadd.f32 %v6986_v12, %v7064_v11 }
 0x490   :  { %v8238_v54 = vpack.c.bf16 %v8236_v48, %v8237_v15  ;;  %v2718_v15 = vadd.f32 %v6989_v45, %v7064_v11  ;;  %v2720_v45 = vadd.f32 %v7002_v30, %v7064_v11  ;;  %v5330_v30 = vld [vmem:[%s7665_s3 + $0x80] sm:$0xff] }
 0x491   :  { %3899 = vmatpush.bf16.msrb.mxu0 %v5330_v30 }
 0x492   :  { %v2887_v58 = vpop.f32.mrf.mxu2 }
 0x493   :  { %v2888_v23 = vadd.f32 %v2887_v58, %v2799_v44  ;;  %v2976_v52 = vpop.f32.mrf.mxu3 }
 0x494   :  { %v2801_v22 = vpop.f32.mrf.mxu1 }
 0x495   :  { %v7284_v29 = vadd.f32 %v2976_v52, %v2888_v23  ;;  %v2802_v5 = vadd.f32 %v2801_v22, %v2713_v34 }
 0x496   :  { %v3068_v41 = vpop.f32.mrf.mxu0 }
 0x497   :  { %3116 = vmatmul.bf16.gmra.mxu1 %v8235_v50  ;;  %3737 = vmatmul.bf16.gmra.mxu2 %v8238_v54 }
 0x498   :  { %3826 = vmatmul.bf16.gmra.mxu3 %v8241_v21 }
 0x49a   :  { %v2890_v58 = vpop.f32.mrf.mxu2 }
 0x49b   :  { %v2891_v44 = vadd.f32 %v2890_v58, %v2802_v5  ;;  %v2979_v34 = vpop.f32.mrf.mxu3  ;;  %v8242_v5 = vld [vmem:[#allocation98_spill] sm:$0xff] }
 0x49c   :  { %v2803_v23 = vpop.f32.mrf.mxu1  ;;  %v8243_v58 = vld [vmem:[#allocation110_spill] sm:$0xff] }
 0x49d   :  { %v2980_v52 = vadd.f32 %v2979_v34, %v2891_v44  ;;  %v2804_v22 = vadd.f32 %v2803_v23, %v2715_v9  ;;  %v8244_v44 = vld [vmem:[#allocation109_spill] sm:$0xff] }
 0x49e   :  { %v7298_v3 = vpop.f32.mrf.mxu0  ;;  %v8245_v9 = vpack.c.bf16 %v8243_v58, %v8244_v44  ;;  %v2723_v58 = vadd.f32 %v7005_v0, %v7064_v11  ;;  %v8252_v0 = vpack.c.bf16 %v6901_v33, %v6899_v20 }
 0x49f   :  { %v7300_v50 = vadd.f32 %v3068_v41, %v2980_v52  ;;  %v8246_v41 = vld [vmem:[#allocation121_spill] sm:$0xff] }
 0x4a0   :  { %v8247_v34 = vpack.c.bf16 %v6885_v19, %v8246_v41 }
 0x4a2   :  { %v2892_v48 = vpop.f32.mrf.mxu2 }
 0x4a3   :  { %v2893_v54 = vadd.f32 %v2892_v48, %v2804_v22  ;;  %v2981_v53 = vpop.f32.mrf.mxu3 }
 0x4a4   :  { %v2806_v39 = vpop.f32.mrf.mxu1 }
 0x4a5   :  { %v7304_v16 = vadd.f32 %v2981_v53, %v2893_v54  ;;  %v2807_v21 = vadd.f32 %v2806_v39, %v2718_v15 }
 0x4a6   :  { %v3073_v12 = vpop.f32.mrf.mxu0 }
 0x4a7   :  { %3121 = vmatmul.bf16.gmra.mxu1 %v8242_v5  ;;  %3742 = vmatmul.bf16.gmra.mxu2 %v8245_v9 }
 0x4a8   :  { %3831 = vmatmul.bf16.gmra.mxu3 %v8247_v34 }
 0x4aa   :  { %v2895_v23 = vpop.f32.mrf.mxu2 }
 0x4ab   :  { %v2896_v52 = vadd.f32 %v2895_v23, %v2807_v21  ;;  %v2984_v22 = vpop.f32.mrf.mxu3  ;;  %v8248_v23 = vld [vmem:[#allocation38_spill] sm:$0xff] }
 0x4ac   :  { %v2808_v48 = vpop.f32.mrf.mxu1 }
 0x4ad   :  { %v2985_v54 = vadd.f32 %v2984_v22, %v2896_v52  ;;  %v2809_v15 = vadd.f32 %v2808_v48, %v2720_v45  ;;  %v8249_v45 = vld [vmem:[#allocation114_spill] sm:$0xff]  ;;  %v2725_v48 = vadd.f32 %v7018_v59, %v7064_v11  ;;  %v8253_v59 = vld [vmem:[#allocation41_spill] sm:$0xff] }
 0x4ae   :  { %v7315_v53 = vpop.f32.mrf.mxu0 }
 0x4af   :  { %v7317_v39 = vadd.f32 %v3073_v12, %v2985_v54  ;;  %v8250_v12 = vld [vmem:[#allocation113_spill] sm:$0xff] }
 0x4b0   :  { %v8251_v52 = vpack.c.bf16 %v8249_v45, %v8250_v12  ;;  %v2728_v45 = vadd.f32 %v7021_v61, %v7064_v11  ;;  %v2730_v61 = vadd.f32 %v7040_v55, %v7064_v11  ;;  %v8258_v55 = vld [vmem:[#allocation7_spill] sm:$0xff] }
 0x4b2   :  { %v2897_v5 = vpop.f32.mrf.mxu2 }
 0x4b3   :  { %v2898_v44 = vadd.f32 %v2897_v5, %v2809_v15  ;;  %v2986_v19 = vpop.f32.mrf.mxu3 }
 0x4b4   :  { %v2811_v9 = vpop.f32.mrf.mxu1 }
 0x4b5   :  { %v7321_v41 = vadd.f32 %v2986_v19, %v2898_v44  ;;  %v2812_v34 = vadd.f32 %v2811_v9, %v2723_v58 }
 0x4b6   :  { %v3078_v21 = vpop.f32.mrf.mxu0 }
 0x4b7   :  { %3126 = vmatmul.bf16.gmra.mxu1 %v8248_v23  ;;  %3747 = vmatmul.bf16.gmra.mxu2 %v8251_v52 }
 0x4b8   :  { %3836 = vmatmul.bf16.gmra.mxu3 %v8252_v0  ;;  %v8255_v0 = vld [vmem:[#allocation12_spill] sm:$0xff] }
 0x4ba   :  { %v2900_v22 = vpop.f32.mrf.mxu2 }
 0x4bb   :  { %v2901_v54 = vadd.f32 %v2900_v22, %v2812_v34  ;;  %v2989_v15 = vpop.f32.mrf.mxu3  ;;  %v8254_v34 = vld [vmem:[#allocation116_spill] sm:$0xff] }
 0x4bc   :  { %v2813_v5 = vpop.f32.mrf.mxu1  ;;  %v8256_v22 = vpack.c.bf16 %v8254_v34, %v8255_v0 }
 0x4bd   :  { %v2990_v58 = vadd.f32 %v2989_v15, %v2901_v54  ;;  %v2814_v44 = vadd.f32 %v2813_v5, %v2725_v48 }
 0x4be   :  { %v7335_v19 = vpop.f32.mrf.mxu0 }
 0x4bf   :  { %v7337_v9 = vadd.f32 %v3078_v21, %v2990_v58  ;;  %v8257_v21 = vpack.c.bf16 %v6917_v60, %v6915_v26 }
 0x4c2   :  { %v2902_v23 = vpop.f32.mrf.mxu2 }
 0x4c3   :  { %v2903_v20 = vadd.f32 %v2902_v23, %v2814_v44  ;;  %v2991_v33 = vpop.f32.mrf.mxu3 }
 0x4c4   :  { %v2816_v30 = vpop.f32.mrf.mxu1 }
 0x4c5   :  { %v7341_v12 = vadd.f32 %v2991_v33, %v2903_v20  ;;  %v2817_v52 = vadd.f32 %v2816_v30, %v2728_v45  ;;  %v2733_v30 = vadd.f32 %v7046_v28, %v7064_v11  ;;  %v2735_v28 = vadd.f32 %v7059_v17, %v7064_v11  ;;  %v7380_v17 = vld [vmem:[%s7666_s4] ss:$0 sm:$0xff] }
 0x4c6   :  { %v3083_v48 = vpop.f32.mrf.mxu0  ;;  %v8267_v11 = vpack.c.bf16 %v6949_v51, %v6947_v56 }
 0x4c7   :  { %3131 = vmatmul.bf16.gmra.mxu1 %v8253_v59  ;;  %3752 = vmatmul.bf16.gmra.mxu2 %v8256_v22  ;;  %v8260_v22 = vld [vmem:[#allocation15_spill] sm:$0xff] }
 0x4c8   :  { %3841 = vmatmul.bf16.gmra.mxu3 %v8257_v21 }
 0x4ca   :  { %v2905_v54 = vpop.f32.mrf.mxu2 }
 0x4cb   :  { %v2906_v15 = vadd.f32 %v2905_v54, %v2817_v52  ;;  %v2994_v5 = vpop.f32.mrf.mxu3  ;;  %v8259_v52 = vld [vmem:[#allocation118_spill] sm:$0xff] }
 0x4cc   :  { %v2818_v58 = vpop.f32.mrf.mxu1  ;;  %v8261_v21 = vpack.c.bf16 %v8259_v52, %v8260_v22  ;;  %v8265_v52 = vld [vmem:[#allocation18_spill] sm:$0xff] }
 0x4cd   :  { %v2995_v44 = vadd.f32 %v2994_v5, %v2906_v15  ;;  %v2819_v23 = vadd.f32 %v2818_v58, %v2730_v61 }
 0x4ce   :  { %v7354_v33 = vpop.f32.mrf.mxu0 }
 0x4cf   :  { %v7352_v45 = vadd.f32 %v3083_v48, %v2995_v44  ;;  %v8262_v48 = vpack.c.bf16 %v6933_v14, %v6931_v47  ;;  %v8263_v47 = vld [vmem:[#allocation47_spill] sm:$0xff] }
 0x4d0   :  { %v8264_v14 = vld [vmem:[#allocation19_spill] sm:$0xff] }
 0x4d1   :  { %v8266_v22 = vpack.c.bf16 %v8264_v14, %v8265_v52  ;;  %v8270_v14 = vld [vmem:[#allocation22_spill] sm:$0xff] }
 0x4d2   :  { %v2907_v20 = vpop.f32.mrf.mxu2 }
 0x4d3   :  { %v2908_v26 = vadd.f32 %v2907_v20, %v2819_v23  ;;  %v2996_v60 = vpop.f32.mrf.mxu3 }
 0x4d4   :  { %v2821_v59 = vpop.f32.mrf.mxu1 }
 0x4d5   :  { %v7358_v34 = vadd.f32 %v2996_v60, %v2908_v26  ;;  %v2822_v0 = vadd.f32 %v2821_v59, %v2733_v30 }
 0x4d6   :  { %v3088_v58 = vpop.f32.mrf.mxu0 }
 0x4d7   :  { %3136 = vmatmul.bf16.gmra.mxu1 %v8258_v55  ;;  %3757 = vmatmul.bf16.gmra.mxu2 %v8261_v21 }
 0x4d8   :  { %3846 = vmatmul.bf16.gmra.mxu3 %v8262_v48 }
 0x4da   :  { %v2910_v54 = vpop.f32.mrf.mxu2 }
 0x4db   :  { %v2911_v61 = vadd.f32 %v2910_v54, %v2822_v0  ;;  %v2999_v15 = vpop.f32.mrf.mxu3 }
 0x4dc   :  { %v2823_v5 = vpop.f32.mrf.mxu1 }
 0x4dd   :  { %v3000_v44 = vadd.f32 %v2999_v15, %v2911_v61  ;;  %v2824_v23 = vadd.f32 %v2823_v5, %v2735_v28 }
 0x4df   :  { %v7369_v20 = vadd.f32 %v3088_v58, %v3000_v44 }
 0x4e2   :  { %v2912_v30 = vpop.f32.mrf.mxu2 }
 0x4e3   :  { %v2913_v26 = vadd.f32 %v2912_v30, %v2824_v23  ;;  %v3001_v60 = vpop.f32.mrf.mxu3 }
 0x4e4   :  { %v3102_v59 = vpop.f32.mrf.mxu1 }
 0x4e5   :  { %v7371_v55 = vadd.f32 %v3001_v60, %v2913_v26  ;;  %v3103_v0 = vadd.f32 %v3102_v59, %v7086_v62  ;;  %v8268_v59 = vld [vmem:[#allocation59_spill] sm:$0xff] }
 0x4e7   :  { %3141 = vmatmul.bf16.gmra.mxu1 %v8263_v47  ;;  %3762 = vmatmul.bf16.gmra.mxu2 %v8266_v22  ;;  %v3280_v61 = vmul.f32 0.1, %v3103_v0  ;;  %vm3184_vm0 = vcmp.gt.f32.partialorder %v3103_v0, 0.0  ;;  %v8269_v47 = vld [vmem:[#allocation23_spill] sm:$0xff] }
 0x4e8   :  { %3851 = vmatmul.bf16.gmra.mxu3 %v8267_v11  ;;  %v8271_v52 = vpack.c.bf16 %v8269_v47, %v8270_v14  ;;  %v8279_v14 = vld [vmem:[#allocation28_spill] sm:$0xff] }
 0x4e9   :  { %v3376_v44 = vsel %vm3184_vm0, %v3103_v0, %v3280_v61 }
 0x4ea   :  { %v3723_v21 = vpop.f32.mrf.mxu2 }
 0x4eb   :  { %v3724_v48 = vadd.f32 %v7380_v17, %v3723_v21  ;;  %v3812_v54 = vpop.f32.mrf.mxu3 }
 0x4ec   :  { %v3104_v28 = vpop.f32.mrf.mxu1 }
 0x4ed   :  { %v7387_v15 = vadd.f32 %v3812_v54, %v3724_v48  ;;  %v3105_v5 = vadd.f32 %v3104_v28, %v7093_v40  ;;  %v8272_v40 = vpack.c.bf16 %v6965_v63, %v6963_v7 }
 0x4ef   :  { %vm3187_vm1 = vcmp.gt.f32.partialorder %v3105_v5, 0.0  ;;  %v3283_v58 = vmul.f32 0.1, %v3105_v5 }
 0x4f1   :  { %v3379_v23 = vsel %vm3187_vm1, %v3105_v5, %v3283_v58 }
 0x4f2   :  { %v3472_v30 = vpack.c.bf16 %v3379_v23, %v3376_v44  ;;  %v3725_v56 = vpop.f32.mrf.mxu2 }
 0x4f3   :  { %v3726_v51 = vadd.f32 %v7380_v17, %v3725_v56  ;;  %v3814_v62 = vpop.f32.mrf.mxu3 }
 0x4f4   :  { %v3107_v26 = vpop.f32.mrf.mxu1  ;;  %3900 = vmatmul.bf16.vlgmr.msrb.gmra.mxu0 %v3472_v30 }
 0x4f5   :  { %v7391_v60 = vadd.f32 %v3814_v62, %v3726_v51  ;;  %v3108_v22 = vadd.f32 %v3107_v26, %v7101_v38  ;;  %v8273_v51 = vld [vmem:[#allocation100_spill] sm:$0xff]  ;;  %v8274_v62 = vld [vmem:[#allocation27_spill] sm:$0xff]  ;;  %v8275_v26 = vld [vmem:[#allocation26_spill] sm:$0xff] }
 0x4f7   :  { %3146 = vmatmul.bf16.gmra.mxu1 %v8268_v59  ;;  %3767 = vmatmul.bf16.gmra.mxu2 %v8271_v52  ;;  %v3286_v54 = vmul.f32 0.1, %v3108_v22  ;;  %vm3190_vm2 = vcmp.gt.f32.partialorder %v3108_v22, 0.0  ;;  %v8276_v59 = vpack.c.bf16 %v8274_v62, %v8275_v26  ;;  %v8282_v62 = vld [vmem:[#allocation31_spill] sm:$0xff]  ;;  %v8283_v26 = vld [vmem:[#allocation30_spill] sm:$0xff] }
 0x4f8   :  { %3856 = vmatmul.bf16.gmra.mxu3 %v8272_v40 }
 0x4f9   :  { %v3382_v58 = vsel %vm3190_vm2, %v3108_v22, %v3286_v54  ;;  %v8280_v54 = vld [vmem:[#allocation29_spill] sm:$0xff] }
 0x4fa   :  { %v3728_v11 = vpop.f32.mrf.mxu2 }
 0x4fb   :  { %v3729_v0 = vadd.f32 %v7380_v17, %v3728_v11  ;;  %v3817_v21 = vpop.f32.mrf.mxu3 }
 0x4fc   :  { %v3109_v48 = vpop.f32.mrf.mxu1 }
 0x4fd   :  { %v7402_v28 = vadd.f32 %v3817_v21, %v3729_v0  ;;  %v3110_v61 = vadd.f32 %v3109_v48, %v7105_v10  ;;  %v8277_v10 = vld [vmem:[#allocation9_spill] sm:$0xff] }
 0x4fe   :  { %v8278_v47 = vpack.c.bf16 %v6981_v25, %v8277_v10  ;;  %v8285_v10 = vld [vmem:[#allocation89_spill] sm:$0xff] }
 0x4ff   :  { %vm3193_vm3 = vcmp.gt.f32.partialorder %v3110_v61, 0.0  ;;  %v3289_v5 = vmul.f32 0.1, %v3110_v61 }
 0x501   :  { %v3385_v44 = vsel %vm3193_vm3, %v3110_v61, %v3289_v5 }
 0x502   :  { %v3730_v23 = vpop.f32.mrf.mxu2  ;;  %v3475_v7 = vpack.c.bf16 %v3385_v44, %v3382_v58 }
 0x503   :  { %v3731_v63 = vadd.f32 %v7380_v17, %v3730_v23  ;;  %v3819_v38 = vpop.f32.mrf.mxu3 }
 0x504   :  { %v3112_v30 = vpop.f32.mrf.mxu1  ;;  %3905 = vmatmul.bf16.gmra.mxu0 %v3475_v7 }
 0x505   :  { %v7406_v56 = vadd.f32 %v3819_v38, %v3731_v63  ;;  %v3113_v52 = vadd.f32 %v3112_v30, %v8279_v14 }
 0x507   :  { %3151 = vmatmul.bf16.gmra.mxu1 %v8273_v51  ;;  %3772 = vmatmul.bf16.gmra.mxu2 %v8276_v59  ;;  %v3292_v21 = vmul.f32 0.1, %v3113_v52  ;;  %vm3196_vm4 = vcmp.gt.f32.partialorder %v3113_v52, 0.0  ;;  %v8281_v51 = vld [vmem:[#allocation104_spill] sm:$0xff]  ;;  %v8284_v59 = vpack.c.bf16 %v8282_v62, %v8283_v26  ;;  %v8289_v62 = vld [vmem:[#allocation35_spill] sm:$0xff]  ;;  %v8290_v26 = vld [vmem:[#allocation34_spill] sm:$0xff] }
 0x508   :  { %3861 = vmatmul.bf16.gmra.mxu3 %v8278_v47  ;;  %v8286_v47 = vld [vmem:[#allocation88_spill] sm:$0xff] }
 0x509   :  { %v3388_v58 = vsel %vm3196_vm4, %v3113_v52, %v3292_v21  ;;  %v8287_v14 = vpack.c.bf16 %v8285_v10, %v8286_v47  ;;  %v8293_v10 = vld [vmem:[#allocation92_spill] sm:$0xff] }
 0x50a   :  { %v3733_v40 = vpop.f32.mrf.mxu2 }
 0x50b   :  { %v3734_v22 = vadd.f32 %v7380_v17, %v3733_v40  ;;  %v3822_v11 = vpop.f32.mrf.mxu3 }
 0x50c   :  { %v3114_v0 = vpop.f32.mrf.mxu1 }
 0x50d   :  { %v7417_v48 = vadd.f32 %v3822_v11, %v3734_v22  ;;  %v3115_v61 = vadd.f32 %v3114_v0, %v8280_v54 }
 0x50f   :  { %vm3199_vm5 = vcmp.gt.f32.partialorder %v3115_v61, 0.0  ;;  %v3295_v5 = vmul.f32 0.1, %v3115_v61 }
 0x511   :  { %v3391_v44 = vsel %vm3199_vm5, %v3115_v61, %v3295_v5 }
 0x512   :  { %v3735_v23 = vpop.f32.mrf.mxu2  ;;  %v3478_v25 = vpack.c.bf16 %v3391_v44, %v3388_v58 }
 0x513   :  { %v3736_v7 = vadd.f32 %v7380_v17, %v3735_v23  ;;  %v3824_v63 = vpop.f32.mrf.mxu3 }
 0x514   :  { %v3117_v38 = vpop.f32.mrf.mxu1  ;;  %3910 = vmatmul.bf16.gmra.mxu0 %v3478_v25 }
 0x515   :  { %v7421_v30 = vadd.f32 %v3824_v63, %v3736_v7  ;;  %v3118_v52 = vadd.f32 %v3117_v38, %v7134_v8 }
 0x517   :  { %3156 = vmatmul.bf16.gmra.mxu1 %v8281_v51  ;;  %3777 = vmatmul.bf16.gmra.mxu2 %v8284_v59  ;;  %v3298_v21 = vmul.f32 0.1, %v3118_v52  ;;  %vm3202_vm6 = vcmp.gt.f32.partialorder %v3118_v52, 0.0  ;;  %v8288_v51 = vld [vmem:[#allocation108_spill] sm:$0xff]  ;;  %v8291_v59 = vpack.c.bf16 %v8289_v62, %v8290_v26 }
 0x518   :  { %3866 = vmatmul.bf16.gmra.mxu3 %v8287_v14 }
 0x519   :  { %v3394_v58 = vsel %vm3202_vm6, %v3118_v52, %v3298_v21  ;;  %v3036_v52 = vadd.f32 %v7152_v13, %v7158_v43 }
 0x51a   :  { %v3738_v40 = vpop.f32.mrf.mxu2 }
 0x51b   :  { %v3739_v22 = vadd.f32 %v7380_v17, %v3738_v40  ;;  %v3827_v11 = vpop.f32.mrf.mxu3 }
 0x51c   :  { %v3119_v0 = vpop.f32.mrf.mxu1 }
 0x51d   :  { %v7432_v54 = vadd.f32 %v3827_v11, %v3739_v22  ;;  %v3120_v61 = vadd.f32 %v3119_v0, %v7138_v4  ;;  %v8292_v4 = vld [vmem:[#allocation93_spill] sm:$0xff] }
 0x51e   :  { %v8294_v47 = vpack.c.bf16 %v8292_v4, %v8293_v10 }
 0x51f   :  { %vm3205_vm7 = vcmp.gt.f32.partialorder %v3120_v61, 0.0  ;;  %v3301_v5 = vmul.f32 0.1, %v3120_v61 }
 0x521   :  { %v3397_v44 = vsel %vm3205_vm7, %v3120_v61, %v3301_v5 }
 0x522   :  { %v3740_v23 = vpop.f32.mrf.mxu2  ;;  %v3481_v25 = vpack.c.bf16 %v3397_v44, %v3394_v58  ;;  %v8295_v44 = vld [vmem:[#allocation111_spill] sm:$0xff] }
 0x523   :  { %v3741_v7 = vadd.f32 %v7380_v17, %v3740_v23  ;;  %v3829_v8 = vpop.f32.mrf.mxu3  ;;  %v8296_v23 = vld [vmem:[#allocation40_spill] sm:$0xff] }
 0x524   :  { %v3122_v63 = vpop.f32.mrf.mxu1  ;;  %3915 = vmatmul.bf16.gmra.mxu0 %v3481_v25  ;;  %v8297_v25 = vld [vmem:[#allocation39_spill] sm:$0xff] }
 0x525   :  { %v7436_v38 = vadd.f32 %v3829_v8, %v3741_v7  ;;  %v3123_v14 = vadd.f32 %v3122_v63, %v7154_v24  ;;  %v8298_v7 = vpack.c.bf16 %v8296_v23, %v8297_v25  ;;  %v8299_v24 = vld [vmem:[#allocation17_spill] sm:$0xff]  ;;  %v8300_v8 = vld [vmem:[#allocation16_spill] sm:$0xff]  ;;  %v3041_v63 = vadd.f32 %v7181_v46, %v7199_v6 }
 0x526   :  { %v8301_v13 = vpack.c.bf16 %v8299_v24, %v8300_v8  ;;  %v8309_v8 = vld [vmem:[#allocation117_spill] sm:$0xff] }
 0x527   :  { %3161 = vmatmul.bf16.gmra.mxu1 %v8288_v51  ;;  %3782 = vmatmul.bf16.gmra.mxu2 %v8291_v59  ;;  %v3304_v22 = vmul.f32 0.1, %v3123_v14  ;;  %vm3208_vm8 = vcmp.gt.f32.partialorder %v3123_v14, 0.0 }
 0x528   :  { %3871 = vmatmul.bf16.gmra.mxu3 %v8294_v47 }
 0x529   :  { %v3400_v21 = vsel %vm3208_vm8, %v3123_v14, %v3304_v22  ;;  %v8304_v22 = vld [vmem:[#allocation45_spill] sm:$0xff] }
 0x52c   :  { %v3124_v40 = vpop.f32.mrf.mxu1 }
 0x52d   :  { %v3125_v11 = vadd.f32 %v3124_v40, %v3036_v52  ;;  %v8302_v52 = vld [vmem:[#allocation115_spill] sm:$0xff]  ;;  %v8303_v40 = vld [vmem:[#allocation46_spill] sm:$0xff] }
 0x52f   :  { %vm3211_vm9 = vcmp.gt.f32.partialorder %v3125_v11, 0.0  ;;  %v3307_v0 = vmul.f32 0.1, %v3125_v11 }
 0x531   :  { %v3403_v61 = vsel %vm3211_vm9, %v3125_v11, %v3307_v0  ;;  %v8305_v11 = vpack.c.bf16 %v8303_v40, %v8304_v22  ;;  %v8307_v0 = vld [vmem:[#allocation20_spill] sm:$0xff]  ;;  %v7478_v22 = vpop.f32.mrf.mxu0 }
 0x532   :  { %v3484_v5 = vpack.c.bf16 %v3403_v61, %v3400_v21  ;;  %v3046_v21 = vadd.f32 %v7207_v2, %v7213_v42 }
 0x534   :  { %v3127_v58 = vpop.f32.mrf.mxu1  ;;  %3920 = vmatmul.bf16.gmra.mxu0 %v3484_v5 }
 0x535   :  { %v3128_v43 = vadd.f32 %v3127_v58, %v7183_v37  ;;  %v8306_v37 = vld [vmem:[#allocation21_spill] sm:$0xff] }
 0x536   :  { %v8308_v46 = vpack.c.bf16 %v8306_v37, %v8307_v0 }
 0x537   :  { %3166 = vmatmul.bf16.gmra.mxu1 %v8295_v44  ;;  %3787 = vmatmul.bf16.gmra.mxu2 %v8298_v7  ;;  %v3310_v62 = vmul.f32 0.1, %v3128_v43  ;;  %vm3214_vm10 = vcmp.gt.f32.partialorder %v3128_v43, 0.0 }
 0x538   :  { %3876 = vmatmul.bf16.gmra.mxu3 %v8301_v13  ;;  %v8310_v13 = vld [vmem:[#allocation51_spill] sm:$0xff] }
 0x539   :  { %v3406_v4 = vsel %vm3214_vm10, %v3128_v43, %v3310_v62  ;;  %v8311_v43 = vld [vmem:[#allocation44_spill] sm:$0xff]  ;;  %v3051_v62 = vadd.f32 %v7224_v27, %v7230_v32 }
 0x53c   :  { %v3129_v51 = vpop.f32.mrf.mxu1 }
 0x53d   :  { %v3130_v26 = vadd.f32 %v3129_v51, %v3041_v63  ;;  %v8312_v63 = vpack.c.bf16 %v8310_v13, %v8311_v43  ;;  %v8314_v51 = vld [vmem:[#allocation24_spill] sm:$0xff] }
 0x53f   :  { %vm3217_vm11 = vcmp.gt.f32.partialorder %v3130_v26, 0.0  ;;  %v3313_v59 = vmul.f32 0.1, %v3130_v26 }
 0x541   :  { %v3409_v10 = vsel %vm3217_vm11, %v3130_v26, %v3313_v59 }
 0x542   :  { %v3487_v47 = vpack.c.bf16 %v3409_v10, %v3406_v4 }
 0x544   :  { %v3132_v14 = vpop.f32.mrf.mxu1  ;;  %3925 = vmatmul.bf16.gmra.mxu0 %v3487_v47 }
 0x545   :  { %v3133_v6 = vadd.f32 %v3132_v14, %v7209_v18  ;;  %v8313_v18 = vld [vmem:[#allocation25_spill] sm:$0xff] }
 0x546   :  { %v8315_v2 = vpack.c.bf16 %v8313_v18, %v8314_v51 }
 0x547   :  { %3171 = vmatmul.bf16.gmra.mxu1 %v8302_v52  ;;  %3792 = vmatmul.bf16.gmra.mxu2 %v8305_v11  ;;  %v3316_v5 = vmul.f32 0.1, %v3133_v6  ;;  %vm3220_vm12 = vcmp.gt.f32.partialorder %v3133_v6, 0.0 }
 0x548   :  { %3881 = vmatmul.bf16.gmra.mxu3 %v8308_v46 }
 0x549   :  { %v3412_v23 = vsel %vm3220_vm12, %v3133_v6, %v3316_v5 }
 0x54c   :  { %v3134_v61 = vpop.f32.mrf.mxu1 }
 0x54d   :  { %v3135_v58 = vadd.f32 %v3134_v61, %v3046_v21 }
 0x54f   :  { %vm3223_vm13 = vcmp.gt.f32.partialorder %v3135_v58, 0.0  ;;  %v3319_v44 = vmul.f32 0.1, %v3135_v58 }
 0x551   :  { %v3415_v25 = vsel %vm3223_vm13, %v3135_v58, %v3319_v44 }
 0x552   :  { %v3490_v7 = vpack.c.bf16 %v3415_v25, %v3412_v23  ;;  %v8317_v25 = vld [vmem:[#allocation33_spill] sm:$0xff] }
 0x554   :  { %v3137_v24 = vpop.f32.mrf.mxu1  ;;  %3930 = vmatmul.bf16.gmra.mxu0 %v3490_v7  ;;  %v3061_v7 = vadd.f32 %v8317_v25, %v7267_v57 }
 0x555   :  { %v3138_v42 = vadd.f32 %v3137_v24, %v7226_v35  ;;  %v8316_v35 = vld [vmem:[#allocation32_spill] sm:$0xff]  ;;  %v7491_v24 = vpop.f32.mrf.mxu2 }
 0x556   :  { %v3056_v37 = vadd.f32 %v8316_v35, %v7247_v49 }
 0x557   :  { %3176 = vmatmul.bf16.gmra.mxu1 %v8309_v8  ;;  %3797 = vmatmul.bf16.gmra.mxu2 %v8312_v63  ;;  %v3322_v59 = vmul.f32 0.1, %v3138_v42  ;;  %vm3226_vm14 = vcmp.gt.f32.partialorder %v3138_v42, 0.0  ;;  %v7496_v63 = vpop.f32.mrf.mxu3 }
 0x558   :  { %3886 = vmatmul.bf16.gmra.mxu3 %v8315_v2 }
 0x559   :  { %v3418_v47 = vsel %vm3226_vm14, %v3138_v42, %v3322_v59 }
 0x55c   :  { %v3139_v26 = vpop.f32.mrf.mxu1 }
 0x55d   :  { %v3140_v4 = vadd.f32 %v3139_v26, %v3051_v62  ;;  %v7502_v42 = vpop.f32.mrf.mxu2 }
 0x55f   :  { %vm3229_vm15 = vcmp.gt.f32.partialorder %v3140_v4, 0.0  ;;  %v3325_v10 = vmul.f32 0.1, %v3140_v4 }
 0x561   :  { %v3421_v14 = vsel %vm3229_vm15, %v3140_v4, %v3325_v10  ;;  %v8318_v4 = vld [vmem:[#allocation36_spill] sm:$0xff] }
 0x562   :  { %v3493_v52 = vpack.c.bf16 %v3421_v14, %v3418_v47  ;;  %v3066_v10 = vadd.f32 %v8318_v4, %v7284_v29  ;;  %v7508_v47 = vpop.f32.mrf.mxu3 }
 0x564   :  { %v3142_v40 = vpop.f32.mrf.mxu1  ;;  %3935 = vmatmul.bf16.gmra.mxu0 %v3493_v52 }
 0x565   :  { %v3143_v11 = vadd.f32 %v3142_v40, %v7243_v36  ;;  %v7513_v40 = vpop.f32.mrf.mxu2 }
 0x567   :  { %v3328_v27 = vmul.f32 0.1, %v3143_v11  ;;  %vm3232_vm0 = vcmp.gt.f32.partialorder %v3143_v11, 0.0 }
 0x569   :  { %v3424_v21 = vsel %vm3232_vm0, %v3143_v11, %v3328_v27 }
 0x56a   :  { %v7519_v27 = vpop.f32.mrf.mxu3 }
 0x56c   :  { %v3144_v0 = vpop.f32.mrf.mxu1 }
 0x56d   :  { %v3145_v32 = vadd.f32 %v3144_v0, %v3056_v37 }
 0x56f   :  { %vm3235_vm1 = vcmp.gt.f32.partialorder %v3145_v32, 0.0  ;;  %v3331_v46 = vmul.f32 0.1, %v3145_v32 }
 0x571   :  { %v3901_v6 = vpop.f32.mrf.mxu0  ;;  %v3427_v61 = vsel %vm3235_vm1, %v3145_v32, %v3331_v46  ;;  %v7521_v32 = vpop.f32.mrf.mxu2 }
 0x572   :  { %v3902_v5 = vadd.f32 %v3901_v6, %v7387_v15  ;;  %v3496_v58 = vpack.c.bf16 %v3427_v61, %v3424_v21  ;;  %v3071_v61 = vadd.f32 %v7298_v3, %v7304_v16 }
 0x574   :  { %3981 = vst [vmem:[%s7667_s5] sm:$0xff] %v3902_v5  ;;  %v3147_v36 = vpop.f32.mrf.mxu1  ;;  %3940 = vmatmul.bf16.gmra.mxu0 %v3496_v58 }
 0x575   :  { %v3148_v49 = vadd.f32 %v3147_v36, %v7263_v1  ;;  %v7530_v36 = vpop.f32.mrf.mxu3 }
 0x577   :  { %v3334_v8 = vmul.f32 0.1, %v3148_v49  ;;  %vm3238_vm2 = vcmp.gt.f32.partialorder %v3148_v49, 0.0 }
 0x579   :  { %v3903_v44 = vpop.f32.mrf.mxu0  ;;  %v3430_v18 = vsel %vm3238_vm2, %v3148_v49, %v3334_v8 }
 0x57a   :  { %v3904_v23 = vadd.f32 %v3903_v44, %v7391_v60 }
 0x57c   :  { %3982 = vst [vmem:[%s7667_s5 + $0x8] sm:$0xff] %v3904_v23  ;;  %v3149_v15 = vpop.f32.mrf.mxu1 }
 0x57d   :  { %v3150_v13 = vadd.f32 %v3149_v15, %v3061_v7  ;;  %v3753_v7 = vpop.f32.mrf.mxu2  ;;  %v7536_v16 = vpop.f32.mrf.mxu3 }
 0x57f   :  { %vm3241_vm3 = vcmp.gt.f32.partialorder %v3150_v13, 0.0  ;;  %v3337_v43 = vmul.f32 0.1, %v3150_v13 }
 0x581   :  { %v3906_v1 = vpop.f32.mrf.mxu0  ;;  %v3433_v60 = vsel %vm3241_vm3, %v3150_v13, %v3337_v43  ;;  %v3076_v43 = vadd.f32 %v7315_v53, %v7321_v41 }
 0x582   :  { %v3907_v51 = vadd.f32 %v3906_v1, %v7402_v28  ;;  %v3499_v57 = vpack.c.bf16 %v3433_v60, %v3430_v18 }
 0x584   :  { %3983 = vst [vmem:[%s7667_s5 + $0x10] sm:$0xff] %v3907_v51  ;;  %v3152_v2 = vpop.f32.mrf.mxu1  ;;  %3945 = vmatmul.bf16.gmra.mxu0 %v3499_v57 }
 0x585   :  { %v3153_v62 = vadd.f32 %v3152_v2, %v7280_v31  ;;  %v7547_v18 = vpop.f32.mrf.mxu2 }
 0x587   :  { %v3340_v14 = vmul.f32 0.1, %v3153_v62  ;;  %vm3244_vm4 = vcmp.gt.f32.partialorder %v3153_v62, 0.0 }
 0x589   :  { %v3908_v26 = vpop.f32.mrf.mxu0  ;;  %v3436_v35 = vsel %vm3244_vm4, %v3153_v62, %v3340_v14 }
 0x58a   :  { %v3909_v59 = vadd.f32 %v3908_v26, %v7406_v56  ;;  %v3746_v26 = vadd.f32 %v7380_v17, %v7502_v42 }
 0x58c   :  { %3984 = vst [vmem:[%s7667_s5 + $0x18] sm:$0xff] %v3909_v59  ;;  %v3154_v28 = vpop.f32.mrf.mxu1 }
 0x58d   :  { %v3155_v52 = vadd.f32 %v3154_v28, %v3066_v10  ;;  %v3758_v4 = vpop.f32.mrf.mxu2  ;;  %v3835_v10 = vadd.f32 %v7508_v47, %v3746_v26 }
 0x58f   :  { %vm3247_vm5 = vcmp.gt.f32.partialorder %v3155_v52, 0.0  ;;  %v3343_v31 = vmul.f32 0.1, %v3155_v52 }
 0x591   :  { %v3911_v11 = vpop.f32.mrf.mxu0  ;;  %v3439_v56 = vsel %vm3247_vm5, %v3155_v52, %v3343_v31  ;;  %v3081_v52 = vadd.f32 %v7335_v19, %v7341_v12  ;;  %v3749_v31 = vadd.f32 %v7380_v17, %v7513_v40  ;;  %v3751_v40 = vadd.f32 %v7380_v17, %v7521_v32 }
 0x592   :  { %v3912_v37 = vadd.f32 %v3911_v11, %v7417_v48  ;;  %v3502_v29 = vpack.c.bf16 %v3439_v56, %v3436_v35 }
 0x594   :  { %3985 = vst [vmem:[%s7667_s5 + $0x20] sm:$0xff] %v3912_v37  ;;  %v3157_v0 = vpop.f32.mrf.mxu1  ;;  %3950 = vmatmul.bf16.gmra.mxu0 %v3502_v29 }
 0x595   :  { %v3158_v46 = vadd.f32 %v3157_v0, %v7300_v50  ;;  %v3760_v37 = vpop.f32.mrf.mxu2 }
 0x597   :  { %v3346_v5 = vmul.f32 0.1, %v3158_v46  ;;  %vm3250_vm6 = vcmp.gt.f32.partialorder %v3158_v46, 0.0 }
 0x599   :  { %v3913_v6 = vpop.f32.mrf.mxu0  ;;  %v3442_v50 = vsel %vm3250_vm6, %v3158_v46, %v3346_v5 }
 0x59a   :  { %v3914_v21 = vadd.f32 %v3913_v6, %v7421_v30 }
 0x59c   :  { %3986 = vst [vmem:[%s7667_s5 + $0x28] sm:$0xff] %v3914_v21  ;;  %v3159_v48 = vpop.f32.mrf.mxu1 }
 0x59d   :  { %v3160_v58 = vadd.f32 %v3159_v48, %v3071_v61  ;;  %v3840_v61 = vadd.f32 %v7530_v36, %v3751_v40 }
 0x59f   :  { %vm3253_vm7 = vcmp.gt.f32.partialorder %v3160_v58, 0.0  ;;  %v3349_v49 = vmul.f32 0.1, %v3160_v58 }
 0x5a1   :  { %v3916_v44 = vpop.f32.mrf.mxu0  ;;  %v3445_v23 = vsel %vm3253_vm7, %v3160_v58, %v3349_v49  ;;  %v3086_v58 = vadd.f32 %v7354_v33, %v7358_v34  ;;  %v3763_v49 = vpop.f32.mrf.mxu2 }
 0x5a2   :  { %v3917_v30 = vadd.f32 %v3916_v44, %v7432_v54  ;;  %v3505_v25 = vpack.c.bf16 %v3445_v23, %v3442_v50  ;;  %v3744_v54 = vadd.f32 %v7380_v17, %v7491_v24  ;;  %v3844_v24 = vpop.f32.mrf.mxu3  ;;  %v3754_v44 = vadd.f32 %v7380_v17, %v3753_v7 }
 0x5a3   :  { %v3756_v7 = vadd.f32 %v7380_v17, %v7547_v18 }
 0x5a4   :  { %3987 = vst [vmem:[%s7667_s5 + $0x30] sm:$0xff] %v3917_v30  ;;  %v3162_v3 = vpop.f32.mrf.mxu1  ;;  %3955 = vmatmul.bf16.gmra.mxu0 %v3505_v25 }
 0x5a5   :  { %v3163_v15 = vadd.f32 %v3162_v3, %v7317_v39 }
 0x5a7   :  { %v3352_v60 = vmul.f32 0.1, %v3163_v15  ;;  %vm3256_vm8 = vcmp.gt.f32.partialorder %v3163_v15, 0.0 }
 0x5a9   :  { %v3918_v8 = vpop.f32.mrf.mxu0  ;;  %v3448_v2 = vsel %vm3256_vm8, %v3163_v15, %v3352_v60  ;;  %v3091_v60 = vadd.f32 %v7478_v22, %v7371_v55  ;;  %v3761_v22 = vadd.f32 %v7380_v17, %v3760_v37 }
 0x5aa   :  { %v3919_v13 = vadd.f32 %v3918_v8, %v7436_v38  ;;  %v3833_v38 = vadd.f32 %v7496_v63, %v3744_v54  ;;  %v3847_v11 = vpop.f32.mrf.mxu3 }
 0x5ac   :  { %3988 = vst [vmem:[%s7667_s5 + $0x38] sm:$0xff] %v3919_v13  ;;  %v3164_v1 = vpop.f32.mrf.mxu1  ;;  %v3765_v13 = vpop.f32.mrf.mxu2 }
 0x5ad   :  { %v3165_v51 = vadd.f32 %v3164_v1, %v3076_v43  ;;  %v3845_v43 = vadd.f32 %v3844_v24, %v3756_v7 }
 0x5af   :  { %vm3259_vm9 = vcmp.gt.f32.partialorder %v3165_v51, 0.0  ;;  %v3355_v39 = vmul.f32 0.1, %v3165_v51 }
 0x5b1   :  { %v3921_v57 = vpop.f32.mrf.mxu0  ;;  %v3451_v53 = vsel %vm3259_vm9, %v3165_v51, %v3355_v39  ;;  %v3759_v39 = vadd.f32 %v7380_v17, %v3758_v4 }
 0x5b2   :  { %v3922_v41 = vadd.f32 %v3921_v57, %v3833_v38  ;;  %v3508_v62 = vpack.c.bf16 %v3451_v53, %v3448_v2  ;;  %v3849_v21 = vpop.f32.mrf.mxu3 }
 0x5b3   :  { %v3850_v4 = vadd.f32 %v3849_v21, %v3761_v22 }
 0x5b4   :  { %3989 = vst [vmem:[%s7667_s5 + $0x40] sm:$0xff] %v3922_v41  ;;  %v3167_v59 = vpop.f32.mrf.mxu1  ;;  %3960 = vmatmul.bf16.gmra.mxu0 %v3508_v62  ;;  %v3768_v2 = vpop.f32.mrf.mxu2 }
 0x5b5   :  { %v3168_v63 = vadd.f32 %v3167_v59, %v7337_v9  ;;  %v3838_v9 = vadd.f32 %v7519_v27, %v3749_v31 }
 0x5b7   :  { %v3358_v35 = vmul.f32 0.1, %v3168_v63  ;;  %vm3262_vm10 = vcmp.gt.f32.partialorder %v3168_v63, 0.0 }
 0x5b9   :  { %v3923_v28 = vpop.f32.mrf.mxu0  ;;  %v3454_v0 = vsel %vm3262_vm10, %v3168_v63, %v3358_v35 }
 0x5ba   :  { %v3924_v14 = vadd.f32 %v3923_v28, %v3835_v10  ;;  %v3852_v30 = vpop.f32.mrf.mxu3 }
 0x5bc   :  { %3990 = vst [vmem:[%s7667_s5 + $0x48] sm:$0xff] %v3924_v14  ;;  %v3169_v42 = vpop.f32.mrf.mxu1  ;;  %v3770_v10 = vpop.f32.mrf.mxu2  ;;  %v3764_v14 = vadd.f32 %v7380_v17, %v3763_v49 }
 0x5bd   :  { %v3170_v56 = vadd.f32 %v3169_v42, %v3081_v52  ;;  %v3771_v21 = vadd.f32 %v7380_v17, %v3770_v10 }
 0x5be   :  { %v3853_v31 = vadd.f32 %v3852_v30, %v3764_v14 }
 0x5bf   :  { %vm3265_vm11 = vcmp.gt.f32.partialorder %v3170_v56, 0.0  ;;  %v3361_v47 = vmul.f32 0.1, %v3170_v56 }
 0x5c1   :  { %v3926_v29 = vpop.f32.mrf.mxu0  ;;  %v3457_v19 = vsel %vm3265_vm11, %v3170_v56, %v3361_v47  ;;  %v3766_v56 = vadd.f32 %v7380_v17, %v3765_v13 }
 0x5c2   :  { %v3927_v12 = vadd.f32 %v3926_v29, %v3838_v9  ;;  %v3511_v46 = vpack.c.bf16 %v3457_v19, %v3454_v0  ;;  %v3854_v51 = vpop.f32.mrf.mxu3  ;;  %v3769_v0 = vadd.f32 %v7380_v17, %v3768_v2 }
 0x5c3   :  { %v3855_v47 = vadd.f32 %v3854_v51, %v3766_v56 }
 0x5c4   :  { %3991 = vst [vmem:[%s7667_s5 + $0x50] sm:$0xff] %v3927_v12  ;;  %v3172_v6 = vpop.f32.mrf.mxu1  ;;  %3965 = vmatmul.bf16.gmra.mxu0 %v3511_v46  ;;  %v3773_v35 = vpop.f32.mrf.mxu2 }
 0x5c5   :  { %v3173_v27 = vadd.f32 %v3172_v6, %v7352_v45  ;;  %v3843_v45 = vadd.f32 %v7536_v16, %v3754_v44 }
 0x5c7   :  { %v3364_v50 = vmul.f32 0.1, %v3173_v27  ;;  %vm3268_vm12 = vcmp.gt.f32.partialorder %v3173_v27, 0.0 }
 0x5c9   :  { %v3928_v48 = vpop.f32.mrf.mxu0  ;;  %v3460_v3 = vsel %vm3268_vm12, %v3173_v27, %v3364_v50 }
 0x5ca   :  { %v3929_v5 = vadd.f32 %v3928_v48, %v3840_v61  ;;  %v3857_v59 = vpop.f32.mrf.mxu3 }
 0x5cb   :  { %v3858_v12 = vadd.f32 %v3857_v59, %v3769_v0 }
 0x5cc   :  { %3992 = vst [vmem:[%s7667_s5 + $0x58] sm:$0xff] %v3929_v5  ;;  %v3174_v32 = vpop.f32.mrf.mxu1  ;;  %v3775_v19 = vpop.f32.mrf.mxu2 }
 0x5cd   :  { %v3175_v23 = vadd.f32 %v3174_v32, %v3086_v58  ;;  %v3774_v58 = vadd.f32 %v7380_v17, %v3773_v35 }
 0x5cf   :  { %vm3271_vm13 = vcmp.gt.f32.partialorder %v3175_v23, 0.0  ;;  %v3367_v36 = vmul.f32 0.1, %v3175_v23 }
 0x5d1   :  { %v3931_v25 = vpop.f32.mrf.mxu0  ;;  %v3463_v15 = vsel %vm3271_vm13, %v3175_v23, %v3367_v36  ;;  %v3776_v36 = vadd.f32 %v7380_v17, %v3775_v19 }
 0x5d2   :  { %v3932_v33 = vadd.f32 %v3931_v25, %v3843_v45  ;;  %v3514_v34 = vpack.c.bf16 %v3463_v15, %v3460_v3  ;;  %v3859_v52 = vpop.f32.mrf.mxu3 }
 0x5d3   :  { %v3860_v27 = vadd.f32 %v3859_v52, %v3771_v21 }
 0x5d4   :  { %3993 = vst [vmem:[%s7667_s5 + $0x60] sm:$0xff] %v3932_v33  ;;  %v3177_v8 = vpop.f32.mrf.mxu1  ;;  %3970 = vmatmul.bf16.gmra.mxu0 %v3514_v34  ;;  %v3778_v61 = vpop.f32.mrf.mxu2 }
 0x5d5   :  { %v3178_v54 = vadd.f32 %v3177_v8, %v7369_v20  ;;  %v3848_v20 = vadd.f32 %v3847_v11, %v3759_v39  ;;  %v3779_v33 = vadd.f32 %v7380_v17, %v3778_v61 }
 0x5d7   :  { %v3370_v38 = vmul.f32 0.1, %v3178_v54  ;;  %vm3274_vm14 = vcmp.gt.f32.partialorder %v3178_v54, 0.0 }
 0x5d9   :  { %v3933_v16 = vpop.f32.mrf.mxu0  ;;  %v3466_v62 = vsel %vm3274_vm14, %v3178_v54, %v3370_v38 }
 0x5da   :  { %v3934_v1 = vadd.f32 %v3933_v16, %v3845_v43  ;;  %v3862_v9 = vpop.f32.mrf.mxu3 }
 0x5db   :  { %v3863_v44 = vadd.f32 %v3862_v9, %v3774_v58 }
 0x5dc   :  { %3994 = vst [vmem:[%s7667_s5 + $0x68] sm:$0xff] %v3934_v1  ;;  %v3179_v18 = vpop.f32.mrf.mxu1  ;;  %v3780_v32 = vpop.f32.mrf.mxu2 }
 0x5dd   :  { %v3180_v57 = vadd.f32 %v3179_v18, %v3091_v60  ;;  %v3781_v43 = vadd.f32 %v7380_v17, %v3780_v32 }
 0x5df   :  { %vm3277_vm15 = vcmp.gt.f32.partialorder %v3180_v57, 0.0  ;;  %v3373_v53 = vmul.f32 0.1, %v3180_v57 }
 0x5e1   :  { %v3936_v41 = vpop.f32.mrf.mxu0  ;;  %v3469_v24 = vsel %vm3277_vm15, %v3180_v57, %v3373_v53 }
 0x5e2   :  { %v3937_v26 = vadd.f32 %v3936_v41, %v3848_v20  ;;  %v3517_v55 = vpack.c.bf16 %v3469_v24, %v3466_v62  ;;  %v3864_v6 = vpop.f32.mrf.mxu3 }
 0x5e3   :  { %v3865_v30 = vadd.f32 %v3864_v6, %v3776_v36 }
 0x5e4   :  { %3995 = vst [vmem:[%s7667_s5 + $0x70] sm:$0xff] %v3937_v26  ;;  %3975 = vmatmul.bf16.gmra.mxu0 %v3517_v55  ;;  %v3783_v15 = vpop.f32.mrf.mxu2 }
 0x5e5   :  { %v3784_v39 = vadd.f32 %v7380_v17, %v3783_v15 }
 0x5e9   :  { %v3938_v63 = vpop.f32.mrf.mxu0 }
 0x5ea   :  { %v3939_v28 = vadd.f32 %v3938_v63, %v3850_v4  ;;  %v3867_v49 = vpop.f32.mrf.mxu3 }
 0x5eb   :  { %v3868_v34 = vadd.f32 %v3867_v49, %v3779_v33 }
 0x5ec   :  { %3996 = vst [vmem:[%s7667_s5 + $0x78] sm:$0xff] %v3939_v28  ;;  %v3785_v54 = vpop.f32.mrf.mxu2 }
 0x5ed   :  { %v3786_v53 = vadd.f32 %v7380_v17, %v3785_v54 }
 0x5f1   :  { %v3941_v42 = vpop.f32.mrf.mxu0 }
 0x5f2   :  { %v3942_v11 = vadd.f32 %v3941_v42, %v3853_v31  ;;  %v3869_v45 = vpop.f32.mrf.mxu3 }
 0x5f3   :  { %v3870_v16 = vadd.f32 %v3869_v45, %v3781_v43 }
 0x5f4   :  { %3997 = vst [vmem:[%s7667_s5 + $0x80] sm:$0xff] %v3942_v11  ;;  %v3788_v18 = vpop.f32.mrf.mxu2 }
 0x5f5   :  { %v3789_v55 = vadd.f32 %v7380_v17, %v3788_v18 }
 0x5f9   :  { %v3943_v37 = vpop.f32.mrf.mxu0 }
 0x5fa   :  { %v3944_v29 = vadd.f32 %v3943_v37, %v3855_v47  ;;  %v3872_v7 = vpop.f32.mrf.mxu3 }
 0x5fb   :  { %v3873_v38 = vadd.f32 %v3872_v7, %v3784_v39 }
 0x5fc   :  { %3998 = vst [vmem:[%s7667_s5 + $0x88] sm:$0xff] %v3944_v29  ;;  %v3790_v62 = vpop.f32.mrf.mxu2 }
 0x5fd   :  { %v3791_v28 = vadd.f32 %v7380_v17, %v3790_v62 }
 0x601   :  { %v3946_v46 = vpop.f32.mrf.mxu0 }
 0x602   :  { %v3947_v40 = vadd.f32 %v3946_v46, %v3858_v12  ;;  %v3874_v51 = vpop.f32.mrf.mxu3 }
 0x603   :  { %v3875_v41 = vadd.f32 %v3874_v51, %v3786_v53 }
 0x604   :  { %3999 = vst [vmem:[%s7667_s5 + $0x90] sm:$0xff] %v3947_v40  ;;  %v3793_v63 = vpop.f32.mrf.mxu2 }
 0x605   :  { %v3794_v11 = vadd.f32 %v7380_v17, %v3793_v63 }
 0x609   :  { %v3948_v48 = vpop.f32.mrf.mxu0 }
 0x60a   :  { %v3949_v5 = vadd.f32 %v3948_v48, %v3860_v27  ;;  %v3877_v20 = vpop.f32.mrf.mxu3 }
 0x60b   :  { %v3878_v59 = vadd.f32 %v3877_v20, %v3789_v55 }
 0x60c   :  { %4000 = vst [vmem:[%s7667_s5 + $0x98] sm:$0xff] %v3949_v5  ;;  %v3795_v35 = vpop.f32.mrf.mxu2 }
 0x60d   :  { %v3796_v29 = vadd.f32 %v7380_v17, %v3795_v35 }
 0x611   :  { %v3951_v50 = vpop.f32.mrf.mxu0 }
 0x612   :  { %v3952_v23 = vadd.f32 %v3951_v50, %v3863_v44  ;;  %v3879_v22 = vpop.f32.mrf.mxu3 }
 0x613   :  { %v3880_v14 = vadd.f32 %v3879_v22, %v3791_v28 }
 0x614   :  { %4001 = vst [vmem:[%s7667_s5 + $0xa0] sm:$0xff] %v3952_v23  ;;  %v3798_v0 = vpop.f32.mrf.mxu2 }
 0x615   :  { %v3799_v40 = vadd.f32 %v7380_v17, %v3798_v0 }
 0x619   :  { %v3953_v25 = vpop.f32.mrf.mxu0 }
 0x61a   :  { %v3954_v3 = vadd.f32 %v3953_v25, %v3865_v30  ;;  %v3882_v52 = vpop.f32.mrf.mxu3 }
 0x61b   :  { %v3883_v56 = vadd.f32 %v3882_v52, %v3794_v11 }
 0x61c   :  { %4002 = vst [vmem:[%s7667_s5 + $0xa8] sm:$0xff] %v3954_v3  ;;  %v3800_v61 = vpop.f32.mrf.mxu2 }
 0x61d   :  { %v3801_v5 = vadd.f32 %v7380_v17, %v3800_v61 }
 0x621   :  { %v3956_v8 = vpop.f32.mrf.mxu0 }
 0x622   :  { %v3957_v13 = vadd.f32 %v3956_v8, %v3868_v34  ;;  %v3884_v37 = vpop.f32.mrf.mxu3 }
 0x623   :  { %v3885_v19 = vadd.f32 %v3884_v37, %v3796_v29 }
 0x624   :  { %4003 = vst [vmem:[%s7667_s5 + $0xb0] sm:$0xff] %v3957_v13 }
 0x629   :  { %v3958_v1 = vpop.f32.mrf.mxu0 }
 0x62a   :  { %v3959_v60 = vadd.f32 %v3958_v1, %v3870_v16  ;;  %v3887_v6 = vpop.f32.mrf.mxu3 }
 0x62b   :  { %v3888_v21 = vadd.f32 %v3887_v6, %v3799_v40 }
 0x62c   :  { %4004 = vst [vmem:[%s7667_s5 + $0xb8] sm:$0xff] %v3959_v60 }
 0x631   :  { %v3961_v57 = vpop.f32.mrf.mxu0 }
 0x632   :  { %v3962_v2 = vadd.f32 %v3961_v57, %v3873_v38  ;;  %v3889_v58 = vpop.f32.mrf.mxu3 }
 0x633   :  { %v3890_v49 = vadd.f32 %v3889_v58, %v3801_v5 }
 0x634   :  { %4005 = vst [vmem:[%s7667_s5 + $0xc0] sm:$0xff] %v3962_v2 }
 0x639   :  { %v3963_v24 = vpop.f32.mrf.mxu0 }
 0x63a   :  { %v3964_v26 = vadd.f32 %v3963_v24, %v3875_v41 }
 0x63c   :  { %4006 = vst [vmem:[%s7667_s5 + $0xc8] sm:$0xff] %v3964_v26 }
 0x641   :  { %v3966_v4 = vpop.f32.mrf.mxu0 }
 0x642   :  { %v3967_v10 = vadd.f32 %v3966_v4, %v3878_v59 }
 0x644   :  { %4007 = vst [vmem:[%s7667_s5 + $0xd0] sm:$0xff] %v3967_v10 }
 0x649   :  { %v3968_v31 = vpop.f32.mrf.mxu0 }
 0x64a   :  { %v3969_v42 = vadd.f32 %v3968_v31, %v3880_v14 }
 0x64c   :  { %4008 = vst [vmem:[%s7667_s5 + $0xd8] sm:$0xff] %v3969_v42 }
 0x651   :  { %v3971_v47 = vpop.f32.mrf.mxu0 }
 0x652   :  { %v3972_v9 = vadd.f32 %v3971_v47, %v3883_v56 }
 0x654   :  { %4009 = vst [vmem:[%s7667_s5 + $0xe0] sm:$0xff] %v3972_v9 }
 0x659   :  { %v3973_v12 = vpop.f32.mrf.mxu0 }
 0x65a   :  { %v3974_v46 = vadd.f32 %v3973_v12, %v3885_v19 }
 0x65c   :  { %4010 = vst [vmem:[%s7667_s5 + $0xe8] sm:$0xff] %v3974_v46 }
 0x661   :  { %v3976_v27 = vpop.f32.mrf.mxu0 }
 0x662   :  { %v3977_v48 = vadd.f32 %v3976_v27, %v3888_v21 }
 0x664   :  { %4011 = vst [vmem:[%s7667_s5 + $0xf0] sm:$0xff] %v3977_v48 }
 0x669   :  { %v3978_v44 = vpop.f32.mrf.mxu0 }
 0x66a   :  { %v3979_v32 = vadd.f32 %v3978_v44, %v3890_v49 }
 0x66c   :  { %4012 = vst [vmem:[%s7667_s5 + $0xf8] sm:$0xff] %v3979_v32 }
 0x66d   :  { %4017 = vsyncpa [#allocation3], 1 }

</bundles_post_ra>
